<compile_context>
chip_gen: v5e
topology: v5e:2x2
jax: 0.10.0
libtpu: 0.0.40
codegen_flags: <defaults>
</compile_context>

<pallas_src>
import jax
import jax.numpy as jnp
from jax.experimental import pallas as pl
from jax.experimental.pallas import tpu as pltpu

# Sizes implied by the environment:
#   observation = 16*20 game_area + 6 game_state + 5 mario_state
#               + 4 enemy_info + 1 distance + 4 no_enemy  = 340
#   n_actions   = len(Actions)                            = 14
N_OBSERVATIONS = 16 * 20 + 6 + 5 + 4 + 1 + 4   # 340
N_ACTIONS = 14
HIDDEN1 = 1024
HIDDEN2 = 512

# Padded (lane/sublane friendly) sizes used inside the kernel.
N_OBS_PAD = 384     # 340 -> 3 * 128  (zero-padded K)
N_ACT_PAD = 128     # 14  -> 128     (zero-padded output lanes)

MAX_BATCH_TILE = 512  # rows per grid step (MXU row fill on v6e/v7x)


def dqn_kernel(x_ref, w1_ref, b1_ref, w2_ref, b2_ref, w3_ref, b3_ref, o_ref):
    # fc1 + ReLU  (bf16 MXU matmul, f32 accumulation; bias/ReLU in f32 on VPU)
    h1 = jnp.dot(x_ref[...], w1_ref[...], preferred_element_type=jnp.float32)
    h1 = jnp.maximum(h1 + b1_ref[...], 0.0)
    # fc2 + ReLU
    h2 = jnp.dot(h1.astype(jnp.bfloat16), w2_ref[...],
                 preferred_element_type=jnp.float32)
    h2 = jnp.maximum(h2 + b2_ref[...], 0.0)
    # out (no activation) — full 128-lane unmasked store
    o_ref[...] = (jnp.dot(h2.astype(jnp.bfloat16), w3_ref[...],
                          preferred_element_type=jnp.float32)
                  + b3_ref[...]).astype(o_ref.dtype)


def dqn_forward(x, params):
    """x: (B, N_OBSERVATIONS) float32.  Returns (B, N_ACTIONS) float32.

    params: w1 (N_OBS_PAD, 1024) bf16, b1 (1, 1024) f32,
            w2 (1024, 512) bf16,      b2 (1, 512)  f32,
            w3 (512, N_ACT_PAD) bf16, b3 (1, N_ACT_PAD) f32.
    """
    w1, b1, w2, b2, w3, b3 = (params["w1"], params["b1"], params["w2"],
                              params["b2"], params["w3"], params["b3"])
    B = x.shape[0]

    # Pad batch to a sublane multiple and pick a batch tile.
    b_pad = max(8, pl.cdiv(B, 8) * 8)
    tm = min(b_pad, MAX_BATCH_TILE)
    b_pad = pl.cdiv(b_pad, tm) * tm
    grid = (b_pad // tm,)

    # Zero-pad observations (rows B..b_pad, features 340..384 match the zero
    # rows of w1, so the math is unchanged) and cast to bf16 in one shot.
    x_p = jnp.pad(x, ((0, b_pad - B), (0, N_OBS_PAD - N_OBSERVATIONS))
                  ).astype(jnp.bfloat16)

    weight_bytes = 2 * (N_OBS_PAD * HIDDEN1 + HIDDEN1 * HIDDEN2
                        + HIDDEN2 * N_ACT_PAD)
    bias_bytes = 4 * (HIDDEN1 + HIDDEN2 + N_ACT_PAD)
    io_bytes = 2 * b_pad * N_OBS_PAD + 4 * b_pad * N_ACT_PAD
    cost = pl.CostEstimate(
        flops=2 * b_pad * (N_OBS_PAD * HIDDEN1 + HIDDEN1 * HIDDEN2
                           + HIDDEN2 * N_ACT_PAD),
        transcendentals=0,
        bytes_accessed=weight_bytes + bias_bytes + io_bytes,
    )

    # Only shard the batch axis across TensorCores when there are enough tiles
    # to amortize the duplicated weight DMA per core (v7x megacore).
    semantics = ("parallel",) if grid[0] >= 4 else ("arbitrary",)

    # Weights/biases: constant index_map => fetched once; single-buffer them.
    w_buf = pl.Buffered(1)

    out_pad = pl.pallas_call(
        dqn_kernel,
        out_shape=jax.ShapeDtypeStruct((b_pad, N_ACT_PAD), jnp.float32),
        grid_spec=pltpu.PrefetchScalarGridSpec(
            num_scalar_prefetch=0,
            grid=grid,
            in_specs=[
                pl.BlockSpec((tm, N_OBS_PAD), lambda i: (i, 0)),       # x tile
                pl.BlockSpec((N_OBS_PAD, HIDDEN1), lambda i: (0, 0),
                             pipeline_mode=w_buf),                     # w1
                pl.BlockSpec((1, HIDDEN1), lambda i: (0, 0),
                             pipeline_mode=w_buf),                     # b1
                pl.BlockSpec((HIDDEN1, HIDDEN2), lambda i: (0, 0),
                             pipeline_mode=w_buf),                     # w2
                pl.BlockSpec((1, HIDDEN2), lambda i: (0, 0),
                             pipeline_mode=w_buf),                     # b2
                pl.BlockSpec((HIDDEN2, N_ACT_PAD), lambda i: (0, 0),
                             pipeline_mode=w_buf),                     # w3
                pl.BlockSpec((1, N_ACT_PAD), lambda i: (0, 0),
                             pipeline_mode=w_buf),                     # b3
            ],
            out_specs=pl.BlockSpec((tm, N_ACT_PAD), lambda i: (i, 0)),
        ),
        compiler_params=pltpu.CompilerParams(
            dimension_semantics=semantics,
            vmem_limit_bytes=32 * 1024 * 1024),
        cost_estimate=cost,
    )(x_p, w1, b1, w2, b2, w3, b3)

    return out_pad[:B, :N_ACTIONS]


def init_params(key):
    """Init mimicking nn.Linear default U(-1/sqrt(in), 1/sqrt(in)).

    Weights are (in, out), stored bf16, zero-padded to the kernel's padded
    shapes (extra rows/cols are zero so padding never changes the math).
    """
    def linear(k, fan_in, fan_out, pad_in, pad_out):
        kw, kb = jax.random.split(k)
        bound = 1.0 / jnp.sqrt(fan_in)
        w = jax.random.uniform(kw, (fan_in, fan_out), jnp.float32, -bound, bound)
        b = jax.random.uniform(kb, (1, fan_out), jnp.float32, -bound, bound)
        w_p = jnp.zeros((pad_in, pad_out), jnp.float32).at[:fan_in, :fan_out].set(w)
        b_p = jnp.zeros((1, pad_out), jnp.float32).at[:, :fan_out].set(b)
        return w_p.astype(jnp.bfloat16), b_p

    k1, k2, k3 = jax.random.split(key, 3)
    w1, b1 = linear(k1, N_OBSERVATIONS, HIDDEN1, N_OBS_PAD, HIDDEN1)
    w2, b2 = linear(k2, HIDDEN1, HIDDEN2, HIDDEN1, HIDDEN2)
    w3, b3 = linear(k3, HIDDEN2, N_ACTIONS, HIDDEN2, N_ACT_PAD)
    return {"w1": w1, "b1": b1, "w2": w2, "b2": b2, "w3": w3, "b3": b3}


def dqn_reference(x, p):
    """Pure-JAX reference with the same bf16 rounding as the kernel."""
    B = x.shape[0]
    x_p = jnp.pad(x, ((0, 0), (0, N_OBS_PAD - N_OBSERVATIONS)))
    xb = x_p.astype(jnp.bfloat16).astype(jnp.float32)
    w1 = p["w1"].astype(jnp.float32)
    w2 = p["w2"].astype(jnp.float32)
    w3 = p["w3"].astype(jnp.float32)
    h1 = jnp.maximum(xb @ w1 + p["b1"], 0.0)
    h1b = h1.astype(jnp.bfloat16).astype(jnp.float32)
    h2 = jnp.maximum(h1b @ w2 + p["b2"], 0.0)
    h2b = h2.astype(jnp.bfloat16).astype(jnp.float32)
    return (h2b @ w3 + p["b3"])[:, :N_ACTIONS]


if __name__ == "__main__":
    key = jax.random.PRNGKey(0)
    kx, kp = jax.random.split(key)

    batch = 2
    # Observations are raw game-area bytes + memory values -> scale like 0..255
    x = jax.random.uniform(kx, (batch, N_OBSERVATIONS), jnp.float32, 0.0, 255.0)
    params = init_params(kp)

    out = dqn_forward(x, params)
    out = jax.block_until_ready(out)

    ref = dqn_reference(x, params)
    assert out.shape == (batch, N_ACTIONS)
    assert jnp.allclose(out, ref, rtol=2e-2, atol=0.5), "mismatch vs reference"

    print("KERNEL_OK")
</pallas_src>

<mosaic_0001>
module attributes {stable_mosaic.version = 11 : i64} {
  func.func @dqn_kernel(%arg0: i32, %arg1: memref<8x384xbf16, #tpu.memory_space<vmem>>, %arg2: memref<384x1024xbf16, #tpu.memory_space<vmem>>, %arg3: memref<1x1024xf32, #tpu.memory_space<vmem>>, %arg4: memref<1024x512xbf16, #tpu.memory_space<vmem>>, %arg5: memref<1x512xf32, #tpu.memory_space<vmem>>, %arg6: memref<512x128xbf16, #tpu.memory_space<vmem>>, %arg7: memref<1x128xf32, #tpu.memory_space<vmem>>, %arg8: memref<8x128xf32, #tpu.memory_space<vmem>>) attributes {dimension_semantics = [#tpu.dimension_semantics<arbitrary>], iteration_bounds = array<i64: 1>, scalar_prefetch = 0 : i64, scratch_operands = 0 : i64, tpu.core_type = #tpu.core_type<tc>, window_params = [{transform_indices = @transform_0, window_bounds = array<i64: 8, 384>}, {pipeline_mode = #tpu.pipeline_mode<synchronous>, transform_indices = @transform_1, window_bounds = array<i64: 384, 1024>}, {pipeline_mode = #tpu.pipeline_mode<synchronous>, transform_indices = @transform_2, window_bounds = array<i64: 1, 1024>}, {pipeline_mode = #tpu.pipeline_mode<synchronous>, transform_indices = @transform_3, window_bounds = array<i64: 1024, 512>}, {pipeline_mode = #tpu.pipeline_mode<synchronous>, transform_indices = @transform_4, window_bounds = array<i64: 1, 512>}, {pipeline_mode = #tpu.pipeline_mode<synchronous>, transform_indices = @transform_5, window_bounds = array<i64: 512, 128>}, {pipeline_mode = #tpu.pipeline_mode<synchronous>, transform_indices = @transform_6, window_bounds = array<i64: 1, 128>}, {transform_indices = @transform_7, window_bounds = array<i64: 8, 128>}]} {
    %c0 = arith.constant 0 : index
    %c0_0 = arith.constant 0 : index
    %0 = vector.load %arg1[%c0, %c0_0] : memref<8x384xbf16, #tpu.memory_space<vmem>>, vector<8x384xbf16>
    %c0_1 = arith.constant 0 : index
    %c0_2 = arith.constant 0 : index
    %1 = vector.load %arg2[%c0_1, %c0_2] : memref<384x1024xbf16, #tpu.memory_space<vmem>>, vector<384x1024xbf16>
    %cst = arith.constant dense<0.000000e+00> : vector<8x1024xf32>
    %2 = tpu.matmul %0, %1, %cst {dimension_numbers = #tpu.dot_dimension_numbers<[1], [0], [0], [1], [0, 0, 1, 1], [], []>} : vector<8x384xbf16>, vector<384x1024xbf16>, vector<8x1024xf32> -> vector<8x1024xf32>
    %c0_3 = arith.constant 0 : index
    %c0_4 = arith.constant 0 : index
    %3 = vector.load %arg3[%c0_3, %c0_4] : memref<1x1024xf32, #tpu.memory_space<vmem>>, vector<1x1024xf32>
    %4 = vector.broadcast %3 : vector<1x1024xf32> to vector<8x1024xf32>
    %5 = arith.addf %2, %4 : vector<8x1024xf32>
    %cst_5 = arith.constant 0.000000e+00 : f32
    %6 = vector.broadcast %cst_5 : f32 to vector<8x1024xf32>
    %7 = arith.maximumf %5, %6 : vector<8x1024xf32>
    %8 = arith.truncf %7 : vector<8x1024xf32> to vector<8x1024xbf16>
    %c0_6 = arith.constant 0 : index
    %c0_7 = arith.constant 0 : index
    %9 = vector.load %arg4[%c0_6, %c0_7] : memref<1024x512xbf16, #tpu.memory_space<vmem>>, vector<1024x512xbf16>
    %cst_8 = arith.constant dense<0.000000e+00> : vector<8x512xf32>
    %10 = tpu.matmul %8, %9, %cst_8 {dimension_numbers = #tpu.dot_dimension_numbers<[1], [0], [0], [1], [0, 0, 1, 1], [], []>} : vector<8x1024xbf16>, vector<1024x512xbf16>, vector<8x512xf32> -> vector<8x512xf32>
    %c0_9 = arith.constant 0 : index
    %c0_10 = arith.constant 0 : index
    %11 = vector.load %arg5[%c0_9, %c0_10] : memref<1x512xf32, #tpu.memory_space<vmem>>, vector<1x512xf32>
    %12 = vector.broadcast %11 : vector<1x512xf32> to vector<8x512xf32>
    %13 = arith.addf %10, %12 : vector<8x512xf32>
    %cst_11 = arith.constant 0.000000e+00 : f32
    %14 = vector.broadcast %cst_11 : f32 to vector<8x512xf32>
    %15 = arith.maximumf %13, %14 : vector<8x512xf32>
    %16 = arith.truncf %15 : vector<8x512xf32> to vector<8x512xbf16>
    %c0_12 = arith.constant 0 : index
    %c0_13 = arith.constant 0 : index
    %17 = vector.load %arg6[%c0_12, %c0_13] : memref<512x128xbf16, #tpu.memory_space<vmem>>, vector<512x128xbf16>
    %cst_14 = arith.constant dense<0.000000e+00> : vector<8x128xf32>
    %18 = tpu.matmul %16, %17, %cst_14 {dimension_numbers = #tpu.dot_dimension_numbers<[1], [0], [0], [1], [0, 0, 1, 1], [], []>} : vector<8x512xbf16>, vector<512x128xbf16>, vector<8x128xf32> -> vector<8x128xf32>
    %c0_15 = arith.constant 0 : index
    %c0_16 = arith.constant 0 : index
    %19 = vector.load %arg7[%c0_15, %c0_16] : memref<1x128xf32, #tpu.memory_space<vmem>>, vector<1x128xf32>
    %20 = vector.broadcast %19 : vector<1x128xf32> to vector<8x128xf32>
    %21 = arith.addf %18, %20 : vector<8x128xf32>
    %c0_17 = arith.constant 0 : index
    %c0_18 = arith.constant 0 : index
    %22 = vector.load %arg8[%c0_17, %c0_18] : memref<8x128xf32, #tpu.memory_space<vmem>>, vector<8x128xf32>
    tpu.vector_store %arg8[%c0_17, %c0_18], %21 {strides = array<i32>} : memref<8x128xf32, #tpu.memory_space<vmem>>, vector<8x128xf32>,
    return
  }
  func.func @transform_0(%arg0: i32) -> (i32, i32) {
    %c0_i32 = arith.constant 0 : i32
    %c0_i32_0 = arith.constant 0 : i32
    return %arg0, %c0_i32 : i32, i32
  }
  func.func @transform_1(%arg0: i32) -> (i32, i32) {
    %c0_i32 = arith.constant 0 : i32
    %c0_i32_0 = arith.constant 0 : i32
    %c0_i32_1 = arith.constant 0 : i32
    return %c0_i32, %c0_i32_0 : i32, i32
  }
  func.func @transform_2(%arg0: i32) -> (i32, i32) {
    %c0_i32 = arith.constant 0 : i32
    %c0_i32_0 = arith.constant 0 : i32
    %c0_i32_1 = arith.constant 0 : i32
    return %c0_i32, %c0_i32_0 : i32, i32
  }
  func.func @transform_3(%arg0: i32) -> (i32, i32) {
    %c0_i32 = arith.constant 0 : i32
    %c0_i32_0 = arith.constant 0 : i32
    %c0_i32_1 = arith.constant 0 : i32
    return %c0_i32, %c0_i32_0 : i32, i32
  }
  func.func @transform_4(%arg0: i32) -> (i32, i32) {
    %c0_i32 = arith.constant 0 : i32
    %c0_i32_0 = arith.constant 0 : i32
    %c0_i32_1 = arith.constant 0 : i32
    return %c0_i32, %c0_i32_0 : i32, i32
  }
  func.func @transform_5(%arg0: i32) -> (i32, i32) {
    %c0_i32 = arith.constant 0 : i32
    %c0_i32_0 = arith.constant 0 : i32
    %c0_i32_1 = arith.constant 0 : i32
    return %c0_i32, %c0_i32_0 : i32, i32
  }
  func.func @transform_6(%arg0: i32) -> (i32, i32) {
    %c0_i32 = arith.constant 0 : i32
    %c0_i32_0 = arith.constant 0 : i32
    %c0_i32_1 = arith.constant 0 : i32
    return %c0_i32, %c0_i32_0 : i32, i32
  }
  func.func @transform_7(%arg0: i32) -> (i32, i32) {
    %c0_i32 = arith.constant 0 : i32
    %c0_i32_0 = arith.constant 0 : i32
    return %arg0, %c0_i32 : i32, i32
  }
}

</mosaic_0001>

<bundles_post_ra>
// kernel: tpu_custom_call.1
= control target key start
LH: loop header
LB: loop body
LE: loop exit
PB: predicated region body
PF: predicated region fallthrough
CT: control target
= control target key end

     0   :  { %12 = vsyncpa [#allocation3], 0  ;;  %s6743_s0 = inlined_call_operand.hbm [shape: bf16[8,384], index: 0, kind: input, shape index: {}]   ;;  %s6744_s1 = inlined_call_operand.hbm [shape: bf16[384,1024], index: 1, kind: input, shape index: {}]   ;;  %s6745_s2 = inlined_call_operand.hbm [shape: f32[1,1024], index: 2, kind: input, shape index: {}]   ;;  %s6746_s3 = inlined_call_operand.hbm [shape: bf16[1024,512], index: 3, kind: input, shape index: {}]   ;;  %s6747_s4 = inlined_call_operand.hbm [shape: f32[1,512], index: 4, kind: input, shape index: {}]   ;;  %s6748_s5 = inlined_call_operand.hbm [shape: bf16[512,128], index: 5, kind: input, shape index: {}]   ;;  %s6749_s6 = inlined_call_operand.vmem [shape: f32[1,128], index: 6, kind: input, shape index: {}]   ;;  %s6750_s7 = inlined_call_operand.hbm [shape: f32[8,128], index: 7, kind: output, shape index: {}]  }
   0x1   :  { %13 = vsyncpa [#allocation6], 0 }
   0x2   :  { %14 = vsyncpa [#allocation9], 0 }
   0x3   :  { %15 = vsyncpa [#allocation12], 0  ;;  %s32_s26 = sshll.u32 %s6744_s1, 4  ;;  %s33_s26 = int_to_ptr.hbm [resolvable:$true] %s32_s26 }
   0x4   :  { %16 = vsyncpa [#allocation4], 0  ;;  %s6523_s27 = smov [#allocation5]   ;;  %s56_s8 = sshll.u32 %s6746_s3, 4  ;;  %s57_s8 = int_to_ptr.hbm [resolvable:$true] %s56_s8 }
   0x5   :  { %s34_s28 = sshll.u32 %s6523_s27, 4  ;;  %s6524_s9 = smov 512   ;;  %s35_s28 = int_to_ptr.vmem [resolvable:$true] %s34_s28 }
   0x6   :  { %s6525_s10 = smov 32   ;;  %s6526_s11 = smov [#allocation8]  }
   0x7   :  { %40 = dma.hbm_to_vmem [thread:$0]  %s33_s26, 24576, %s35_s28, [#allocation6], %s6524_s9, %s6524_s9, %s6525_s10  }
   0x8   :  { %s58_s12 = sshll.u32 %s6526_s11, 4  ;;  %s6527_s13 = smov 256   ;;  %s59_s12 = int_to_ptr.vmem [resolvable:$true] %s58_s12 }
   0x9   :  { %s6528_s14 = smov 16   ;;  %s22_s16 = sshll.u32 %s6743_s0, 4  ;;  %s23_s16 = int_to_ptr.hbm [resolvable:$true] %s22_s16 }
   0xa   :  { %64 = dma.hbm_to_vmem [thread:$0]  %s57_s8, 32768, %s59_s12, [#allocation9], %s6527_s13, %s6527_s13, %s6528_s14  }
   0xb   :  { %s6529_s17 = smov [#allocation2]   ;;  %s46_s20 = sshll.u32 %s6745_s2, 4  ;;  %s47_s20 = int_to_ptr.hbm [resolvable:$true] %s46_s20 }
   0xc   :  { %s24_s18 = sshll.u32 %s6529_s17, 4  ;;  %s6530_s21 = smov [#allocation7]   ;;  %s25_s18 = int_to_ptr.vmem [resolvable:$true] %s24_s18 }
   0xd   :  { %27 = dma.hbm_to_vmem [thread:$0]  %s23_s16, 192, %s25_s18, [#allocation3]  }
   0xe   :  { %s48_s22 = sshll.u32 %s6530_s21, 4  ;;  %s70_s25 = sshll.u32 %s6747_s4, 4  ;;  %s49_s22 = int_to_ptr.vmem [resolvable:$true] %s48_s22  ;;  %s71_s25 = int_to_ptr.hbm [resolvable:$true] %s70_s25 }
   0xf   :  { %51 = dma.hbm_to_vmem [thread:$0]  %s47_s20, 128, %s49_s22, [#allocation6]  }
  0x10   :  { %s80_s27 = sshll.u32 %s6748_s5, 4  ;;  %s6531_s28 = smov [#allocation10]   ;;  %s81_s27 = int_to_ptr.hbm [resolvable:$true] %s80_s27 }
  0x11   :  { %s72_s29 = sshll.u32 %s6531_s28, 4  ;;  %s6532_s2 = smov [#allocation11]   ;;  %s73_s29 = int_to_ptr.vmem [resolvable:$true] %s72_s29 }
  0x12   :  { %75 = dma.hbm_to_vmem [thread:$0]  %s71_s25, 64, %s73_s29, [#allocation9]  }
  0x13   :  { %s82_s30 = sshll.u32 %s6532_s2, 4  ;;  %s6533_s8 = smov 64   ;;  %s83_s30 = int_to_ptr.vmem [resolvable:$true] %s82_s30 }
  0x14   :  { %s6534_s9 = smov 4  }
  0x15   :  { %88 = dma.hbm_to_vmem [thread:$0]  %s81_s27, 4096, %s83_s30, [#allocation12], %s6533_s8, %s6533_s8, %s6534_s9  }
  0x16   :  { %6513 = dma.done.wait [#allocation3], 192  }
  0x17   :  { %6514 = vsyncadd [#allocation3], 4294967104 }
  0x18   :  { %6515 = dma.done.wait [#allocation6], 24704  }
  0x19   :  { %6516 = vsyncadd [#allocation6], 4294942592 }
  0x1a   :  { %6517 = dma.done.wait [#allocation9], 32832  }
  0x1b   :  { %6518 = vsyncadd [#allocation9], 4294934464 }
  0x1c   :  { %6519 = dma.done.wait [#allocation12], 4096  }
  0x1d   :  { %6520 = vsyncadd [#allocation12], 4294963200  ;;  %v4155_v0 = vld [vmem:[#allocation5 + $0x1c0] sm:$0xf]  ;;  %v5905_v9 = vld [vmem:[#allocation5 + $0x1c4] sm:$0xf] }
  0x1e   :  { %v5909_v1 = vld [vmem:[#allocation5 + $0x1dc] sm:$0xf0]  ;;  %v4157_v10 = vld [vmem:[#allocation5 + $0x1e0] sm:$0xf0]  ;;  %s6535_s10 = smov [#allocation13]   ;;  %s3916_s14 = sshll.u32 %s6750_s7, 4  ;;  %s3917_s14 = int_to_ptr.hbm [resolvable:$true] %s3916_s14 }
  0x1f   :  { %v4411_v2 = vld [vmem:[#allocation5 + $0x3c0] sm:$0xf]  ;;  %v4156_v3 = vor.u32 %v5909_v1, %v4155_v0  ;;  %v4160_v12 = vor.u32 %v5905_v9, %v4157_v10  ;;  %v5897_v20 = vld [vmem:[#allocation5 + $0x184] sm:$0xf]  ;;  %s3914_s11 = sshll.u32 %s6535_s10, 4  ;;  %s3915_s11 = int_to_ptr.vmem [resolvable:$true] %s3914_s11 }
  0x20   :  { %v5973_v4 = vld [vmem:[#allocation5 + $0x3dc] sm:$0xf0]  ;;  %v4125_v22 = vld [vmem:[#allocation5 + $0x1a0] sm:$0xf0] }
  0x21   :  { %v4667_v5 = vld [vmem:[#allocation5 + $0x5c0] sm:$0xf]  ;;  %v4412_v7 = vor.u32 %v5973_v4, %v4411_v2  ;;  %1298 = vmatpush.bf16.msra.mxu0 %v4156_v3  ;;  %1337 = vmatpush.bf16.msra.mxu3 %v4160_v12  ;;  %v4128_v25 = vor.u32 %v5897_v20, %v4125_v22  ;;  %v5889_v31 = vld [vmem:[#allocation5 + $0x144] sm:$0xf] }
  0x22   :  { %v6037_v6 = vld [vmem:[#allocation5 + $0x5dc] sm:$0xf0]  ;;  %v4093_v32 = vld [vmem:[#allocation5 + $0x160] sm:$0xf0] }
  0x23   :  { %v4668_v8 = vor.u32 %v6037_v6, %v4667_v5  ;;  %v4123_v11 = vld [vmem:[#allocation5 + $0x180] sm:$0xf]  ;;  %1311 = vmatpush.bf16.msra.mxu1 %v4412_v7  ;;  %v4096_v38 = vor.u32 %v5889_v31, %v4093_v32  ;;  %v5881_v42 = vld [vmem:[#allocation5 + $0x104] sm:$0xf] }
  0x24   :  { %v5901_v13 = vld [vmem:[#allocation5 + $0x19c] sm:$0xf0]  ;;  %v4061_v43 = vld [vmem:[#allocation5 + $0x120] sm:$0xf0] }
  0x25   :  { %v4379_v14 = vld [vmem:[#allocation5 + $0x380] sm:$0xf]  ;;  %1324 = vmatpush.bf16.msra.mxu2 %v4668_v8  ;;  %v4124_v16 = vor.u32 %v5901_v13, %v4123_v11  ;;  %1338 = vmatpush.bf16.msra.mxu3 %v4128_v25  ;;  %v4064_v50 = vor.u32 %v5881_v42, %v4061_v43  ;;  %v5873_v54 = vld [vmem:[#allocation5 + $0xc4] sm:$0xf] }
  0x26   :  { %v5965_v15 = vld [vmem:[#allocation5 + $0x39c] sm:$0xf0]  ;;  %v4029_v55 = vld [vmem:[#allocation5 + $0xe0] sm:$0xf0] }
  0x27   :  { %v4380_v17 = vor.u32 %v5965_v15, %v4379_v14  ;;  %v4635_v18 = vld [vmem:[#allocation5 + $0x580] sm:$0xf]  ;;  %1299 = vmatpush.bf16.msra.mxu0 %v4124_v16  ;;  %v4032_v62 = vor.u32 %v5873_v54, %v4029_v55  ;;  %v5865_v2 = vld [vmem:[#allocation5 + $0x84] sm:$0xf] }
  0x28   :  { %v6029_v19 = vld [vmem:[#allocation5 + $0x59c] sm:$0xf0]  ;;  %v3997_v3 = vld [vmem:[#allocation5 + $0xa0] sm:$0xf0] }
  0x29   :  { %v4636_v21 = vor.u32 %v6029_v19, %v4635_v18  ;;  %v4091_v23 = vld [vmem:[#allocation5 + $0x140] sm:$0xf]  ;;  %1312 = vmatpush.bf16.msra.mxu1 %v4380_v17  ;;  %1339 = vmatpush.bf16.msra.mxu3 %v4096_v38  ;;  %v4000_v10 = vor.u32 %v5865_v2, %v3997_v3  ;;  %v5857_v14 = vld [vmem:[#allocation5 + $0x44] sm:$0xf]  ;;  %v5974_v38 = vld [vmem:[#allocation5 + $0x3e4] sm:$0xf0] }
  0x2a   :  { %v5893_v24 = vld [vmem:[#allocation5 + $0x15c] sm:$0xf0]  ;;  %v3965_v15 = vld [vmem:[#allocation5 + $0x60] sm:$0xf0]  ;;  %v116_v2 = vld [vmem:[#allocation2 + $0x8] sm:$0xf] }
  0x2b   :  { %v4347_v26 = vld [vmem:[#allocation5 + $0x340] sm:$0xf]  ;;  %v4092_v29 = vor.u32 %v5893_v24, %v4091_v23  ;;  %1325 = vmatpush.bf16.msra.mxu2 %v4636_v21  ;;  %v3968_v24 = vor.u32 %v5857_v14, %v3965_v15  ;;  %v4669_v32 = vld [vmem:[#allocation5 + $0x5e0] sm:$0xf0]  ;;  %v115_v3 = vld [vmem:[#allocation2] sm:$0xff] }
  0x2c   :  { %v5957_v27 = vld [vmem:[#allocation5 + $0x35c] sm:$0xf0]  ;;  %v5961_v43 = vld [vmem:[#allocation5 + $0x384] sm:$0xf]  ;;  %v5886_v14 = vld [vmem:[#allocation5 + $0x124] sm:$0xf0] }
  0x2d   :  { %v4603_v28 = vld [vmem:[#allocation5 + $0x540] sm:$0xf]  ;;  %v4348_v33 = vor.u32 %v5957_v27, %v4347_v26  ;;  %1300 = vmatpush.bf16.msra.mxu0 %v4092_v29  ;;  %1340 = vmatpush.bf16.msra.mxu3 %v4064_v50  ;;  %v5849_v26 = vld [vmem:[#allocation5 + $0x4] sm:$0xf]  ;;  %v4387_v50 = vld [vmem:[#allocation5 + $0x388] sm:$0xf] }
  0x2e   :  { %v6021_v30 = vld [vmem:[#allocation5 + $0x55c] sm:$0xf0]  ;;  %v3933_v27 = vld [vmem:[#allocation5 + $0x20] sm:$0xf0]  ;;  %v4323_v15 = vld [vmem:[#allocation5 + $0x308] sm:$0xf] }
  0x2f   :  { %v4604_v34 = vor.u32 %v6021_v30, %v4603_v28  ;;  %v4059_v35 = vld [vmem:[#allocation5 + $0x100] sm:$0xf]  ;;  %1313 = vmatpush.bf16.msra.mxu1 %v4348_v33  ;;  %v5969_v28 = vld [vmem:[#allocation5 + $0x3c4] sm:$0xf]  ;;  %v4163_v33 = vld [vmem:[#allocation5 + $0x1c8] sm:$0xf] }
  0x30   :  { %v5885_v36 = vld [vmem:[#allocation5 + $0x11c] sm:$0xf0]  ;;  %v4413_v29 = vld [vmem:[#allocation5 + $0x3e0] sm:$0xf0] }
  0x31   :  { %v4315_v37 = vld [vmem:[#allocation5 + $0x300] sm:$0xf]  ;;  %v4060_v44 = vor.u32 %v5885_v36, %v4059_v35  ;;  %1326 = vmatpush.bf16.msra.mxu2 %v4604_v34  ;;  %1341 = vmatpush.bf16.msra.mxu3 %v4032_v62  ;;  %v6033_v30 = vld [vmem:[#allocation5 + $0x5c4] sm:$0xf]  ;;  %v5910_v34 = vld [vmem:[#allocation5 + $0x1e4] sm:$0xf0] }
  0x32   :  { %v5949_v39 = vld [vmem:[#allocation5 + $0x31c] sm:$0xf0]  ;;  %v4164_v42 = vor.u32 %v5910_v34, %v4163_v33  ;;  %v4355_v62 = vld [vmem:[#allocation5 + $0x348] sm:$0xf] }
  0x33   :  { %v4571_v40 = vld [vmem:[#allocation5 + $0x500] sm:$0xf]  ;;  %v4316_v45 = vor.u32 %v5949_v39, %v4315_v37  ;;  %1301 = vmatpush.bf16.msra.mxu0 %v4060_v44  ;;  %v4419_v37 = vld [vmem:[#allocation5 + $0x3c8] sm:$0xf]  ;;  %v3936_v39 = vor.u32 %v5849_v26, %v3933_v27  ;;  %v4381_v44 = vld [vmem:[#allocation5 + $0x3a0] sm:$0xf0] }
  0x34   :  { %v6013_v41 = vld [vmem:[#allocation5 + $0x51c] sm:$0xf0]  ;;  %v4541_v27 = vld [vmem:[#allocation5 + $0x4e0] sm:$0xf0] }
  0x35   :  { %v4572_v46 = vor.u32 %v6013_v41, %v4571_v40  ;;  %v4027_v47 = vld [vmem:[#allocation5 + $0xc0] sm:$0xf]  ;;  %1314 = vmatpush.bf16.msra.mxu1 %v4316_v45  ;;  %1342 = vmatpush.bf16.msra.mxu3 %v4000_v10  ;;  %v4416_v40 = vor.u32 %v5969_v28, %v4413_v29  ;;  %v4672_v41 = vor.u32 %v6033_v30, %v4669_v32  ;;  %v6025_v45 = vld [vmem:[#allocation5 + $0x584] sm:$0xf]  ;;  %v330_v10 = vunpack.c.h.b16 %v115_v3  ;;  %v4035_v28 = vld [vmem:[#allocation5 + $0xc8] sm:$0xf] }
  0x36   :  { %v5877_v48 = vld [vmem:[#allocation5 + $0xdc] sm:$0xf0]  ;;  %v5878_v29 = vld [vmem:[#allocation5 + $0xe4] sm:$0xf0] }
  0x37   :  { %v4283_v49 = vld [vmem:[#allocation5 + $0x2c0] sm:$0xf]  ;;  %v4028_v56 = vor.u32 %v5877_v48, %v4027_v47  ;;  %1327 = vmatpush.bf16.msra.mxu2 %v4572_v46  ;;  %v4420_v46 = vor.u32 %v5974_v38, %v4419_v37  ;;  %v4637_v47 = vld [vmem:[#allocation5 + $0x5a0] sm:$0xf0]  ;;  %v4131_v48 = vld [vmem:[#allocation5 + $0x188] sm:$0xf]  ;;  %v4036_v34 = vor.u32 %v5878_v29, %v4035_v28 }
  0x38   :  { %v5941_v51 = vld [vmem:[#allocation5 + $0x2dc] sm:$0xf0]  ;;  %v4640_v54 = vor.u32 %v6025_v45, %v4637_v47  ;;  %v4291_v30 = vld [vmem:[#allocation5 + $0x2c8] sm:$0xf]  ;;  %v5993_v37 = vld [vmem:[#allocation5 + $0x484] sm:$0xf] }
  0x39   :  { %v4539_v52 = vld [vmem:[#allocation5 + $0x4c0] sm:$0xf]  ;;  %v4284_v57 = vor.u32 %v5941_v51, %v4283_v49  ;;  %1302 = vmatpush.bf16.msra.mxu0 %v4028_v56  ;;  %1343 = vmatpush.bf16.msra.mxu3 %v3968_v24  ;;  %v5902_v49 = vld [vmem:[#allocation5 + $0x1a4] sm:$0xf0]  ;;  %v4349_v56 = vld [vmem:[#allocation5 + $0x360] sm:$0xf0] }
  0x3a   :  { %v6005_v53 = vld [vmem:[#allocation5 + $0x4dc] sm:$0xf0]  ;;  %v5966_v51 = vld [vmem:[#allocation5 + $0x3a4] sm:$0xf0]  ;;  %v4132_v55 = vor.u32 %v5902_v49, %v4131_v48  ;;  %v4285_v24 = vld [vmem:[#allocation5 + $0x2e0] sm:$0xf0] }
  0x3b   :  { %v4540_v58 = vor.u32 %v6005_v53, %v4539_v52  ;;  %v3995_v59 = vld [vmem:[#allocation5 + $0x80] sm:$0xf]  ;;  %1315 = vmatpush.bf16.msra.mxu1 %v4284_v57  ;;  %v4384_v52 = vor.u32 %v5961_v43, %v4381_v44  ;;  %v5953_v53 = vld [vmem:[#allocation5 + $0x344] sm:$0xf]  ;;  %v5934_v43 = vld [vmem:[#allocation5 + $0x2a4] sm:$0xf0] }
  0x3c   :  { %v5869_v60 = vld [vmem:[#allocation5 + $0x9c] sm:$0xf0]  ;;  %v6017_v57 = vld [vmem:[#allocation5 + $0x544] sm:$0xf]  ;;  %v4389_v28 = vld [vmem:[#allocation5 + $0x3a8] sm:$0xf0] }
  0x3d   :  { %v4251_v61 = vld [vmem:[#allocation5 + $0x280] sm:$0xf]  ;;  %v3996_v4 = vor.u32 %v5869_v60, %v3995_v59  ;;  %1328 = vmatpush.bf16.msra.mxu2 %v4540_v58  ;;  %1344 = vmatpush.bf16.msra.mxu3 %v3936_v39  ;;  %v4605_v58 = vld [vmem:[#allocation5 + $0x560] sm:$0xf0]  ;;  %v4388_v59 = vor.u32 %v5966_v51, %v4387_v50  ;;  %v4099_v60 = vld [vmem:[#allocation5 + $0x148] sm:$0xf] }
  0x3e   :  { %v5933_v63 = vld [vmem:[#allocation5 + $0x29c] sm:$0xf0]  ;;  %v4509_v39 = vld [vmem:[#allocation5 + $0x4a0] sm:$0xf0]  ;;  %v6026_v29 = vld [vmem:[#allocation5 + $0x58c] sm:$0xf] }
  0x3f   :  { %v4507_v0 = vld [vmem:[#allocation5 + $0x480] sm:$0xf]  ;;  %v4252_v5 = vor.u32 %v5933_v63, %v4251_v61  ;;  %1303 = vmatpush.bf16.msra.mxu0 %v3996_v4  ;;  %v5894_v61 = vld [vmem:[#allocation5 + $0x164] sm:$0xf0]  ;;  %v4512_v45 = vor.u32 %v5993_v37, %v4509_v39  ;;  %v5921_v47 = vld [vmem:[#allocation5 + $0x244] sm:$0xf] }
  0x40   :  { %v5997_v1 = vld [vmem:[#allocation5 + $0x49c] sm:$0xf0]  ;;  %v5958_v63 = vld [vmem:[#allocation5 + $0x364] sm:$0xf0]  ;;  %v4100_v4 = vor.u32 %v5894_v61, %v4099_v60  ;;  %v4221_v48 = vld [vmem:[#allocation5 + $0x260] sm:$0xf0] }
  0x41   :  { %v4508_v6 = vor.u32 %v5997_v1, %v4507_v0  ;;  %v3963_v7 = vld [vmem:[#allocation5 + $0x40] sm:$0xf]  ;;  %1316 = vmatpush.bf16.msra.mxu1 %v4252_v5  ;;  %1389 = vmatpush.bf16.msrb.mxu3 %v4420_v46  ;;  %v4352_v0 = vor.u32 %v5953_v53, %v4349_v56  ;;  %v4608_v1 = vor.u32 %v6017_v57, %v4605_v58  ;;  %v5945_v5 = vld [vmem:[#allocation5 + $0x304] sm:$0xf]  ;;  %v5862_v53 = vld [vmem:[#allocation5 + $0x64] sm:$0xf0] }
  0x42   :  { %v5861_v8 = vld [vmem:[#allocation5 + $0x5c] sm:$0xf0]  ;;  %v5985_v49 = vld [vmem:[#allocation5 + $0x444] sm:$0xf]  ;;  %v4224_v56 = vor.u32 %v5921_v47, %v4221_v48  ;;  %v5954_v39 = vld [vmem:[#allocation5 + $0x34c] sm:$0xf] }
  0x43   :  { %v4219_v9 = vld [vmem:[#allocation5 + $0x240] sm:$0xf]  ;;  %v3964_v16 = vor.u32 %v5861_v8, %v3963_v7  ;;  %1329 = vmatpush.bf16.msra.mxu2 %v4508_v6  ;;  %v4317_v6 = vld [vmem:[#allocation5 + $0x320] sm:$0xf0]  ;;  %v331_v8 = vunpack.c.l.b16 %v116_v2  ;;  %v4195_v2 = vld [vmem:[#allocation5 + $0x208] sm:$0xf] }
  0x44   :  { %v5925_v11 = vld [vmem:[#allocation5 + $0x25c] sm:$0xf0]  ;;  %v6009_v7 = vld [vmem:[#allocation5 + $0x504] sm:$0xf]  ;;  %v6014_v47 = vld [vmem:[#allocation5 + $0x524] sm:$0xf0] }
  0x45   :  { %v4475_v12 = vld [vmem:[#allocation5 + $0x440] sm:$0xf]  ;;  %v4220_v19 = vor.u32 %v5925_v11, %v4219_v9  ;;  %1304 = vmatpush.bf16.msra.mxu0 %v3964_v16  ;;  %v329_v9 = vunpack.c.l.b16 %v115_v3  ;;  %1390 = vmatpush.bf16.msrb.mxu3 %v4388_v59  ;;  %v4356_v11 = vor.u32 %v5958_v63, %v4355_v62  ;;  %v5950_v16 = vld [vmem:[#allocation5 + $0x324] sm:$0xf0]  ;;  %v4477_v51 = vld [vmem:[#allocation5 + $0x460] sm:$0xf0] }
  0x46   :  { %v5989_v13 = vld [vmem:[#allocation5 + $0x45c] sm:$0xf0]  ;;  %v4324_v26 = vor.u32 %v5950_v16, %v4323_v15  ;;  %v5913_v57 = vld [vmem:[#allocation5 + $0x204] sm:$0xf]  ;;  %v4480_v59 = vor.u32 %v5985_v49, %v4477_v51  ;;  %v3939_v63 = vld [vmem:[#allocation5 + $0x8] sm:$0xf] }
  0x47   :  { %v3931_v17 = vld [vmem:[#allocation5] sm:$0xf]  ;;  %v4476_v20 = vor.u32 %v5989_v13, %v4475_v12  ;;  %1317 = vmatpush.bf16.msra.mxu1 %v4220_v19  ;;  %v4573_v12 = vld [vmem:[#allocation5 + $0x520] sm:$0xf0]  ;;  %v4067_v13 = vld [vmem:[#allocation5 + $0x108] sm:$0xf]  ;;  %v4320_v19 = vor.u32 %v5945_v5, %v4317_v6 }
  0x48   :  { %v5853_v18 = vld [vmem:[#allocation5 + $0x1c] sm:$0xf0]  ;;  %v4189_v58 = vld [vmem:[#allocation5 + $0x220] sm:$0xf0]  ;;  %v5918_v3 = vld [vmem:[#allocation5 + $0x224] sm:$0xf0] }
  0x49   :  { %v4187_v21 = vld [vmem:[#allocation5 + $0x200] sm:$0xf]  ;;  %v3932_v31 = vor.u32 %v5853_v18, %v3931_v17  ;;  %1330 = vmatpush.bf16.msra.mxu2 %v4476_v20  ;;  %v6594_v17 = vpack.c.b16 %v331_v8, %v331_v8  ;;  %v6596_v18 = vpack.c.b16 %v329_v9, %v329_v9  ;;  %v6598_v20 = vpack.c.b16 %v330_v10, %v330_v10  ;;  %v5977_v61 = vld [vmem:[#allocation5 + $0x404] sm:$0xf]  ;;  %v6038_v5 = vld [vmem:[#allocation5 + $0x5e4] sm:$0xf0] }
  0x4a   :  { %v5917_v22 = vld [vmem:[#allocation5 + $0x21c] sm:$0xf0]  ;;  %1391 = vmatpush.bf16.msrb.mxu3 %v4356_v11  ;;  %v4445_v62 = vld [vmem:[#allocation5 + $0x420] sm:$0xf0]  ;;  %v5906_v6 = vld [vmem:[#allocation5 + $0x1cc] sm:$0xf]  ;;  %v4196_v15 = vor.u32 %v5918_v3, %v4195_v2 }
  0x4b   :  { %v4443_v23 = vld [vmem:[#allocation5 + $0x400] sm:$0xf]  ;;  %v4188_v35 = vor.u32 %v5917_v22, %v4187_v21  ;;  %1305 = vmatpush.bf16.msra.mxu0 %v3932_v31  ;;  %v4576_v21 = vor.u32 %v6009_v7, %v4573_v12  ;;  %v4068_v22 = vor.u32 %v5886_v14, %v4067_v13  ;;  %v5942_v31 = vld [vmem:[#allocation5 + $0x2e4] sm:$0xf0]  ;;  %1345 = vmatmul.bf16.vlgmr.msra.gmra.mxu3 %v6596_v18  ;;  %v4165_v8 = vld [vmem:[#allocation5 + $0x1e8] sm:$0xf0] }
  0x4c   :  { %v5981_v25 = vld [vmem:[#allocation5 + $0x41c] sm:$0xf0]  ;;  %v4292_v38 = vor.u32 %v5942_v31, %v4291_v30  ;;  %v4192_v7 = vor.u32 %v5913_v57, %v4189_v58  ;;  %v5970_v9 = vld [vmem:[#allocation5 + $0x3cc] sm:$0xf]  ;;  %v4448_v11 = vor.u32 %v5977_v61, %v4445_v62  ;;  %v4547_v58 = vld [vmem:[#allocation5 + $0x4c8] sm:$0xf] }
  0x4d   :  { %v4444_v36 = vor.u32 %v5981_v25, %v4443_v23  ;;  %1318 = vmatpush.bf16.msra.mxu1 %v4188_v35  ;;  %v5937_v23 = vld [vmem:[#allocation5 + $0x2c4] sm:$0xf]  ;;  %v4421_v10 = vld [vmem:[#allocation5 + $0x3e8] sm:$0xf0] }
  0x4e   :  { %v6001_v25 = vld [vmem:[#allocation5 + $0x4c4] sm:$0xf]  ;;  %1306 = vmatmul.bf16.vlgmr.msra.gmra.mxu0 %v6596_v18  ;;  %v4288_v32 = vor.u32 %v5937_v23, %v4285_v24  ;;  %1392 = vmatpush.bf16.msrb.mxu3 %v4324_v26  ;;  %v6034_v13 = vld [vmem:[#allocation5 + $0x5cc] sm:$0xf]  ;;  %v6030_v23 = vld [vmem:[#allocation5 + $0x5a4] sm:$0xf0] }
  0x4f   :  { %1331 = vmatpush.bf16.msra.mxu2 %v4444_v36  ;;  %1350 = vmatpush.bf16.msrb.mxu0 %v4416_v40  ;;  %v4544_v33 = vor.u32 %v6001_v25, %v4541_v27  ;;  %v5929_v35 = vld [vmem:[#allocation5 + $0x284] sm:$0xf]  ;;  %v4003_v40 = vld [vmem:[#allocation5 + $0x88] sm:$0xf]  ;;  %v4677_v14 = vld [vmem:[#allocation5 + $0x5e8] sm:$0xf0] }
  0x50   :  { %1319 = vmatmul.bf16.vlgmr.msra.gmra.mxu1 %v6598_v20  ;;  %v4253_v36 = vld [vmem:[#allocation5 + $0x2a0] sm:$0xf0]  ;;  %v5898_v24 = vld [vmem:[#allocation5 + $0x18c] sm:$0xf]  ;;  %v4680_v25 = vor.u32 %v6034_v13, %v4677_v14 }
  0x51   :  { %1363 = vmatpush.bf16.msrb.mxu1 %v4672_v41  ;;  %v5870_v41 = vld [vmem:[#allocation5 + $0xa4] sm:$0xf0]  ;;  %v4256_v44 = vor.u32 %v5929_v35, %v4253_v36  ;;  %v4133_v26 = vld [vmem:[#allocation5 + $0x1a8] sm:$0xf0] }
  0x52   :  { %1332 = vmatmul.bf16.vlgmr.msra.gmra.mxu2 %v6594_v17  ;;  %v4004_v46 = vor.u32 %v5870_v41, %v4003_v40  ;;  %1393 = vmatpush.bf16.msrb.mxu3 %v4292_v38  ;;  %v5962_v27 = vld [vmem:[#allocation5 + $0x38c] sm:$0xf]  ;;  %v6022_v35 = vld [vmem:[#allocation5 + $0x564] sm:$0xf0] }
  0x53   :  { %1376 = vmatpush.bf16.msrb.mxu2 %v4164_v42  ;;  %1351 = vmatpush.bf16.msrb.mxu0 %v4384_v52  ;;  %v4259_v42 = vld [vmem:[#allocation5 + $0x288] sm:$0xf]  ;;  %v4645_v30 = vld [vmem:[#allocation5 + $0x5a8] sm:$0xf0] }
  0x54   :  { %v4260_v50 = vor.u32 %v5934_v43, %v4259_v42  ;;  %v3971_v52 = vld [vmem:[#allocation5 + $0x48] sm:$0xf]  ;;  %v5890_v36 = vld [vmem:[#allocation5 + $0x14c] sm:$0xf]  ;;  %v4648_v37 = vor.u32 %v6026_v29, %v4645_v30 }
  0x55   :  { %1364 = vmatpush.bf16.msrb.mxu1 %v4640_v54  ;;  %v4227_v54 = vld [vmem:[#allocation5 + $0x248] sm:$0xf]  ;;  %v3972_v60 = vor.u32 %v5862_v53, %v3971_v52  ;;  %v4101_v38 = vld [vmem:[#allocation5 + $0x168] sm:$0xf0] }
  0x56   :  { %1394 = vmatpush.bf16.msrb.mxu3 %v4260_v50  ;;  %v4357_v40 = vld [vmem:[#allocation5 + $0x368] sm:$0xf0] }
  0x57   :  { %1377 = vmatpush.bf16.msrb.mxu2 %v4132_v55  ;;  %1352 = vmatpush.bf16.msrb.mxu0 %v4352_v0  ;;  %v5926_v55 = vld [vmem:[#allocation5 + $0x264] sm:$0xf0]  ;;  %v6018_v41 = vld [vmem:[#allocation5 + $0x54c] sm:$0xf] }
  0x58   :  { %v4228_v0 = vor.u32 %v5926_v55, %v4227_v54  ;;  %v4613_v42 = vld [vmem:[#allocation5 + $0x568] sm:$0xf0] }
  0x59   :  { %1365 = vmatpush.bf16.msrb.mxu1 %v4608_v1  ;;  %v5854_v1 = vld [vmem:[#allocation5 + $0x24] sm:$0xf0]  ;;  %v5882_v48 = vld [vmem:[#allocation5 + $0x10c] sm:$0xf]  ;;  %v4616_v49 = vor.u32 %v6018_v41, %v4613_v42  ;;  %v4171_v42 = vld [vmem:[#allocation5 + $0x1d0] sm:$0xf] }
  0x5a   :  { %v3940_v12 = vor.u32 %v5854_v1, %v3939_v63  ;;  %1395 = vmatpush.bf16.msrb.mxu3 %v4228_v0  ;;  %v4069_v50 = vld [vmem:[#allocation5 + $0x128] sm:$0xf0] }
  0x5b   :  { %1378 = vmatpush.bf16.msrb.mxu2 %v4100_v4  ;;  %1353 = vmatpush.bf16.msrb.mxu0 %v4320_v19  ;;  %v4675_v4 = vld [vmem:[#allocation5 + $0x5c8] sm:$0xf]  ;;  %v4168_v19 = vor.u32 %v5906_v6, %v4165_v8  ;;  %v5946_v51 = vld [vmem:[#allocation5 + $0x30c] sm:$0xf] }
  0x5c   :  { %v4676_v16 = vor.u32 %v6038_v5, %v4675_v4  ;;  %v4325_v52 = vld [vmem:[#allocation5 + $0x328] sm:$0xf0]  ;;  %v4515_v6 = vld [vmem:[#allocation5 + $0x488] sm:$0xf] }
  0x5d   :  { %1366 = vmatpush.bf16.msrb.mxu1 %v4576_v21  ;;  %v4424_v21 = vor.u32 %v5970_v9, %v4421_v10  ;;  %v6010_v53 = vld [vmem:[#allocation5 + $0x50c] sm:$0xf]  ;;  %v4328_v57 = vor.u32 %v5946_v51, %v4325_v52  ;;  %v5907_v51 = vld [vmem:[#allocation5 + $0x1d4] sm:$0xf] }
  0x5e   :  { %1396 = vmatpush.bf16.msrb.mxu3 %v4196_v15  ;;  %v4581_v54 = vld [vmem:[#allocation5 + $0x528] sm:$0xf0]  ;;  %v4173_v52 = vld [vmem:[#allocation5 + $0x1f0] sm:$0xf0] }
  0x5f   :  { %1379 = vmatpush.bf16.msrb.mxu2 %v4068_v22  ;;  %1354 = vmatpush.bf16.msrb.mxu0 %v4288_v32  ;;  %v4643_v22 = vld [vmem:[#allocation5 + $0x588] sm:$0xf]  ;;  %v4136_v32 = vor.u32 %v5898_v24, %v4133_v26  ;;  %v4584_v61 = vor.u32 %v6010_v53, %v4581_v54  ;;  %v4037_v62 = vld [vmem:[#allocation5 + $0xe8] sm:$0xf0] }
  0x60   :  { %v4644_v31 = vor.u32 %v6030_v23, %v4643_v22  ;;  %v5938_v63 = vld [vmem:[#allocation5 + $0x2cc] sm:$0xf]  ;;  %v5990_v22 = vld [vmem:[#allocation5 + $0x464] sm:$0xf0] }
  0x61   :  { %1367 = vmatpush.bf16.msrb.mxu1 %v4544_v33  ;;  %v4392_v33 = vor.u32 %v5962_v27, %v4389_v28  ;;  %1397 = vmatmul.bf16.vlgmr.msrb.gmra.mxu3 %v6598_v20  ;;  %v4293_v0 = vld [vmem:[#allocation5 + $0x2e8] sm:$0xf0] }
  0x62   :  { %1441 = vmatpush.bf16.msra.mxu3 %v4680_v25  ;;  %v6002_v1 = vld [vmem:[#allocation5 + $0x4cc] sm:$0xf]  ;;  %v4296_v5 = vor.u32 %v5938_v63, %v4293_v0  ;;  %v6031_v63 = vld [vmem:[#allocation5 + $0x5ac] sm:$0xf0]  ;;  %v5899_v0 = vld [vmem:[#allocation5 + $0x194] sm:$0xf] }
  0x63   :  { %1380 = vmatpush.bf16.msrb.mxu2 %v4036_v34  ;;  %1355 = vmatpush.bf16.msrb.mxu0 %v4256_v44  ;;  %v4611_v34 = vld [vmem:[#allocation5 + $0x548] sm:$0xf]  ;;  %v4104_v44 = vor.u32 %v5890_v36, %v4101_v38  ;;  %v4549_v2 = vld [vmem:[#allocation5 + $0x4e8] sm:$0xf0] }
  0x64   :  { %v4612_v43 = vor.u32 %v6022_v35, %v4611_v34  ;;  %v5866_v8 = vld [vmem:[#allocation5 + $0x8c] sm:$0xf]  ;;  %v4552_v9 = vor.u32 %v6002_v1, %v4549_v2  ;;  %v4141_v1 = vld [vmem:[#allocation5 + $0x1b0] sm:$0xf0] }
  0x65   :  { %1368 = vmatpush.bf16.msrb.mxu1 %v4512_v45  ;;  %v4360_v45 = vor.u32 %v5954_v39, %v4357_v40  ;;  %v4005_v10 = vld [vmem:[#allocation5 + $0xa8] sm:$0xf0] }
  0x66   :  { %1442 = vmatpush.bf16.msra.mxu3 %v4648_v37  ;;  %v5994_v13 = vld [vmem:[#allocation5 + $0x48c] sm:$0xf] }
  0x67   :  { %1381 = vmatpush.bf16.msrb.mxu2 %v4004_v46  ;;  %1356 = vmatpush.bf16.msrb.mxu0 %v4224_v56  ;;  %v4579_v46 = vld [vmem:[#allocation5 + $0x508] sm:$0xf]  ;;  %v4072_v56 = vor.u32 %v5882_v48, %v4069_v50  ;;  %v4517_v14 = vld [vmem:[#allocation5 + $0x4a8] sm:$0xf0]  ;;  %v6039_v48 = vld [vmem:[#allocation5 + $0x5ec] sm:$0xf0] }
  0x68   :  { %v4580_v55 = vor.u32 %v6014_v47, %v4579_v46  ;;  %v5858_v23 = vld [vmem:[#allocation5 + $0x4c] sm:$0xf]  ;;  %v4520_v24 = vor.u32 %v5994_v13, %v4517_v14  ;;  %v5975_v46 = vld [vmem:[#allocation5 + $0x3ec] sm:$0xf0]  ;;  %v4109_v13 = vld [vmem:[#allocation5 + $0x170] sm:$0xf0] }
  0x69   :  { %1369 = vmatpush.bf16.msrb.mxu1 %v4480_v59  ;;  %v6006_v59 = vld [vmem:[#allocation5 + $0x4e4] sm:$0xf0]  ;;  %v3973_v25 = vld [vmem:[#allocation5 + $0x68] sm:$0xf0]  ;;  %v4683_v47 = vld [vmem:[#allocation5 + $0x5d0] sm:$0xf] }
  0x6a   :  { %1443 = vmatpush.bf16.msra.mxu3 %v4616_v49  ;;  %v4548_v3 = vor.u32 %v6006_v59, %v4547_v58  ;;  %v5922_v26 = vld [vmem:[#allocation5 + $0x24c] sm:$0xf]  ;;  %v5903_v58 = vld [vmem:[#allocation5 + $0x1ac] sm:$0xf0] }
  0x6b   :  { %1382 = vmatpush.bf16.msrb.mxu2 %v3972_v60  ;;  %1357 = vmatpush.bf16.msrb.mxu0 %v4192_v7  ;;  %v5874_v60 = vld [vmem:[#allocation5 + $0xcc] sm:$0xf]  ;;  %v5998_v7 = vld [vmem:[#allocation5 + $0x4a4] sm:$0xf0]  ;;  %v4395_v59 = vld [vmem:[#allocation5 + $0x390] sm:$0xf] }
  0x6c   :  { %v4040_v4 = vor.u32 %v5874_v60, %v4037_v62  ;;  %v4516_v15 = vor.u32 %v5998_v7, %v4515_v6  ;;  %v4229_v27 = vld [vmem:[#allocation5 + $0x268] sm:$0xf0]  ;;  %v4176_v60 = vor.u32 %v5907_v51, %v4173_v52  ;;  %v4651_v62 = vld [vmem:[#allocation5 + $0x590] sm:$0xf]  ;;  %v5867_v51 = vld [vmem:[#allocation5 + $0x94] sm:$0xf] }
  0x6d   :  { %1370 = vmatpush.bf16.msrb.mxu1 %v4448_v11  ;;  %v5930_v11 = vld [vmem:[#allocation5 + $0x28c] sm:$0xf]  ;;  %v4232_v34 = vor.u32 %v5922_v26, %v4229_v27  ;;  %v5895_v6 = vld [vmem:[#allocation5 + $0x16c] sm:$0xf0]  ;;  %v5883_v27 = vld [vmem:[#allocation5 + $0x114] sm:$0xf] }
  0x6e   :  { %1358 = vmatmul.bf16.vlgmr.msrb.gmra.mxu0 %v6598_v20  ;;  %1444 = vmatpush.bf16.msra.mxu3 %v4584_v61  ;;  %v5986_v28 = vld [vmem:[#allocation5 + $0x44c] sm:$0xf]  ;;  %v5967_v61 = vld [vmem:[#allocation5 + $0x3ac] sm:$0xf0]  ;;  %v4013_v52 = vld [vmem:[#allocation5 + $0xb0] sm:$0xf0] }
  0x6f   :  { %1383 = vmatpush.bf16.msrb.mxu2 %v3940_v12  ;;  %1402 = vmatpush.bf16.msra.mxu0 %v4676_v16  ;;  %v4261_v12 = vld [vmem:[#allocation5 + $0x2a8] sm:$0xf0]  ;;  %v4008_v16 = vor.u32 %v5866_v8, %v4005_v10  ;;  %v4363_v7 = vld [vmem:[#allocation5 + $0x350] sm:$0xf]  ;;  %v4144_v8 = vor.u32 %v5899_v0, %v4141_v1  ;;  %v3981_v0 = vld [vmem:[#allocation5 + $0x70] sm:$0xf0] }
  0x70   :  { %1371 = vmatmul.bf16.vlgmr.msrb.gmra.mxu1 %v6594_v17  ;;  %v4485_v29 = vld [vmem:[#allocation5 + $0x468] sm:$0xf0]  ;;  %v4619_v10 = vld [vmem:[#allocation5 + $0x550] sm:$0xf] }
  0x71   :  { %1415 = vmatpush.bf16.msra.mxu1 %v4168_v19  ;;  %v4264_v19 = vor.u32 %v5930_v11, %v4261_v12  ;;  %v5850_v35 = vld [vmem:[#allocation5 + $0xc] sm:$0xf]  ;;  %v4488_v38 = vor.u32 %v5986_v28, %v4485_v29  ;;  %v6023_v11 = vld [vmem:[#allocation5 + $0x56c] sm:$0xf0]  ;;  %v5891_v12 = vld [vmem:[#allocation5 + $0x154] sm:$0xf] }
  0x72   :  { %1384 = vmatmul.bf16.vlgmr.msrb.gmra.mxu2 %v6596_v18  ;;  %1445 = vmatpush.bf16.msra.mxu3 %v4552_v9  ;;  %v3941_v36 = vld [vmem:[#allocation5 + $0x28] sm:$0xf0]  ;;  %v5959_v9 = vld [vmem:[#allocation5 + $0x36c] sm:$0xf0]  ;;  %v4077_v28 = vld [vmem:[#allocation5 + $0x130] sm:$0xf0] }
  0x73   :  { %1428 = vmatpush.bf16.msra.mxu2 %v4424_v21  ;;  %1403 = vmatpush.bf16.msra.mxu0 %v4644_v31  ;;  %v4483_v21 = vld [vmem:[#allocation5 + $0x448] sm:$0xf]  ;;  %v5914_v37 = vld [vmem:[#allocation5 + $0x20c] sm:$0xf]  ;;  %v3944_v49 = vor.u32 %v5850_v35, %v3941_v36  ;;  %v6015_v26 = vld [vmem:[#allocation5 + $0x52c] sm:$0xf0]  ;;  %v4080_v35 = vor.u32 %v5883_v27, %v4077_v28 }
  0x74   :  { %v4484_v30 = vor.u32 %v5990_v22, %v4483_v21  ;;  %v4451_v31 = vld [vmem:[#allocation5 + $0x408] sm:$0xf]  ;;  %v4197_v39 = vld [vmem:[#allocation5 + $0x228] sm:$0xf0]  ;;  %v5887_v21 = vld [vmem:[#allocation5 + $0x12c] sm:$0xf0] }
  0x75   :  { %1416 = vmatpush.bf16.msra.mxu1 %v4136_v32  ;;  %v5982_v32 = vld [vmem:[#allocation5 + $0x424] sm:$0xf0]  ;;  %v5978_v40 = vld [vmem:[#allocation5 + $0x40c] sm:$0xf]  ;;  %v4200_v50 = vor.u32 %v5914_v37, %v4197_v39  ;;  %v4331_v22 = vld [vmem:[#allocation5 + $0x310] sm:$0xf] }
  0x76   :  { %1446 = vmatpush.bf16.msra.mxu3 %v4520_v24  ;;  %v4453_v41 = vld [vmem:[#allocation5 + $0x428] sm:$0xf0]  ;;  %v5951_v24 = vld [vmem:[#allocation5 + $0x32c] sm:$0xf0]  ;;  %v5875_v39 = vld [vmem:[#allocation5 + $0xd4] sm:$0xf] }
  0x77   :  { %1429 = vmatpush.bf16.msra.mxu2 %v4392_v33  ;;  %1404 = vmatpush.bf16.msra.mxu0 %v4612_v43  ;;  %v3976_v33 = vor.u32 %v5858_v23, %v3973_v25  ;;  %v5911_v43 = vld [vmem:[#allocation5 + $0x1ec] sm:$0xf0]  ;;  %v4456_v53 = vor.u32 %v5978_v40, %v4453_v41  ;;  %v4112_v23 = vor.u32 %v5891_v12, %v4109_v13  ;;  %v4045_v40 = vld [vmem:[#allocation5 + $0xf0] sm:$0xf0] }
  0x78   :  { %v4172_v54 = vor.u32 %v5911_v43, %v4171_v42  ;;  %v4587_v25 = vld [vmem:[#allocation5 + $0x510] sm:$0xf]  ;;  %v3949_v12 = vld [vmem:[#allocation5 + $0x30] sm:$0xf0] }
  0x79   :  { %1417 = vmatpush.bf16.msra.mxu1 %v4104_v44  ;;  %v4427_v44 = vld [vmem:[#allocation5 + $0x3d0] sm:$0xf]  ;;  %v5971_v13 = vld [vmem:[#allocation5 + $0x3d4] sm:$0xf] }
  0x7a   :  { %1447 = vmatpush.bf16.msra.mxu3 %v4488_v38  ;;  %v5943_v36 = vld [vmem:[#allocation5 + $0x2ec] sm:$0xf0] }
  0x7b   :  { %1430 = vmatpush.bf16.msra.mxu2 %v4360_v45  ;;  %1405 = vmatpush.bf16.msra.mxu0 %v4580_v55  ;;  %v4452_v45 = vor.u32 %v5982_v32, %v4451_v31  ;;  %v4428_v55 = vor.u32 %v5975_v46, %v4427_v44  ;;  %v4588_v31 = vor.u32 %v6015_v26, %v4587_v25  ;;  %v4043_v32 = vld [vmem:[#allocation5 + $0xd0] sm:$0xf]  ;;  %v4435_v25 = vld [vmem:[#allocation5 + $0x3d8] sm:$0xf] }
  0x7c   :  { %v4555_v37 = vld [vmem:[#allocation5 + $0x4d0] sm:$0xf]  ;;  %v5976_v26 = vld [vmem:[#allocation5 + $0x3f4] sm:$0xf0] }
  0x7d   :  { %1418 = vmatpush.bf16.msra.mxu1 %v4072_v56  ;;  %v4684_v56 = vor.u32 %v6039_v48, %v4683_v47  ;;  %v6007_v38 = vld [vmem:[#allocation5 + $0x4ec] sm:$0xf0]  ;;  %v4048_v47 = vor.u32 %v5875_v39, %v4045_v40  ;;  %v5968_v39 = vld [vmem:[#allocation5 + $0x3b4] sm:$0xf0] }
  0x7e   :  { %1448 = vmatpush.bf16.msra.mxu3 %v4456_v53  ;;  %v4556_v43 = vor.u32 %v6007_v38, %v4555_v37  ;;  %v4011_v44 = vld [vmem:[#allocation5 + $0x90] sm:$0xf]  ;;  %v5904_v37 = vld [vmem:[#allocation5 + $0x1b4] sm:$0xf0] }
  0x7f   :  { %1431 = vmatpush.bf16.msra.mxu2 %v4328_v57  ;;  %1406 = vmatpush.bf16.msra.mxu0 %v4548_v3  ;;  %v4139_v57 = vld [vmem:[#allocation5 + $0x190] sm:$0xf]  ;;  %v4396_v3 = vor.u32 %v5967_v61, %v4395_v59  ;;  %v4016_v59 = vor.u32 %v5867_v51, %v4013_v52  ;;  %v4403_v38 = vld [vmem:[#allocation5 + $0x398] sm:$0xf] }
  0x80   :  { %v4140_v2 = vor.u32 %v5903_v58, %v4139_v57  ;;  %v4267_v46 = vld [vmem:[#allocation5 + $0x290] sm:$0xf]  ;;  %v5960_v51 = vld [vmem:[#allocation5 + $0x374] sm:$0xf0] }
  0x81   :  { %1419 = vmatpush.bf16.msra.mxu1 %v4040_v4  ;;  %v4652_v4 = vor.u32 %v6031_v63, %v4651_v62  ;;  %1449 = vmatmul.bf16.vlgmr.msra.gmra.mxu3 %v6594_v17  ;;  %v5935_v48 = vld [vmem:[#allocation5 + $0x2ac] sm:$0xf0]  ;;  %v5859_v63 = vld [vmem:[#allocation5 + $0x54] sm:$0xf] }
  0x82   :  { %1493 = vmatpush.bf16.msrb.mxu3 %v4176_v60  ;;  %v5863_v57 = vld [vmem:[#allocation5 + $0x6c] sm:$0xf0] }
  0x83   :  { %1432 = vmatpush.bf16.msra.mxu2 %v4296_v5  ;;  %1407 = vmatpush.bf16.msra.mxu0 %v4516_v15  ;;  %v4107_v5 = vld [vmem:[#allocation5 + $0x150] sm:$0xf]  ;;  %v4364_v15 = vor.u32 %v5959_v9, %v4363_v7  ;;  %v3984_v9 = vor.u32 %v5859_v63, %v3981_v0  ;;  %v5952_v63 = vld [vmem:[#allocation5 + $0x334] sm:$0xf0] }
  0x84   :  { %v4108_v14 = vor.u32 %v5895_v6, %v4107_v5  ;;  %v4235_v58 = vld [vmem:[#allocation5 + $0x250] sm:$0xf] }
  0x85   :  { %1420 = vmatpush.bf16.msra.mxu1 %v4008_v16  ;;  %v4620_v16 = vor.u32 %v6023_v11, %v4619_v10  ;;  %v5927_v60 = vld [vmem:[#allocation5 + $0x26c] sm:$0xf0]  ;;  %v5851_v11 = vld [vmem:[#allocation5 + $0x14] sm:$0xf] }
  0x86   :  { %1494 = vmatpush.bf16.msrb.mxu3 %v4144_v8  ;;  %v4491_v61 = vld [vmem:[#allocation5 + $0x450] sm:$0xf]  ;;  %v3952_v27 = vor.u32 %v5851_v11, %v3949_v12  ;;  %v5944_v11 = vld [vmem:[#allocation5 + $0x2f4] sm:$0xf0] }
  0x87   :  { %1433 = vmatpush.bf16.msra.mxu2 %v4264_v19  ;;  %1408 = vmatpush.bf16.msra.mxu0 %v4484_v30  ;;  %v4075_v19 = vld [vmem:[#allocation5 + $0x110] sm:$0xf]  ;;  %v4332_v30 = vor.u32 %v5951_v24, %v4331_v22  ;;  %v5912_v22 = vld [vmem:[#allocation5 + $0x1f4] sm:$0xf0] }
  0x88   :  { %v4076_v29 = vor.u32 %v5887_v21, %v4075_v19  ;;  %v5991_v62 = vld [vmem:[#allocation5 + $0x46c] sm:$0xf0]  ;;  %v4685_v19 = vld [vmem:[#allocation5 + $0x5f0] sm:$0xf0]  ;;  %v4179_v21 = vld [vmem:[#allocation5 + $0x1d8] sm:$0xf] }
  0x89   :  { %1421 = vmatpush.bf16.msra.mxu1 %v3976_v33  ;;  %v5879_v33 = vld [vmem:[#allocation5 + $0xec] sm:$0xf0]  ;;  %v4492_v5 = vor.u32 %v5991_v62, %v4491_v61  ;;  %v5888_v61 = vld [vmem:[#allocation5 + $0x134] sm:$0xf0] }
  0x8a   :  { %1495 = vmatpush.bf16.msrb.mxu3 %v4112_v23  ;;  %v4044_v41 = vor.u32 %v5879_v33, %v4043_v32  ;;  %v4203_v6 = vld [vmem:[#allocation5 + $0x210] sm:$0xf]  ;;  %v4397_v32 = vld [vmem:[#allocation5 + $0x3b0] sm:$0xf0]  ;;  %v4339_v62 = vld [vmem:[#allocation5 + $0x318] sm:$0xf] }
  0x8b   :  { %1434 = vmatpush.bf16.msra.mxu2 %v4232_v34  ;;  %1409 = vmatpush.bf16.msra.mxu0 %v4452_v45  ;;  %v4299_v34 = vld [vmem:[#allocation5 + $0x2d0] sm:$0xf]  ;;  %v6027_v33 = vld [vmem:[#allocation5 + $0x594] sm:$0xf] }
  0x8c   :  { %v4300_v42 = vor.u32 %v5943_v36, %v4299_v34  ;;  %v5871_v45 = vld [vmem:[#allocation5 + $0xac] sm:$0xf0]  ;;  %v4436_v34 = vor.u32 %v5976_v26, %v4435_v25  ;;  %v4147_v36 = vld [vmem:[#allocation5 + $0x198] sm:$0xf] }
  0x8d   :  { %1422 = vmatpush.bf16.msra.mxu1 %v3944_v49  ;;  %v4523_v49 = vld [vmem:[#allocation5 + $0x490] sm:$0xf]  ;;  %v4012_v53 = vor.u32 %v5871_v45, %v4011_v44  ;;  %v4365_v44 = vld [vmem:[#allocation5 + $0x370] sm:$0xf0]  ;;  %v4275_v25 = vld [vmem:[#allocation5 + $0x298] sm:$0xf] }
  0x8e   :  { %1410 = vmatmul.bf16.vlgmr.msra.gmra.mxu0 %v6594_v17  ;;  %1496 = vmatpush.bf16.msrb.mxu3 %v4080_v35  ;;  %v5919_v7 = vld [vmem:[#allocation5 + $0x22c] sm:$0xf0]  ;;  %v4653_v35 = vld [vmem:[#allocation5 + $0x5b0] sm:$0xf0]  ;;  %v5936_v26 = vld [vmem:[#allocation5 + $0x2b4] sm:$0xf0] }
  0x8f   :  { %1435 = vmatpush.bf16.msra.mxu2 %v4200_v50  ;;  %1454 = vmatpush.bf16.msrb.mxu0 %v4172_v54  ;;  %v5999_v50 = vld [vmem:[#allocation5 + $0x4ac] sm:$0xf0]  ;;  %v4268_v54 = vor.u32 %v5935_v48, %v4267_v46  ;;  %v4204_v23 = vor.u32 %v5919_v7, %v4203_v6  ;;  %v6019_v45 = vld [vmem:[#allocation5 + $0x554] sm:$0xf]  ;;  %v4404_v46 = vor.u32 %v5968_v39, %v4403_v38  ;;  %v4115_v48 = vld [vmem:[#allocation5 + $0x158] sm:$0xf] }
  0x90   :  { %1423 = vmatmul.bf16.vlgmr.msra.gmra.mxu1 %v6596_v18  ;;  %v4459_v8 = vld [vmem:[#allocation5 + $0x410] sm:$0xf]  ;;  %v4340_v6 = vor.u32 %v5952_v63, %v4339_v62  ;;  %v4557_v7 = vld [vmem:[#allocation5 + $0x4f0] sm:$0xf0]  ;;  %v5928_v38 = vld [vmem:[#allocation5 + $0x274] sm:$0xf0] }
  0x91   :  { %1467 = vmatpush.bf16.msrb.mxu1 %v4428_v55  ;;  %v4524_v55 = vor.u32 %v5999_v50, %v4523_v49  ;;  %v5983_v10 = vld [vmem:[#allocation5 + $0x42c] sm:$0xf0]  ;;  %v5896_v49 = vld [vmem:[#allocation5 + $0x174] sm:$0xf0] }
  0x92   :  { %1436 = vmatmul.bf16.vlgmr.msra.gmra.mxu2 %v6598_v20  ;;  %1497 = vmatpush.bf16.msrb.mxu3 %v4048_v47  ;;  %v4460_v24 = vor.u32 %v5983_v10, %v4459_v8  ;;  %v4621_v47 = vld [vmem:[#allocation5 + $0x570] sm:$0xf0]  ;;  %v4371_v50 = vld [vmem:[#allocation5 + $0x358] sm:$0xf] }
  0x93   :  { %1480 = vmatpush.bf16.msrb.mxu2 %v4684_v56  ;;  %1455 = vmatpush.bf16.msrb.mxu0 %v4140_v2  ;;  %v3979_v56 = vld [vmem:[#allocation5 + $0x50] sm:$0xf]  ;;  %v4051_v8 = vld [vmem:[#allocation5 + $0xd8] sm:$0xf] }
  0x94   :  { %v3980_v1 = vor.u32 %v5863_v57, %v3979_v56  ;;  %v3947_v2 = vld [vmem:[#allocation5 + $0x10] sm:$0xf]  ;;  %v4333_v56 = vld [vmem:[#allocation5 + $0x330] sm:$0xf0]  ;;  %v4307_v10 = vld [vmem:[#allocation5 + $0x2d8] sm:$0xf] }
  0x95   :  { %1468 = vmatpush.bf16.msrb.mxu1 %v4396_v3  ;;  %v5855_v3 = vld [vmem:[#allocation5 + $0x2c] sm:$0xf0]  ;;  %v6011_v57 = vld [vmem:[#allocation5 + $0x514] sm:$0xf] }
  0x96   :  { %1498 = vmatpush.bf16.msrb.mxu3 %v4016_v59  ;;  %v4589_v59 = vld [vmem:[#allocation5 + $0x530] sm:$0xf0] }
  0x97   :  { %1481 = vmatpush.bf16.msrb.mxu2 %v4652_v4  ;;  %1456 = vmatpush.bf16.msrb.mxu0 %v4108_v14  ;;  %v4236_v4 = vor.u32 %v5927_v60, %v4235_v58  ;;  %v4429_v14 = vld [vmem:[#allocation5 + $0x3f0] sm:$0xf0]  ;;  %v4372_v58 = vor.u32 %v5960_v51, %v4371_v50  ;;  %v4083_v60 = vld [vmem:[#allocation5 + $0x118] sm:$0xf] }
  0x98   :  { %v4432_v28 = vor.u32 %v5971_v13, %v4429_v14  ;;  %v5920_v50 = vld [vmem:[#allocation5 + $0x234] sm:$0xf0] }
  0x99   :  { %1469 = vmatpush.bf16.msrb.mxu1 %v4364_v15  ;;  %v6035_v15 = vld [vmem:[#allocation5 + $0x5d4] sm:$0xf]  ;;  %v4691_v51 = vld [vmem:[#allocation5 + $0x5d8] sm:$0xf] }
  0x9a   :  { %1499 = vmatpush.bf16.msrb.mxu3 %v3984_v9  ;;  %v5880_v9 = vld [vmem:[#allocation5 + $0xf4] sm:$0xf0] }
  0x9b   :  { %1482 = vmatpush.bf16.msrb.mxu2 %v4620_v16  ;;  %1457 = vmatpush.bf16.msrb.mxu0 %v4076_v29  ;;  %v3948_v16 = vor.u32 %v5855_v3, %v3947_v2  ;;  %v4688_v29 = vor.u32 %v6035_v15, %v4685_v19  ;;  %v4084_v2 = vor.u32 %v5888_v61, %v4083_v60  ;;  %v5939_v3 = vld [vmem:[#allocation5 + $0x2d4] sm:$0xf]  ;;  %v6036_v60 = vld [vmem:[#allocation5 + $0x5dc] sm:$0xf] }
  0x9c   :  { %v4052_v14 = vor.u32 %v5880_v9, %v4051_v8  ;;  %v5931_v15 = vld [vmem:[#allocation5 + $0x294] sm:$0xf]  ;;  %v4693_v61 = vld [vmem:[#allocation5 + $0x5f8] sm:$0xf0] }
  0x9d   :  { %1470 = vmatpush.bf16.msrb.mxu1 %v4332_v30  ;;  %v4180_v30 = vor.u32 %v5912_v22, %v4179_v21  ;;  %v5995_v19 = vld [vmem:[#allocation5 + $0x494] sm:$0xf]  ;;  %v4308_v21 = vor.u32 %v5944_v11, %v4307_v10  ;;  %v4405_v8 = vld [vmem:[#allocation5 + $0x3b8] sm:$0xf0] }
  0x9e   :  { %1500 = vmatpush.bf16.msrb.mxu3 %v3952_v27  ;;  %v4525_v22 = vld [vmem:[#allocation5 + $0x4b0] sm:$0xf0]  ;;  %v6028_v9 = vld [vmem:[#allocation5 + $0x59c] sm:$0xf] }
  0x9f   :  { %1483 = vmatpush.bf16.msrb.mxu2 %v4588_v31  ;;  %1458 = vmatpush.bf16.msrb.mxu0 %v4044_v41  ;;  %v5963_v31 = vld [vmem:[#allocation5 + $0x394] sm:$0xf]  ;;  %v4656_v41 = vor.u32 %v6027_v33, %v4653_v35  ;;  %v4276_v33 = vor.u32 %v5936_v26, %v4275_v25  ;;  %v3987_v35 = vld [vmem:[#allocation5 + $0x58] sm:$0xf]  ;;  %v4661_v10 = vld [vmem:[#allocation5 + $0x5b8] sm:$0xf0] }
  0xa0   :  { %v4400_v40 = vor.u32 %v5963_v31, %v4397_v32  ;;  %v4237_v31 = vld [vmem:[#allocation5 + $0x270] sm:$0xf0]  ;;  %v4629_v25 = vld [vmem:[#allocation5 + $0x578] sm:$0xf0] }
  0xa1   :  { %1471 = vmatpush.bf16.msrb.mxu1 %v4300_v42  ;;  %v4148_v42 = vor.u32 %v5904_v37, %v4147_v36  ;;  %1501 = vmatmul.bf16.vlgmr.msrb.gmra.mxu3 %v6596_v18  ;;  %v5987_v32 = vld [vmem:[#allocation5 + $0x454] sm:$0xf]  ;;  %v5864_v36 = vld [vmem:[#allocation5 + $0x74] sm:$0xf0] }
  0xa2   :  { %1545 = vmatpush.bf16.msra.mxu3 %v4436_v34  ;;  %v4493_v34 = vld [vmem:[#allocation5 + $0x470] sm:$0xf0]  ;;  %v4243_v37 = vld [vmem:[#allocation5 + $0x258] sm:$0xf] }
  0xa3   :  { %1484 = vmatpush.bf16.msrb.mxu2 %v4556_v43  ;;  %1459 = vmatpush.bf16.msrb.mxu0 %v4012_v53  ;;  %v5955_v43 = vld [vmem:[#allocation5 + $0x354] sm:$0xf]  ;;  %v4624_v53 = vor.u32 %v6019_v45, %v4621_v47  ;;  %v4244_v47 = vor.u32 %v5928_v38, %v4243_v37  ;;  %v4597_v37 = vld [vmem:[#allocation5 + $0x538] sm:$0xf0] }
  0xa4   :  { %v4368_v52 = vor.u32 %v5955_v43, %v4365_v44  ;;  %v3988_v43 = vor.u32 %v5864_v36, %v3987_v35  ;;  %v5979_v44 = vld [vmem:[#allocation5 + $0x414] sm:$0xf]  ;;  %v4341_v35 = vld [vmem:[#allocation5 + $0x338] sm:$0xf0] }
  0xa5   :  { %1472 = vmatpush.bf16.msrb.mxu1 %v4268_v54  ;;  %v4116_v54 = vor.u32 %v5896_v49, %v4115_v48  ;;  %v4461_v45 = vld [vmem:[#allocation5 + $0x430] sm:$0xf0]  ;;  %v5856_v48 = vld [vmem:[#allocation5 + $0x34] sm:$0xf0]  ;;  %v6012_v36 = vld [vmem:[#allocation5 + $0x51c] sm:$0xf] }
  0xa6   :  { %1546 = vmatpush.bf16.msra.mxu3 %v4404_v46  ;;  %v3955_v46 = vld [vmem:[#allocation5 + $0x18] sm:$0xf] }
  0xa7   :  { %1485 = vmatpush.bf16.msrb.mxu2 %v4524_v55  ;;  %1460 = vmatpush.bf16.msrb.mxu0 %v3980_v1  ;;  %v5947_v55 = vld [vmem:[#allocation5 + $0x314] sm:$0xf]  ;;  %v4592_v1 = vor.u32 %v6011_v57, %v4589_v59  ;;  %v4211_v49 = vld [vmem:[#allocation5 + $0x218] sm:$0xf]  ;;  %v4437_v57 = vld [vmem:[#allocation5 + $0x3f8] sm:$0xf0]  ;;  %v3956_v59 = vor.u32 %v5856_v48, %v3955_v46 }
  0xa8   :  { %v4336_v0 = vor.u32 %v5947_v55, %v4333_v56  ;;  %v4181_v55 = vld [vmem:[#allocation5 + $0x1f8] sm:$0xf0]  ;;  %v4212_v62 = vor.u32 %v5920_v50, %v4211_v49 }
  0xa9   :  { %1473 = vmatpush.bf16.msrb.mxu1 %v4236_v4  ;;  %v4301_v4 = vld [vmem:[#allocation5 + $0x2f0] sm:$0xf0]  ;;  %v5972_v56 = vld [vmem:[#allocation5 + $0x3dc] sm:$0xf] }
  0xaa   :  { %1547 = vmatpush.bf16.msra.mxu3 %v4372_v58  ;;  %v4304_v12 = vor.u32 %v5939_v3, %v4301_v4  ;;  %v4464_v58 = vor.u32 %v5979_v44, %v4461_v45  ;;  %v6032_v3 = vld [vmem:[#allocation5 + $0x5b4] sm:$0xf0]  ;;  %v5900_v4 = vld [vmem:[#allocation5 + $0x19c] sm:$0xf]  ;;  %v4600_v44 = vor.u32 %v6012_v36, %v4597_v37 }
  0xab   :  { %1486 = vmatpush.bf16.msrb.mxu2 %v4492_v5  ;;  %1461 = vmatpush.bf16.msrb.mxu0 %v3948_v16  ;;  %v6003_v5 = vld [vmem:[#allocation5 + $0x4d4] sm:$0xf]  ;;  %v4053_v45 = vld [vmem:[#allocation5 + $0xf8] sm:$0xf0] }
  0xac   :  { %v4560_v13 = vor.u32 %v6003_v5, %v4557_v7  ;;  %v4269_v16 = vld [vmem:[#allocation5 + $0x2b0] sm:$0xf0]  ;;  %v4696_v5 = vor.u32 %v6036_v60, %v4693_v61  ;;  %v5964_v7 = vld [vmem:[#allocation5 + $0x39c] sm:$0xf] }
  0xad   :  { %1474 = vmatpush.bf16.msrb.mxu1 %v4204_v23  ;;  %v4019_v23 = vld [vmem:[#allocation5 + $0x98] sm:$0xf]  ;;  %v4272_v27 = vor.u32 %v5931_v15, %v4269_v16  ;;  %v5892_v16 = vld [vmem:[#allocation5 + $0x15c] sm:$0xf] }
  0xae   :  { %1462 = vmatmul.bf16.vlgmr.msrb.gmra.mxu0 %v6596_v18  ;;  %1548 = vmatpush.bf16.msra.mxu3 %v4340_v6  ;;  %v4149_v6 = vld [vmem:[#allocation5 + $0x1b8] sm:$0xf0]  ;;  %v6024_v15 = vld [vmem:[#allocation5 + $0x574] sm:$0xf0] }
  0xaf   :  { %1487 = vmatpush.bf16.msrb.mxu2 %v4460_v24  ;;  %1506 = vmatpush.bf16.msra.mxu0 %v4432_v28  ;;  %v5872_v24 = vld [vmem:[#allocation5 + $0xb4] sm:$0xf0]  ;;  %v4528_v28 = vor.u32 %v5995_v19, %v4525_v22  ;;  %v4664_v19 = vor.u32 %v6028_v9, %v4661_v10  ;;  %v5956_v22 = vld [vmem:[#allocation5 + $0x35c] sm:$0xf] }
  0xb0   :  { %1475 = vmatmul.bf16.vlgmr.msrb.gmra.mxu1 %v6598_v20  ;;  %v5940_v46 = vld [vmem:[#allocation5 + $0x2dc] sm:$0xf] }
  0xb1   :  { %1519 = vmatpush.bf16.msra.mxu1 %v4688_v29  ;;  %v4020_v29 = vor.u32 %v5872_v24, %v4019_v23  ;;  %v4373_v23 = vld [vmem:[#allocation5 + $0x378] sm:$0xf0] }
  0xb2   :  { %1488 = vmatmul.bf16.vlgmr.msrb.gmra.mxu2 %v6594_v17  ;;  %1549 = vmatpush.bf16.msra.mxu3 %v4308_v21  ;;  %v4117_v21 = vld [vmem:[#allocation5 + $0x178] sm:$0xf0] }
  0xb3   :  { %1532 = vmatpush.bf16.msra.mxu2 %v4180_v30  ;;  %1507 = vmatpush.bf16.msra.mxu0 %v4400_v40  ;;  %v5923_v30 = vld [vmem:[#allocation5 + $0x254] sm:$0xf]  ;;  %v6020_v24 = vld [vmem:[#allocation5 + $0x55c] sm:$0xf] }
  0xb4   :  { %v4240_v39 = vor.u32 %v5923_v30, %v4237_v31  ;;  %v5915_v40 = vld [vmem:[#allocation5 + $0x214] sm:$0xf]  ;;  %v6016_v30 = vld [vmem:[#allocation5 + $0x534] sm:$0xf0]  ;;  %v5884_v31 = vld [vmem:[#allocation5 + $0x11c] sm:$0xf] }
  0xb5   :  { %1520 = vmatpush.bf16.msra.mxu1 %v4656_v41  ;;  %v4205_v41 = vld [vmem:[#allocation5 + $0x230] sm:$0xf0]  ;;  %v6004_v48 = vld [vmem:[#allocation5 + $0x4dc] sm:$0xf] }
  0xb6   :  { %1550 = vmatpush.bf16.msra.mxu3 %v4276_v33  ;;  %v4085_v33 = vld [vmem:[#allocation5 + $0x138] sm:$0xf0] }
  0xb7   :  { %1533 = vmatpush.bf16.msra.mxu2 %v4148_v42  ;;  %1508 = vmatpush.bf16.msra.mxu0 %v4368_v52  ;;  %v4496_v42 = vor.u32 %v5987_v32, %v4493_v34  ;;  %v6040_v52 = vld [vmem:[#allocation5 + $0x5f4] sm:$0xf0]  ;;  %v4632_v32 = vor.u32 %v6020_v24, %v4629_v25  ;;  %v5948_v34 = vld [vmem:[#allocation5 + $0x31c] sm:$0xf] }
  0xb8   :  { %v4692_v63 = vor.u32 %v6040_v52, %v4691_v51  ;;  %v4565_v49 = vld [vmem:[#allocation5 + $0x4f8] sm:$0xf0] }
  0xb9   :  { %1521 = vmatpush.bf16.msra.mxu1 %v4624_v53  ;;  %v5908_v53 = vld [vmem:[#allocation5 + $0x1dc] sm:$0xf] }
  0xba   :  { %1551 = vmatpush.bf16.msra.mxu3 %v4244_v47  ;;  %v4309_v47 = vld [vmem:[#allocation5 + $0x2f8] sm:$0xf0] }
  0xbb   :  { %1534 = vmatpush.bf16.msra.mxu2 %v4116_v54  ;;  %1509 = vmatpush.bf16.msra.mxu0 %v4336_v0  ;;  %v4208_v54 = vor.u32 %v5915_v40, %v4205_v41  ;;  %v4184_v0 = vor.u32 %v5908_v53, %v4181_v55  ;;  %v4344_v40 = vor.u32 %v5948_v34, %v4341_v35  ;;  %v4563_v41 = vld [vmem:[#allocation5 + $0x4d8] sm:$0xf]  ;;  %v5868_v55 = vld [vmem:[#allocation5 + $0x9c] sm:$0xf] }
  0xbc   :  { %v4312_v52 = vor.u32 %v5940_v46, %v4309_v47  ;;  %v4531_v53 = vld [vmem:[#allocation5 + $0x498] sm:$0xf]  ;;  %v5996_v60 = vld [vmem:[#allocation5 + $0x49c] sm:$0xf]  ;;  %v4923_v47 = vld [vmem:[#allocation8 + $0x1c0] sm:$0xf] }
  0xbd   :  { %1522 = vmatpush.bf16.msra.mxu1 %v4592_v1  ;;  %v4440_v1 = vor.u32 %v5972_v56, %v4437_v57  ;;  %v4568_v56 = vor.u32 %v6004_v48, %v4565_v49  ;;  %v4021_v57 = vld [vmem:[#allocation5 + $0xb8] sm:$0xf0]  ;;  %v6167_v46 = vld [vmem:[#allocation8 + $0x3ec] sm:$0xf0] }
  0xbe   :  { %1552 = vmatpush.bf16.msra.mxu3 %v4212_v62  ;;  %v4533_v61 = vld [vmem:[#allocation5 + $0x4b8] sm:$0xf0]  ;;  %v6099_v48 = vld [vmem:[#allocation8 + $0x1cc] sm:$0xf0] }
  0xbf   :  { %1535 = vmatpush.bf16.msra.mxu2 %v4084_v2  ;;  %1510 = vmatpush.bf16.msra.mxu0 %v4304_v12  ;;  %v4659_v2 = vld [vmem:[#allocation5 + $0x598] sm:$0xf]  ;;  %v4152_v12 = vor.u32 %v5900_v4, %v4149_v6  ;;  %v5860_v4 = vld [vmem:[#allocation5 + $0x5c] sm:$0xf]  ;;  %v4536_v6 = vor.u32 %v5996_v60, %v4533_v61  ;;  %v4907_v61 = vld [vmem:[#allocation8 + $0x1a0] sm:$0xf] }
  0xc0   :  { %v4660_v11 = vor.u32 %v6032_v3, %v4659_v2  ;;  %v4499_v2 = vld [vmem:[#allocation5 + $0x458] sm:$0xf]  ;;  %v4245_v9 = vld [vmem:[#allocation5 + $0x278] sm:$0xf0] }
  0xc1   :  { %1523 = vmatpush.bf16.msra.mxu1 %v4560_v13  ;;  %v4408_v13 = vor.u32 %v5964_v7, %v4405_v8  ;;  %1553 = vmatmul.bf16.vlgmr.msra.gmra.mxu3 %v6598_v20  ;;  %v5992_v3 = vld [vmem:[#allocation5 + $0x474] sm:$0xf0]  ;;  %v3989_v7 = vld [vmem:[#allocation5 + $0x78] sm:$0xf0] }
  0xc2   :  { %1597 = vmatpush.bf16.msrb.mxu3 %v4696_v5  ;;  %v5924_v8 = vld [vmem:[#allocation5 + $0x25c] sm:$0xf]  ;;  %v6163_v60 = vld [vmem:[#allocation8 + $0x3cc] sm:$0xf0] }
  0xc3   :  { %1536 = vmatpush.bf16.msra.mxu2 %v4052_v14  ;;  %1511 = vmatpush.bf16.msra.mxu0 %v4272_v27  ;;  %v4627_v14 = vld [vmem:[#allocation5 + $0x558] sm:$0xf]  ;;  %v4120_v27 = vor.u32 %v5892_v16, %v4117_v21  ;;  %v5988_v10 = vld [vmem:[#allocation5 + $0x45c] sm:$0xf] }
  0xc4   :  { %v4628_v26 = vor.u32 %v6024_v15, %v4627_v14  ;;  %v3992_v14 = vor.u32 %v5860_v4, %v3989_v7  ;;  %v4248_v15 = vor.u32 %v5924_v8, %v4245_v9  ;;  %v5984_v16 = vld [vmem:[#allocation5 + $0x434] sm:$0xf0]  ;;  %v3957_v21 = vld [vmem:[#allocation5 + $0x38] sm:$0xf0]  ;;  %v5035_v4 = vld [vmem:[#allocation8 + $0x2a0] sm:$0xf] }
  0xc5   :  { %1524 = vmatpush.bf16.msra.mxu1 %v4528_v28  ;;  %v4376_v28 = vor.u32 %v5956_v22, %v4373_v23  ;;  %v5916_v24 = vld [vmem:[#allocation5 + $0x21c] sm:$0xf]  ;;  %v5163_v9 = vld [vmem:[#allocation8 + $0x3a0] sm:$0xf] }
  0xc6   :  { %1598 = vmatpush.bf16.msrb.mxu3 %v4664_v19  ;;  %v5852_v19 = vld [vmem:[#allocation5 + $0x1c] sm:$0xf] }
  0xc7   :  { %1537 = vmatpush.bf16.msra.mxu2 %v4020_v29  ;;  %1512 = vmatpush.bf16.msra.mxu0 %v4240_v39  ;;  %v4595_v29 = vld [vmem:[#allocation5 + $0x518] sm:$0xf]  ;;  %v4088_v39 = vor.u32 %v5884_v31, %v4085_v33  ;;  %v4213_v25 = vld [vmem:[#allocation5 + $0x238] sm:$0xf0]  ;;  %v3960_v35 = vor.u32 %v5852_v19, %v3957_v21  ;;  %v5019_v19 = vld [vmem:[#allocation8 + $0x280] sm:$0xf] }
  0xc8   :  { %v4596_v38 = vor.u32 %v6016_v30, %v4595_v29  ;;  %v4811_v29 = vld [vmem:[#allocation8 + $0xe0] sm:$0xf]  ;;  %v6071_v30 = vld [vmem:[#allocation8 + $0xec] sm:$0xf0]  ;;  %v4216_v36 = vor.u32 %v5916_v24, %v4213_v25 }
  0xc9   :  { %1525 = vmatpush.bf16.msra.mxu1 %v4496_v42  ;;  %v6008_v42 = vld [vmem:[#allocation5 + $0x4f4] sm:$0xf0] }
  0xca   :  { %1599 = vmatpush.bf16.msrb.mxu3 %v4632_v32  ;;  %v4564_v50 = vor.u32 %v6008_v42, %v4563_v41  ;;  %v4939_v32 = vld [vmem:[#allocation8 + $0x1e0] sm:$0xf]  ;;  %v6103_v33 = vld [vmem:[#allocation8 + $0x1ec] sm:$0xf0] }
  0xcb   :  { %1538 = vmatpush.bf16.msra.mxu2 %v3988_v43  ;;  %1513 = vmatpush.bf16.msra.mxu0 %v4208_v54  ;;  %v5876_v43 = vld [vmem:[#allocation5 + $0xdc] sm:$0xf]  ;;  %v6000_v54 = vld [vmem:[#allocation5 + $0x4b4] sm:$0xf0]  ;;  %v5067_v41 = vld [vmem:[#allocation8 + $0x2e0] sm:$0xf] }
  0xcc   :  { %v4056_v51 = vor.u32 %v5876_v43, %v4053_v45  ;;  %v4532_v62 = vor.u32 %v6000_v54, %v4531_v53  ;;  %v6135_v42 = vld [vmem:[#allocation8 + $0x2ec] sm:$0xf0]  ;;  %v4940_v43 = vor.u32 %v6103_v33, %v4939_v32  ;;  %v5195_v45 = vld [vmem:[#allocation8 + $0x3e0] sm:$0xf] }
  0xcd   :  { %1526 = vmatpush.bf16.msra.mxu1 %v4464_v58  ;;  %v5932_v58 = vld [vmem:[#allocation5 + $0x29c] sm:$0xf]  ;;  %v6622_v5 = vpop.f32.mrf.mxu1  ;;  %v5051_v54 = vld [vmem:[#allocation8 + $0x2c0] sm:$0xf]  ;;  %v6123_v21 = vld [vmem:[#allocation8 + $0x28c] sm:$0xf0] }
  0xce   :  { %1514 = vmatmul.bf16.vlgmr.msra.gmra.mxu0 %v6598_v20  ;;  %1600 = vmatpush.bf16.msrb.mxu3 %v4600_v44  ;;  %v6067_v44 = vld [vmem:[#allocation8 + $0xcc] sm:$0xf0]  ;;  %v5020_v32 = vor.u32 %v6123_v21, %v5019_v19  ;;  %v5451_v19 = vld [vmem:[#allocation8 + $0x5e0] sm:$0xf] }
  0xcf   :  { %1539 = vmatpush.bf16.msra.mxu2 %v3956_v59  ;;  %1558 = vmatpush.bf16.msrb.mxu0 %v4692_v63  ;;  %v4277_v59 = vld [vmem:[#allocation5 + $0x2b8] sm:$0xf0]  ;;  %v6620_v63 = vpop.f32.mrf.mxu0  ;;  %v6055_v25 = vld [vmem:[#allocation8 + $0x6c] sm:$0xf0] }
  0xd0   :  { %1527 = vmatmul.bf16.vlgmr.msra.gmra.mxu1 %v6594_v17  ;;  %v6231_v21 = vld [vmem:[#allocation8 + $0x5ec] sm:$0xf0] }
  0xd1   :  { %1571 = vmatpush.bf16.msrb.mxu1 %v4184_v0  ;;  %v4024_v0 = vor.u32 %v5868_v55, %v4021_v57  ;;  %v6131_v55 = vld [vmem:[#allocation8 + $0x2cc] sm:$0xf0]  ;;  %v4924_v57 = vor.u32 %v6099_v48, %v4923_v47 }
  0xd2   :  { %1540 = vmatmul.bf16.vlgmr.msra.gmra.mxu2 %v6596_v18  ;;  %1601 = vmatpush.bf16.msrb.mxu3 %v4568_v56  ;;  %v5196_v56 = vor.u32 %v6167_v46, %v5195_v45  ;;  %v6083_v45 = vld [vmem:[#allocation8 + $0x14c] sm:$0xf0] }
  0xd3   :  { %1584 = vmatpush.bf16.msrb.mxu2 %v4440_v1  ;;  %1559 = vmatpush.bf16.msrb.mxu0 %v4660_v11  ;;  %v4280_v1 = vor.u32 %v5932_v58, %v4277_v59  ;;  %v4501_v11 = vld [vmem:[#allocation5 + $0x478] sm:$0xf0]  ;;  %v6063_v58 = vld [vmem:[#allocation8 + $0xac] sm:$0xf0]  ;;  %v5179_v59 = vld [vmem:[#allocation8 + $0x3c0] sm:$0xf] }
  0xd4   :  { %v4504_v23 = vor.u32 %v5988_v10, %v4501_v11  ;;  %v5180_v7 = vor.u32 %v6163_v60, %v5179_v59  ;;  %v4891_v10 = vld [vmem:[#allocation8 + $0x180] sm:$0xf]  ;;  %v6091_v11 = vld [vmem:[#allocation8 + $0x18c] sm:$0xf0] }
  0xd5   :  { %1572 = vmatpush.bf16.msrb.mxu1 %v4152_v12  ;;  %v4500_v12 = vor.u32 %v5992_v3, %v4499_v2  ;;  %v6624_v22 = vpop.f32.mrf.mxu2  ;;  %v1322_v37 = vpop.f32.mrf.mxu1  ;;  %v4763_v3 = vld [vmem:[#allocation8 + $0x80] sm:$0xf]  ;;  %v4892_v24 = vor.u32 %v6091_v11, %v4891_v10  ;;  %v6075_v11 = vld [vmem:[#allocation8 + $0x10c] sm:$0xf0] }
  0xd6   :  { %1602 = vmatpush.bf16.msrb.mxu3 %v4536_v6  ;;  %v6127_v6 = vld [vmem:[#allocation8 + $0x2ac] sm:$0xf0]  ;;  %v4843_v60 = vld [vmem:[#allocation8 + $0x120] sm:$0xf] }
  0xd7   :  { %1585 = vmatpush.bf16.msrb.mxu2 %v4408_v13  ;;  %1560 = vmatpush.bf16.msrb.mxu0 %v4628_v26  ;;  %v4467_v13 = vld [vmem:[#allocation5 + $0x418] sm:$0xf]  ;;  %v5980_v26 = vld [vmem:[#allocation5 + $0x41c] sm:$0xf]  ;;  %v1309_v34 = vpop.f32.mrf.mxu0 }
  0xd8   :  { %v4468_v31 = vor.u32 %v5984_v16, %v4467_v13  ;;  %v5036_v13 = vor.u32 %v6127_v6, %v5035_v4  ;;  %v4731_v34 = vld [vmem:[#allocation8 + $0x40] sm:$0xf]  ;;  %v6111_v6 = vld [vmem:[#allocation8 + $0x22c] sm:$0xf0] }
  0xd9   :  { %1573 = vmatpush.bf16.msrb.mxu1 %v4120_v27  ;;  %v6626_v27 = vpop.f32.mrf.mxu3  ;;  %v4971_v4 = vld [vmem:[#allocation8 + $0x220] sm:$0xf] }
  0xda   :  { %1603 = vmatpush.bf16.msrb.mxu3 %v4504_v23 }
  0xdb   :  { %1586 = vmatpush.bf16.msrb.mxu2 %v4376_v28  ;;  %1561 = vmatpush.bf16.msrb.mxu0 %v4596_v38  ;;  %v4469_v28 = vld [vmem:[#allocation5 + $0x438] sm:$0xf0] }
  0xdc   :  { %v4472_v38 = vor.u32 %v5980_v26, %v4469_v28  ;;  %v5147_v26 = vld [vmem:[#allocation8 + $0x380] sm:$0xf]  ;;  %v6155_v28 = vld [vmem:[#allocation8 + $0x38c] sm:$0xf0] }
  0xdd   :  { %1574 = vmatpush.bf16.msrb.mxu1 %v4088_v39  ;;  %v4812_v39 = vor.u32 %v6071_v30, %v4811_v29  ;;  %v1335_v49 = vpop.f32.mrf.mxu2  ;;  %v4875_v30 = vld [vmem:[#allocation8 + $0x160] sm:$0xf]  ;;  %v5148_v37 = vor.u32 %v6155_v28, %v5147_v26 }
  0xde   :  { %1604 = vmatpush.bf16.msrb.mxu3 %v4472_v38 }
  0xdf   :  { %1587 = vmatpush.bf16.msrb.mxu2 %v4344_v40  ;;  %1562 = vmatpush.bf16.msrb.mxu0 %v4564_v50  ;;  %v4795_v40 = vld [vmem:[#allocation8 + $0xc0] sm:$0xf]  ;;  %v5068_v50 = vor.u32 %v6135_v42, %v5067_v41  ;;  %v6151_v42 = vld [vmem:[#allocation8 + $0x36c] sm:$0xf0] }
  0xe0   :  { %v5131_v41 = vld [vmem:[#allocation8 + $0x360] sm:$0xf] }
  0xe1   :  { %1575 = vmatpush.bf16.msrb.mxu1 %v4056_v51  ;;  %v4796_v51 = vor.u32 %v6067_v44, %v4795_v40  ;;  %v1348_v53 = vpop.f32.mrf.mxu3  ;;  %1605 = vmatmul.bf16.vlgmr.msrb.gmra.mxu3 %v6594_v17  ;;  %v6051_v40 = vld [vmem:[#allocation8 + $0x4c] sm:$0xf0]  ;;  %v4859_v44 = vld [vmem:[#allocation8 + $0x140] sm:$0xf] }
  0xe2   :  { %3211 = vmatpush.bf16.msra.mxu3 %v5196_v56  ;;  %v6115_v53 = vld [vmem:[#allocation8 + $0x24c] sm:$0xf0] }
  0xe3   :  { %1588 = vmatpush.bf16.msrb.mxu2 %v4312_v52  ;;  %1563 = vmatpush.bf16.msrb.mxu0 %v4532_v62  ;;  %v4779_v52 = vld [vmem:[#allocation8 + $0xa0] sm:$0xf]  ;;  %v6095_v62 = vld [vmem:[#allocation8 + $0x1ac] sm:$0xf0] }
  0xe4   :  { %v4780_v2 = vor.u32 %v6063_v58, %v4779_v52  ;;  %v4908_v8 = vor.u32 %v6095_v62, %v4907_v61  ;;  %v4987_v52 = vld [vmem:[#allocation8 + $0x240] sm:$0xf]  ;;  %v6047_v56 = vld [vmem:[#allocation8 + $0x2c] sm:$0xf0] }
  0xe5   :  { %1576 = vmatpush.bf16.msrb.mxu1 %v4024_v0  ;;  %v6632_v0 = vld [vmem:[#allocation7] sm:$0xff]  ;;  %v6147_v58 = vld [vmem:[#allocation8 + $0x34c] sm:$0xf0]  ;;  %v4699_v62 = vld [vmem:[#allocation8] sm:$0xf] }
  0xe6   :  { %3212 = vmatpush.bf16.msra.mxu3 %v5180_v7  ;;  %v312_v29 = vperm.slane %v6632_v0, 1  ;;  %v6079_v61 = vld [vmem:[#allocation8 + $0x12c] sm:$0xf0] }
  0xe7   :  { %1589 = vmatpush.bf16.msrb.mxu2 %v4280_v1  ;;  %1564 = vmatpush.bf16.msrb.mxu0 %v4500_v12  ;;  %v5052_v1 = vor.u32 %v6131_v55, %v5051_v54  ;;  %v5132_v54 = vor.u32 %v6151_v42, %v5131_v41 }
  0xe9   :  { %1577 = vmatpush.bf16.msrb.mxu1 %v3992_v14  ;;  %v6642_v48 = vpop.f32.mrf.mxu3 }
  0xeb   :  { %1590 = vmatpush.bf16.msrb.mxu2 %v4248_v15  ;;  %1565 = vmatpush.bf16.msrb.mxu0 %v4468_v31  ;;  %v1359_v12 = vpop.f32.mrf.mxu0  ;;  %v4747_v15 = vld [vmem:[#allocation8 + $0x60] sm:$0xf]  ;;  %v6087_v31 = vld [vmem:[#allocation8 + $0x16c] sm:$0xf0] }
  0xec   :  { %v4748_v33 = vor.u32 %v6055_v25, %v4747_v15  ;;  %v4972_v15 = vor.u32 %v6111_v6, %v4971_v4  ;;  %v5243_v6 = vld [vmem:[#allocation8 + $0x440] sm:$0xf] }
  0xed   :  { %1578 = vmatpush.bf16.msrb.mxu1 %v3960_v35  ;;  %v6635_v16 = vpop.f32.mrf.mxu1  ;;  %v5003_v35 = vld [vmem:[#allocation8 + $0x260] sm:$0xf] }
  0xee   :  { %1566 = vmatmul.bf16.vlgmr.msrb.gmra.mxu0 %v6594_v17  ;;  %v311_v17 = vperm.slane %v6632_v0, 0 }
  0xef   :  { %1591 = vmatpush.bf16.msrb.mxu2 %v4216_v36  ;;  %3172 = vmatpush.bf16.msra.mxu0 %v4812_v39  ;;  %v6119_v36 = vld [vmem:[#allocation8 + $0x26c] sm:$0xf0]  ;;  %v4876_v39 = vor.u32 %v6087_v31, %v4875_v30 }
  0xf0   :  { %1579 = vmatmul.bf16.vlgmr.msrb.gmra.mxu1 %v6596_v18  ;;  %v6059_v18 = vld [vmem:[#allocation8 + $0x8c] sm:$0xf0]  ;;  %v1308_v38 = vadd.f32 %v6620_v63, %v311_v17  ;;  %v5004_v49 = vor.u32 %v6119_v36, %v5003_v35  ;;  %v5323_v17 = vld [vmem:[#allocation8 + $0x4e0] sm:$0xf]  ;;  %v5452_v35 = vor.u32 %v6231_v21, %v5451_v19 }
  0xf1   :  { %3185 = vmatpush.bf16.msra.mxu1 %v4940_v43  ;;  %v4764_v14 = vor.u32 %v6059_v18, %v4763_v3  ;;  %v1347_v43 = vadd.f32 %v6626_v27, %v312_v29  ;;  %v4860_v27 = vor.u32 %v6083_v45, %v4859_v44  ;;  %v6043_v3 = vld [vmem:[#allocation8 + $0xc] sm:$0xf0]  ;;  %v4827_v18 = vld [vmem:[#allocation8 + $0x100] sm:$0xf] }
  0xf2   :  { %1592 = vmatmul.bf16.vlgmr.msrb.gmra.mxu2 %v6598_v20  ;;  %v6159_v20 = vld [vmem:[#allocation8 + $0x3ac] sm:$0xf0]  ;;  %v1321_v55 = vadd.f32 %v6622_v5, %v1308_v38  ;;  %v4828_v28 = vor.u32 %v6075_v11, %v4827_v18  ;;  %v5291_v44 = vld [vmem:[#allocation8 + $0x4a0] sm:$0xf] }
  0xf3   :  { %3198 = vmatpush.bf16.msra.mxu2 %v5068_v50  ;;  %3173 = vmatpush.bf16.msra.mxu0 %v4796_v51  ;;  %v5164_v23 = vor.u32 %v6159_v20, %v5163_v9  ;;  %v1361_v47 = vpop.f32.mrf.mxu0  ;;  %v4732_v50 = vor.u32 %v6051_v40, %v4731_v34  ;;  %v4715_v51 = vld [vmem:[#allocation8 + $0x20] sm:$0xf]  ;;  %v1360_v59 = vadd.f32 %v1359_v12, %v1347_v43  ;;  %v6143_v20 = vld [vmem:[#allocation8 + $0x32c] sm:$0xf0] }
  0xf4   :  { %v1334_v5 = vadd.f32 %v6624_v22, %v1321_v55  ;;  %v5099_v9 = vld [vmem:[#allocation8 + $0x320] sm:$0xf]  ;;  %v6199_v12 = vld [vmem:[#allocation8 + $0x4ec] sm:$0xf0] }
  0xf5   :  { %3186 = vmatpush.bf16.msra.mxu1 %v4924_v57  ;;  %3213 = vmatpush.bf16.msra.mxu3 %v5164_v23  ;;  %v6640_v46 = vpop.f32.mrf.mxu2  ;;  %v1374_v63 = vpop.f32.mrf.mxu1  ;;  %v5115_v57 = vld [vmem:[#allocation8 + $0x340] sm:$0xf]  ;;  %v1373_v10 = vadd.f32 %v6635_v16, %v1360_v59  ;;  %v4700_v23 = vor.u32 %v6043_v3, %v4699_v62  ;;  %v6107_v22 = vld [vmem:[#allocation8 + $0x20c] sm:$0xf0]  ;;  %v5100_v25 = vor.u32 %v6143_v20, %v5099_v9 }
  0xf6   :  { %v5116_v7 = vor.u32 %v6147_v58, %v5115_v57  ;;  %v1610_v26 = vmax.f32 %v1334_v5, 0.0  ;;  %v5324_v29 = vor.u32 %v6199_v12, %v5323_v17  ;;  %v5083_v16 = vld [vmem:[#allocation8 + $0x300] sm:$0xf]  ;;  %v6139_v30 = vld [vmem:[#allocation8 + $0x30c] sm:$0xf0]  ;;  %v314_v57 = vperm.slane %v6632_v0, 3 }
  0xf7   :  { %3199 = vmatpush.bf16.msra.mxu2 %v5052_v1  ;;  %3174 = vmatpush.bf16.msra.mxu0 %v4780_v2  ;;  %v4988_v1 = vor.u32 %v6115_v53, %v4987_v52  ;;  %v4716_v2 = vor.u32 %v6047_v56, %v4715_v51  ;;  %v1611_v31 = vmax.f32 %v1373_v10, 0.0  ;;  %v6195_v34 = vld [vmem:[#allocation8 + $0x4cc] sm:$0xf0]  ;;  %v5275_v52 = vld [vmem:[#allocation8 + $0x480] sm:$0xf] }
  0xf8   :  { %v6227_v38 = vld [vmem:[#allocation8 + $0x5cc] sm:$0xf0]  ;;  %v6648_v40 = vpack.c.bf16 %v1610_v26, %v1610_v26  ;;  %v5259_v59 = vld [vmem:[#allocation8 + $0x460] sm:$0xf] }
  0xf9   :  { %3187 = vmatpush.bf16.msra.mxu1 %v4908_v8  ;;  %3214 = vmatpush.bf16.msra.mxu3 %v5148_v37  ;;  %v4844_v8 = vor.u32 %v6079_v61, %v4843_v60  ;;  %v5435_v37 = vld [vmem:[#allocation8 + $0x5c0] sm:$0xf]  ;;  %v6650_v42 = vpack.c.bf16 %v1611_v31, %v1611_v31  ;;  %v6191_v45 = vld [vmem:[#allocation8 + $0x4ac] sm:$0xf0] }
  0xfa   :  { %v5436_v47 = vor.u32 %v6227_v38, %v5435_v37  ;;  %v5292_v51 = vor.u32 %v6191_v45, %v5291_v44  ;;  %v6187_v53 = vld [vmem:[#allocation8 + $0x48c] sm:$0xf0]  ;;  %v5579_v18 = vld [vmem:[#allocation8 + $0x6e0] sm:$0xf] }
  0xfb   :  { %3200 = vmatpush.bf16.msra.mxu2 %v5036_v13  ;;  %3175 = vmatpush.bf16.msra.mxu0 %v4764_v14  ;;  %v1400_v14 = vpop.f32.mrf.mxu3  ;;  %v6219_v55 = vld [vmem:[#allocation8 + $0x58c] sm:$0xf0]  ;;  %v5276_v56 = vor.u32 %v6187_v53, %v5275_v52  ;;  %v5371_v20 = vld [vmem:[#allocation8 + $0x540] sm:$0xf] }
  0xfc   :  { %v6183_v60 = vld [vmem:[#allocation8 + $0x46c] sm:$0xf0]  ;;  %v5547_v37 = vld [vmem:[#allocation8 + $0x6a0] sm:$0xf] }
  0xfd   :  { %3188 = vmatpush.bf16.msra.mxu1 %v4892_v24  ;;  %3215 = vmatpush.bf16.msra.mxu3 %v5132_v54  ;;  %v1387_v13 = vpop.f32.mrf.mxu2  ;;  %v4955_v24 = vld [vmem:[#allocation8 + $0x200] sm:$0xf]  ;;  %v5260_v4 = vor.u32 %v6183_v60, %v5259_v59  ;;  %v6179_v5 = vld [vmem:[#allocation8 + $0x44c] sm:$0xf0] }
  0xfe   :  { %v4956_v36 = vor.u32 %v6107_v22, %v4955_v24  ;;  %v5403_v54 = vld [vmem:[#allocation8 + $0x580] sm:$0xf]  ;;  %v6263_v9 = vld [vmem:[#allocation8 + $0x6ec] sm:$0xf0]  ;;  %v5244_v14 = vor.u32 %v6179_v5, %v5243_v6  ;;  %v6061_v5 = vld [vmem:[#allocation8 + $0xa4] sm:$0xf] }
  0xff   :  { %3201 = vmatpush.bf16.msra.mxu2 %v5020_v32  ;;  %3176 = vmatpush.bf16.msra.mxu0 %v4748_v33  ;;  %v313_v32 = vperm.slane %v6632_v0, 2  ;;  %v5307_v33 = vld [vmem:[#allocation8 + $0x4c0] sm:$0xf]  ;;  %v5404_v61 = vor.u32 %v6219_v55, %v5403_v54  ;;  %v6211_v10 = vld [vmem:[#allocation8 + $0x54c] sm:$0xf0]  ;;  %v5580_v11 = vor.u32 %v6263_v9, %v5579_v18 }
 0x100   :  { %v5308_v41 = vor.u32 %v6195_v34, %v5307_v33  ;;  %v6175_v21 = vld [vmem:[#allocation8 + $0x42c] sm:$0xf0]  ;;  %v5563_v24 = vld [vmem:[#allocation8 + $0x6c0] sm:$0xf]  ;;  %v6069_v34 = vld [vmem:[#allocation8 + $0xe4] sm:$0xf] }
 0x101   :  { %3189 = vmatpush.bf16.msra.mxu1 %v4876_v39  ;;  %3216 = vmatpush.bf16.msra.mxu3 %v5116_v7  ;;  %v5084_v39 = vor.u32 %v6139_v30, %v5083_v16  ;;  %v1386_v43 = vadd.f32 %v6640_v46, %v313_v32  ;;  %v6259_v22 = vld [vmem:[#allocation8 + $0x6cc] sm:$0xf0]  ;;  %v5211_v30 = vld [vmem:[#allocation8 + $0x400] sm:$0xf] }
 0x102   :  { %v5564_v16 = vor.u32 %v6259_v22, %v5563_v24  ;;  %v6171_v31 = vld [vmem:[#allocation8 + $0x40c] sm:$0xf0]  ;;  %v5531_v55 = vld [vmem:[#allocation8 + $0x680] sm:$0xf] }
 0x103   :  { %3202 = vmatpush.bf16.msra.mxu2 %v5004_v49  ;;  %3177 = vmatpush.bf16.msra.mxu0 %v4732_v50  ;;  %v5419_v49 = vld [vmem:[#allocation8 + $0x5a0] sm:$0xf]  ;;  %v6223_v50 = vld [vmem:[#allocation8 + $0x5ac] sm:$0xf0]  ;;  %v1399_v63 = vadd.f32 %v6642_v48, %v1386_v43  ;;  %v5212_v53 = vor.u32 %v6171_v31, %v5211_v30 }
 0x104   :  { %v5420_v46 = vor.u32 %v6223_v50, %v5419_v49  ;;  %v1450_v12 = vpop.f32.mrf.mxu3  ;;  %v6255_v38 = vld [vmem:[#allocation8 + $0x6ac] sm:$0xf0]  ;;  %v5339_v43 = vld [vmem:[#allocation8 + $0x500] sm:$0xf] }
 0x105   :  { %3190 = vmatpush.bf16.msra.mxu1 %v4860_v27  ;;  %3217 = vmatpush.bf16.msra.mxu3 %v5100_v25  ;;  %v6203_v44 = vld [vmem:[#allocation8 + $0x50c] sm:$0xf0]  ;;  %v5548_v45 = vor.u32 %v6255_v38, %v5547_v37  ;;  %v5675_v6 = vld [vmem:[#allocation8 + $0x7a0] sm:$0xf] }
 0x106   :  { %v5340_v54 = vor.u32 %v6203_v44, %v5339_v43  ;;  %v6283_v22 = vld [vmem:[#allocation8 + $0x78c] sm:$0xf0]  ;;  %v5483_v30 = vld [vmem:[#allocation8 + $0x620] sm:$0xf]  ;;  %v6085_v43 = vld [vmem:[#allocation8 + $0x164] sm:$0xf] }
 0x107   :  { %3203 = vmatpush.bf16.msra.mxu2 %v4988_v1  ;;  %3178 = vmatpush.bf16.msra.mxu0 %v4716_v2  ;;  %v5387_v1 = vld [vmem:[#allocation8 + $0x560] sm:$0xf]  ;;  %v6215_v2 = vld [vmem:[#allocation8 + $0x56c] sm:$0xf0]  ;;  %v4877_v44 = vld [vmem:[#allocation8 + $0x170] sm:$0xf0] }
 0x108   :  { %v6239_v31 = vld [vmem:[#allocation8 + $0x62c] sm:$0xf0] }
 0x109   :  { %3191 = vmatpush.bf16.msra.mxu1 %v4844_v8  ;;  %3218 = vmatpush.bf16.msra.mxu3 %v5084_v39  ;;  %v5388_v8 = vor.u32 %v6215_v2, %v5387_v1  ;;  %v5707_v39 = vld [vmem:[#allocation8 + $0x7e0] sm:$0xf]  ;;  %v4925_v1 = vld [vmem:[#allocation8 + $0x1d0] sm:$0xf0]  ;;  %v6279_v37 = vld [vmem:[#allocation8 + $0x76c] sm:$0xf0] }
 0x10b   :  { %3204 = vmatpush.bf16.msra.mxu2 %v4972_v15  ;;  %3179 = vmatpush.bf16.msra.mxu0 %v4700_v23  ;;  %v1411_v27 = vpop.f32.mrf.mxu0  ;;  %v5227_v15 = vld [vmem:[#allocation8 + $0x420] sm:$0xf]  ;;  %v5372_v23 = vor.u32 %v6211_v10, %v5371_v20  ;;  %v6287_v20 = vld [vmem:[#allocation8 + $0x7ac] sm:$0xf0]  ;;  %v6093_v10 = vld [vmem:[#allocation8 + $0x1a4] sm:$0xf] }
 0x10c   :  { %v1412_v58 = vadd.f32 %v1411_v27, %v1399_v63  ;;  %v5228_v33 = vor.u32 %v6175_v21, %v5227_v15  ;;  %v1452_v50 = vpop.f32.mrf.mxu3  ;;  %v4941_v63 = vld [vmem:[#allocation8 + $0x1f0] sm:$0xf0]  ;;  %v6251_v27 = vld [vmem:[#allocation8 + $0x68c] sm:$0xf0]  ;;  %v5659_v15 = vld [vmem:[#allocation8 + $0x780] sm:$0xf] }
 0x10d   :  { %3192 = vmatpush.bf16.msra.mxu1 %v4828_v28  ;;  %v1424_v62 = vpop.f32.mrf.mxu1  ;;  %v5355_v28 = vld [vmem:[#allocation8 + $0x520] sm:$0xf]  ;;  %v5532_v60 = vor.u32 %v6251_v27, %v5531_v55  ;;  %v4765_v21 = vld [vmem:[#allocation8 + $0x90] sm:$0xf0]  ;;  %v6275_v27 = vld [vmem:[#allocation8 + $0x74c] sm:$0xf0] }
 0x10e   :  { %3180 = vmatmul.bf16.vlgmr.msra.gmra.mxu0 %v6648_v40  ;;  %v1612_v48 = vmax.f32 %v1412_v58, 0.0  ;;  %v1425_v3 = vadd.f32 %v1424_v62, %v314_v57  ;;  %v6065_v57 = vld [vmem:[#allocation8 + $0xc4] sm:$0xf]  ;;  %v4797_v58 = vld [vmem:[#allocation8 + $0xd0] sm:$0xf0] }
 0x10f   :  { %3224 = vmatpush.bf16.msrb.mxu0 %v5324_v29  ;;  %3205 = vmatpush.bf16.msra.mxu2 %v4956_v36  ;;  %v6207_v29 = vld [vmem:[#allocation8 + $0x52c] sm:$0xf0]  ;;  %v6097_v62 = vld [vmem:[#allocation8 + $0x1c4] sm:$0xf]  ;;  %v4733_v50 = vld [vmem:[#allocation8 + $0x50] sm:$0xf0] }
 0x110   :  { %3193 = vmatmul.bf16.vlgmr.msra.gmra.mxu1 %v6650_v42  ;;  %v6657_v7 = vpack.c.bf16 %v1612_v48, %v1612_v48  ;;  %v5356_v36 = vor.u32 %v6207_v29, %v5355_v28  ;;  %v4800_v48 = vor.u32 %v6065_v57, %v4797_v58  ;;  %v4928_v18 = vor.u32 %v6097_v62, %v4925_v1  ;;  %v5069_v57 = vld [vmem:[#allocation8 + $0x2f0] sm:$0xf0]  ;;  %v6081_v58 = vld [vmem:[#allocation8 + $0x144] sm:$0xf] }
 0x111   :  { %3237 = vmatpush.bf16.msrb.mxu1 %v5452_v35  ;;  %v4813_v35 = vld [vmem:[#allocation8 + $0xf0] sm:$0xf0]  ;;  %v5660_v28 = vor.u32 %v6283_v22, %v5659_v15  ;;  %v315_v29 = vperm.slane %v6632_v0, 4 }
 0x112   :  { %3206 = vmatmul.bf16.vlgmr.msra.gmra.mxu2 %v6657_v7  ;;  %v4701_v15 = vld [vmem:[#allocation8 + $0x10] sm:$0xf0] }
 0x113   :  { %3225 = vmatpush.bf16.msrb.mxu0 %v5308_v41  ;;  %v1413_v19 = vpop.f32.mrf.mxu0  ;;  %3250 = vmatpush.bf16.msrb.mxu2 %v5580_v11  ;;  %v4909_v11 = vld [vmem:[#allocation8 + $0x1b0] sm:$0xf0] }
 0x114   :  { %v6057_v19 = vld [vmem:[#allocation8 + $0x84] sm:$0xf]  ;;  %v5325_v22 = vld [vmem:[#allocation8 + $0x4f0] sm:$0xf0] }
 0x115   :  { %3238 = vmatpush.bf16.msrb.mxu1 %v5436_v47  ;;  %v1437_v17 = vpop.f32.mrf.mxu2  ;;  %v1426_v26 = vpop.f32.mrf.mxu1  ;;  %v6295_v47 = vld [vmem:[#allocation8 + $0x7ec] sm:$0xf0] }
 0x116   :  { %v1438_v13 = vadd.f32 %v1437_v17, %v1425_v3  ;;  %v5708_v52 = vor.u32 %v6295_v47, %v5707_v39  ;;  %v5515_v3 = vld [vmem:[#allocation8 + $0x660] sm:$0xf]  ;;  %v5676_v17 = vor.u32 %v6287_v20, %v5675_v6  ;;  %v4893_v26 = vld [vmem:[#allocation8 + $0x190] sm:$0xf0] }
 0x117   :  { %3226 = vmatpush.bf16.msrb.mxu0 %v5292_v51  ;;  %3251 = vmatpush.bf16.msrb.mxu2 %v5564_v16  ;;  %v6101_v51 = vld [vmem:[#allocation8 + $0x1e4] sm:$0xf]  ;;  %v4768_v16 = vor.u32 %v6057_v19, %v4765_v21  ;;  %v4717_v6 = vld [vmem:[#allocation8 + $0x30] sm:$0xf0] }
 0x118   :  { %v1451_v25 = vadd.f32 %v1450_v12, %v1438_v13  ;;  %v4944_v59 = vor.u32 %v6101_v51, %v4941_v63  ;;  %3263 = vmatpush.bf16.msrb.mxu3 %v5708_v52  ;;  %v5499_v13 = vld [vmem:[#allocation8 + $0x640] sm:$0xf]  ;;  %v6235_v52 = vld [vmem:[#allocation8 + $0x60c] sm:$0xf0] }
 0x119   :  { %3239 = vmatpush.bf16.msrb.mxu1 %v5420_v46  ;;  %v4816_v46 = vor.u32 %v6069_v34, %v4813_v35  ;;  %v4749_v34 = vld [vmem:[#allocation8 + $0x70] sm:$0xf0]  ;;  %v5467_v63 = vld [vmem:[#allocation8 + $0x600] sm:$0xf] }
 0x11a   :  { %v1613_v32 = vmax.f32 %v1451_v25, 0.0  ;;  %v6089_v25 = vld [vmem:[#allocation8 + $0x184] sm:$0xf]  ;;  %v5468_v55 = vor.u32 %v6235_v52, %v5467_v63  ;;  %v5181_v63 = vld [vmem:[#allocation8 + $0x3d0] sm:$0xf0] }
 0x11b   :  { %3227 = vmatpush.bf16.msrb.mxu0 %v5276_v56  ;;  %3252 = vmatpush.bf16.msrb.mxu2 %v5548_v45  ;;  %v5691_v56 = vld [vmem:[#allocation8 + $0x7c0] sm:$0xf]  ;;  %v4896_v35 = vor.u32 %v6089_v25, %v4893_v26  ;;  %v6267_v26 = vld [vmem:[#allocation8 + $0x70c] sm:$0xf0] }
 0x11c   :  { %v6660_v41 = vpack.c.bf16 %v1613_v32, %v1613_v32  ;;  %v5643_v32 = vld [vmem:[#allocation8 + $0x760] sm:$0xf] }
 0x11d   :  { %3240 = vmatpush.bf16.msrb.mxu1 %v5404_v61  ;;  %v1439_v49 = vpop.f32.mrf.mxu2  ;;  %v6291_v61 = vld [vmem:[#allocation8 + $0x7cc] sm:$0xf0]  ;;  %v5644_v45 = vor.u32 %v6279_v37, %v5643_v32  ;;  %v5595_v25 = vld [vmem:[#allocation8 + $0x700] sm:$0xf]  ;;  %v4829_v32 = vld [vmem:[#allocation8 + $0x110] sm:$0xf0] }
 0x11e   :  { %3219 = vmatmul.bf16.vlgmr.msra.gmra.mxu3 %v6660_v41  ;;  %v5692_v2 = vor.u32 %v6291_v61, %v5691_v56  ;;  %v6049_v49 = vld [vmem:[#allocation8 + $0x44] sm:$0xf] }
 0x11f   :  { %3228 = vmatpush.bf16.msrb.mxu0 %v5260_v4  ;;  %v6247_v4 = vld [vmem:[#allocation8 + $0x66c] sm:$0xf0]  ;;  %3253 = vmatpush.bf16.msrb.mxu2 %v5532_v60  ;;  %v6133_v56 = vld [vmem:[#allocation8 + $0x2e4] sm:$0xf] }
 0x120   :  { %v5516_v9 = vor.u32 %v6247_v4, %v5515_v3  ;;  %3264 = vmatpush.bf16.msrb.mxu3 %v5692_v2  ;;  %v5072_v61 = vor.u32 %v6133_v56, %v5069_v57  ;;  %v4736_v2 = vor.u32 %v6049_v49, %v4733_v50  ;;  %v5611_v3 = vld [vmem:[#allocation8 + $0x720] sm:$0xf]  ;;  %v6271_v4 = vld [vmem:[#allocation8 + $0x72c] sm:$0xf0]  ;;  %v6161_v49 = vld [vmem:[#allocation8 + $0x3c4] sm:$0xf] }
 0x121   :  { %3241 = vmatpush.bf16.msrb.mxu1 %v5388_v8  ;;  %v4781_v8 = vld [vmem:[#allocation8 + $0xb0] sm:$0xf0]  ;;  %v6193_v50 = vld [vmem:[#allocation8 + $0x4c4] sm:$0xf] }
 0x122   :  { %v4784_v12 = vor.u32 %v6061_v5, %v4781_v8  ;;  %v6189_v56 = vld [vmem:[#allocation8 + $0x4a4] sm:$0xf]  ;;  %v5293_v57 = vld [vmem:[#allocation8 + $0x4b0] sm:$0xf0] }
 0x123   :  { %3229 = vmatpush.bf16.msrb.mxu0 %v5244_v14  ;;  %v6243_v14 = vld [vmem:[#allocation8 + $0x64c] sm:$0xf0]  ;;  %3254 = vmatpush.bf16.msrb.mxu2 %v5516_v9  ;;  %v5053_v9 = vld [vmem:[#allocation8 + $0x2d0] sm:$0xf0] }
 0x124   :  { %v5500_v24 = vor.u32 %v6243_v14, %v5499_v13  ;;  %3265 = vmatpush.bf16.msrb.mxu3 %v5676_v17  ;;  %v6664_v5 = vpop.f32.mrf.mxu3  ;;  %v6077_v17 = vld [vmem:[#allocation8 + $0x124] sm:$0xf]  ;;  %v5612_v13 = vor.u32 %v6271_v4, %v5611_v3  ;;  %v5277_v4 = vld [vmem:[#allocation8 + $0x490] sm:$0xf0] }
 0x125   :  { %3242 = vmatpush.bf16.msrb.mxu1 %v5372_v23  ;;  %v4912_v23 = vor.u32 %v6093_v10, %v4909_v11  ;;  %v6041_v14 = vld [vmem:[#allocation8 + $0x4] sm:$0xf] }
 0x126   :  { %v6185_v3 = vld [vmem:[#allocation8 + $0x484] sm:$0xf] }
 0x127   :  { %3230 = vmatpush.bf16.msrb.mxu0 %v5228_v33  ;;  %v6053_v33 = vld [vmem:[#allocation8 + $0x64] sm:$0xf]  ;;  %3255 = vmatpush.bf16.msrb.mxu2 %v5500_v24 }
 0x128   :  { %3266 = vmatpush.bf16.msrb.mxu3 %v5660_v28  ;;  %v4752_v51 = vor.u32 %v6053_v33, %v4749_v34  ;;  %v6197_v24 = vld [vmem:[#allocation8 + $0x4e4] sm:$0xf]  ;;  %v5596_v33 = vor.u32 %v6267_v26, %v5595_v25  ;;  %v5197_v34 = vld [vmem:[#allocation8 + $0x3f0] sm:$0xf0] }
 0x129   :  { %3243 = vmatpush.bf16.msrb.mxu1 %v5356_v36  ;;  %v5484_v36 = vor.u32 %v6239_v31, %v5483_v30  ;;  %v6165_v30 = vld [vmem:[#allocation8 + $0x3e4] sm:$0xf]  ;;  %v5245_v26 = vld [vmem:[#allocation8 + $0x450] sm:$0xf0] }
 0x12a   :  { %v6073_v31 = vld [vmem:[#allocation8 + $0x104] sm:$0xf]  ;;  %v5200_v37 = vor.u32 %v6165_v30, %v5197_v34 }
 0x12b   :  { %3231 = vmatpush.bf16.msrb.mxu0 %v5212_v53  ;;  %v1463_v38 = vpop.f32.mrf.mxu0  ;;  %v5627_v53 = vld [vmem:[#allocation8 + $0x740] sm:$0xf]  ;;  %3256 = vmatpush.bf16.msrb.mxu2 %v5484_v36  ;;  %v6177_v25 = vld [vmem:[#allocation8 + $0x444] sm:$0xf] }
 0x12c   :  { %v1464_v47 = vadd.f32 %v1463_v38, %v315_v29  ;;  %3267 = vmatpush.bf16.msrb.mxu3 %v5644_v45  ;;  %v5628_v60 = vor.u32 %v6275_v27, %v5627_v53  ;;  %v6125_v29 = vld [vmem:[#allocation8 + $0x2a4] sm:$0xf]  ;;  %v4704_v38 = vor.u32 %v6041_v14, %v4701_v15  ;;  %v5184_v53 = vor.u32 %v6161_v49, %v5181_v63  ;;  %v5133_v14 = vld [vmem:[#allocation8 + $0x370] sm:$0xf0] }
 0x12d   :  { %3244 = vmatpush.bf16.msrb.mxu1 %v5340_v54  ;;  %v1476_v39 = vpop.f32.mrf.mxu1  ;;  %v4880_v54 = vor.u32 %v6085_v43, %v4877_v44  ;;  %v1504_v43 = vpop.f32.mrf.mxu3  ;;  %v4832_v44 = vor.u32 %v6073_v31, %v4829_v32  ;;  %v6121_v45 = vld [vmem:[#allocation8 + $0x284] sm:$0xf]  ;;  %v5453_v31 = vld [vmem:[#allocation8 + $0x5f0] sm:$0xf0] }
 0x12e   :  { %v6157_v27 = vld [vmem:[#allocation8 + $0x3a4] sm:$0xf]  ;;  %v5229_v43 = vld [vmem:[#allocation8 + $0x430] sm:$0xf0] }
 0x12f   :  { %3276 = vmatpush.bf16.msra.mxu0 %v4816_v46  ;;  %v1477_v46 = vadd.f32 %v1476_v39, %v1464_v47  ;;  %3257 = vmatpush.bf16.msrb.mxu2 %v5468_v55  ;;  %v5328_v39 = vor.u32 %v6197_v24, %v5325_v22  ;;  %v5021_v47 = vld [vmem:[#allocation8 + $0x290] sm:$0xf0]  ;;  %v6145_v32 = vld [vmem:[#allocation8 + $0x344] sm:$0xf] }
 0x130   :  { %3268 = vmatpush.bf16.msrb.mxu3 %v5628_v60  ;;  %v5024_v52 = vor.u32 %v6121_v45, %v5021_v47  ;;  %v5005_v55 = vld [vmem:[#allocation8 + $0x270] sm:$0xf0]  ;;  %v6225_v49 = vld [vmem:[#allocation8 + $0x5c4] sm:$0xf] }
 0x131   :  { %3289 = vmatpush.bf16.msra.mxu1 %v4944_v59  ;;  %v4861_v59 = vld [vmem:[#allocation8 + $0x150] sm:$0xf0] }
 0x132   :  { %v4864_v8 = vor.u32 %v6081_v58, %v4861_v59  ;;  %v5165_v58 = vld [vmem:[#allocation8 + $0x3b0] sm:$0xf0] }
 0x133   :  { %3277 = vmatpush.bf16.msra.mxu0 %v4800_v48  ;;  %v6045_v48 = vld [vmem:[#allocation8 + $0x24] sm:$0xf]  ;;  %v1465_v10 = vpop.f32.mrf.mxu0  ;;  %3302 = vmatpush.bf16.msra.mxu2 %v5072_v61  ;;  %v5168_v60 = vor.u32 %v6157_v27, %v5165_v58  ;;  %v316_v61 = vperm.slane %v6632_v0, 5  ;;  %v5213_v58 = vld [vmem:[#allocation8 + $0x410] sm:$0xf0] }
 0x134   :  { %3269 = vmatpush.bf16.msrb.mxu3 %v5612_v13  ;;  %v6109_v10 = vld [vmem:[#allocation8 + $0x224] sm:$0xf]  ;;  %v5261_v13 = vld [vmem:[#allocation8 + $0x470] sm:$0xf0] }
 0x135   :  { %3290 = vmatpush.bf16.msra.mxu1 %v4928_v18  ;;  %v1489_v62 = vpop.f32.mrf.mxu2  ;;  %v6129_v18 = vld [vmem:[#allocation8 + $0x2c4] sm:$0xf]  ;;  %v1478_v11 = vpop.f32.mrf.mxu1 }
 0x136   :  { %v1490_v1 = vadd.f32 %v1489_v62, %v1477_v46  ;;  %v5056_v19 = vor.u32 %v6129_v18, %v5053_v9  ;;  %v5296_v62 = vor.u32 %v6189_v56, %v5293_v57  ;;  %v1503_v9 = vadd.f32 %v6664_v5, %v316_v61  ;;  %v4973_v11 = vld [vmem:[#allocation8 + $0x230] sm:$0xf0]  ;;  %v6169_v27 = vld [vmem:[#allocation8 + $0x404] sm:$0xf]  ;;  %v4819_v61 = vld [vmem:[#allocation8 + $0xe8] sm:$0xf] }
 0x137   :  { %3278 = vmatpush.bf16.msra.mxu0 %v4784_v12  ;;  %v4845_v12 = vld [vmem:[#allocation8 + $0x130] sm:$0xf0]  ;;  %v6137_v56 = vld [vmem:[#allocation8 + $0x304] sm:$0xf] }
 0x138   :  { %v1614_v20 = vmax.f32 %v1490_v1, 0.0  ;;  %v4848_v28 = vor.u32 %v6077_v17, %v4845_v12  ;;  %3303 = vmatpush.bf16.msra.mxu2 %v5056_v19  ;;  %3270 = vmatpush.bf16.msrb.mxu3 %v5596_v33  ;;  %v6113_v1 = vld [vmem:[#allocation8 + $0x244] sm:$0xf]  ;;  %v4976_v19 = vor.u32 %v6109_v10, %v4973_v11  ;;  %v5117_v33 = vld [vmem:[#allocation8 + $0x350] sm:$0xf0] }
 0x139   :  { %3291 = vmatpush.bf16.msra.mxu1 %v4912_v23  ;;  %v4720_v23 = vor.u32 %v6045_v48, %v4717_v6  ;;  %v6153_v48 = vld [vmem:[#allocation8 + $0x384] sm:$0xf]  ;;  %v5149_v6 = vld [vmem:[#allocation8 + $0x390] sm:$0xf0] }
 0x13a   :  { %v6666_v21 = vpack.c.bf16 %v1614_v20, %v1614_v20  ;;  %v5152_v18 = vor.u32 %v6153_v48, %v5149_v6  ;;  %v5280_v20 = vor.u32 %v6185_v3, %v5277_v4  ;;  %v6149_v17 = vld [vmem:[#allocation8 + $0x364] sm:$0xf]  ;;  %v5085_v57 = vld [vmem:[#allocation8 + $0x310] sm:$0xf0] }
 0x13b   :  { %3279 = vmatpush.bf16.msra.mxu0 %v4768_v16  ;;  %v5037_v16 = vld [vmem:[#allocation8 + $0x2b0] sm:$0xf0]  ;;  %v6181_v12 = vld [vmem:[#allocation8 + $0x464] sm:$0xf] }
 0x13c   :  { %3232 = vmatmul.bf16.vlgmr.msrb.gmra.mxu0 %v6666_v21  ;;  %v5040_v36 = vor.u32 %v6125_v29, %v5037_v16  ;;  %3315 = vmatpush.bf16.msra.mxu3 %v5200_v37  ;;  %v5264_v5 = vor.u32 %v6181_v12, %v5261_v13  ;;  %v6105_v29 = vld [vmem:[#allocation8 + $0x204] sm:$0xf]  ;;  %v4957_v16 = vld [vmem:[#allocation8 + $0x210] sm:$0xf0]  ;;  %v5248_v37 = vor.u32 %v6177_v25, %v5245_v26  ;;  %v317_v13 = vperm.slane %v6632_v0, 6 }
 0x13d   :  { %3292 = vmatpush.bf16.msra.mxu1 %v4896_v35  ;;  %v1491_v35 = vpop.f32.mrf.mxu2  ;;  %v4960_v34 = vor.u32 %v6105_v29, %v4957_v16  ;;  %v6217_v6 = vld [vmem:[#allocation8 + $0x584] sm:$0xf]  ;;  %v5389_v12 = vld [vmem:[#allocation8 + $0x570] sm:$0xf0]  ;;  %v4771_v26 = vld [vmem:[#allocation8 + $0x88] sm:$0xf] }
 0x13e   :  { %3304 = vmatpush.bf16.msra.mxu2 %v5040_v36  ;;  %v5120_v35 = vor.u32 %v6145_v32, %v5117_v33  ;;  %v6205_v0 = vld [vmem:[#allocation8 + $0x524] sm:$0xf]  ;;  %v5357_v16 = vld [vmem:[#allocation8 + $0x530] sm:$0xf0]  ;;  %v6056_v32 = vld [vmem:[#allocation8 + $0x74] sm:$0xf0] }
 0x13f   :  { %3280 = vmatpush.bf16.msra.mxu0 %v4752_v51  ;;  %v5309_v51 = vld [vmem:[#allocation8 + $0x4d0] sm:$0xf0] }
 0x140   :  { %v5312_v46 = vor.u32 %v6193_v50, %v5309_v51  ;;  %3316 = vmatpush.bf16.msra.mxu3 %v5184_v53  ;;  %v5437_v50 = vld [vmem:[#allocation8 + $0x5d0] sm:$0xf0] }
 0x141   :  { %3293 = vmatpush.bf16.msra.mxu1 %v4880_v54  ;;  %v6117_v54 = vld [vmem:[#allocation8 + $0x264] sm:$0xf]  ;;  %v5101_v51 = vld [vmem:[#allocation8 + $0x330] sm:$0xf0] }
 0x142   :  { %3305 = vmatpush.bf16.msra.mxu2 %v5024_v52  ;;  %v5008_v59 = vor.u32 %v6117_v54, %v5005_v55  ;;  %v5440_v55 = vor.u32 %v6225_v49, %v5437_v50  ;;  %v5341_v49 = vld [vmem:[#allocation8 + $0x510] sm:$0xf0]  ;;  %v4739_v50 = vld [vmem:[#allocation8 + $0x48] sm:$0xf] }
 0x143   :  { %3281 = vmatpush.bf16.msra.mxu0 %v4736_v2  ;;  %v4989_v2 = vld [vmem:[#allocation8 + $0x250] sm:$0xf0] }
 0x144   :  { %3317 = vmatpush.bf16.msra.mxu3 %v5168_v60  ;;  %v1554_v63 = vpop.f32.mrf.mxu3  ;;  %v5421_v60 = vld [vmem:[#allocation8 + $0x5b0] sm:$0xf0] }
 0x145   :  { %3294 = vmatpush.bf16.msra.mxu1 %v4864_v8  ;;  %v4992_v8 = vor.u32 %v6113_v1, %v4989_v2  ;;  %v5088_v1 = vor.u32 %v6137_v56, %v5085_v57  ;;  %v5216_v2 = vor.u32 %v6169_v27, %v5213_v58  ;;  %v6257_v56 = vld [vmem:[#allocation8 + $0x6c4] sm:$0xf]  ;;  %v5565_v57 = vld [vmem:[#allocation8 + $0x6d0] sm:$0xf0] }
 0x146   :  { %3306 = vmatpush.bf16.msra.mxu2 %v5008_v59  ;;  %v6221_v59 = vld [vmem:[#allocation8 + $0x5a4] sm:$0xf] }
 0x147   :  { %3282 = vmatpush.bf16.msra.mxu0 %v4720_v23  ;;  %v5136_v23 = vor.u32 %v6149_v17, %v5133_v14  ;;  %v5424_v48 = vor.u32 %v6221_v59, %v5421_v60  ;;  %v6213_v17 = vld [vmem:[#allocation8 + $0x564] sm:$0xf]  ;;  %v4787_v14 = vld [vmem:[#allocation8 + $0xa8] sm:$0xf] }
 0x148   :  { %3318 = vmatpush.bf16.msra.mxu3 %v5152_v18  ;;  %v4723_v60 = vld [vmem:[#allocation8 + $0x28] sm:$0xf] }
 0x149   :  { %3295 = vmatpush.bf16.msra.mxu1 %v4848_v28  ;;  %v6229_v28 = vld [vmem:[#allocation8 + $0x5e4] sm:$0xf] }
 0x14a   :  { %3307 = vmatpush.bf16.msra.mxu2 %v4992_v8  ;;  %v5405_v8 = vld [vmem:[#allocation8 + $0x590] sm:$0xf0] }
 0x14b   :  { %3283 = vmatpush.bf16.msra.mxu0 %v4704_v38  ;;  %v1515_v15 = vpop.f32.mrf.mxu0  ;;  %v5456_v38 = vor.u32 %v6229_v28, %v5453_v31  ;;  %v5408_v10 = vor.u32 %v6217_v6, %v5405_v8  ;;  %v4755_v31 = vld [vmem:[#allocation8 + $0x68] sm:$0xf]  ;;  %v5568_v6 = vor.u32 %v6257_v56, %v5565_v57  ;;  %v6241_v57 = vld [vmem:[#allocation8 + $0x644] sm:$0xf] }
 0x14c   :  { %v1516_v24 = vadd.f32 %v1515_v15, %v1503_v9  ;;  %3319 = vmatpush.bf16.msra.mxu3 %v5136_v23  ;;  %v1556_v18 = vpop.f32.mrf.mxu3  ;;  %v4803_v9 = vld [vmem:[#allocation8 + $0xc8] sm:$0xf]  ;;  %v6064_v15 = vld [vmem:[#allocation8 + $0xb4] sm:$0xf0] }
 0x14d   :  { %3296 = vmatpush.bf16.msra.mxu1 %v4832_v44  ;;  %v1528_v22 = vpop.f32.mrf.mxu1  ;;  %v6141_v44 = vld [vmem:[#allocation8 + $0x324] sm:$0xf]  ;;  %v4788_v23 = vor.u32 %v6064_v15, %v4787_v14  ;;  %v6044_v14 = vld [vmem:[#allocation8 + $0x14] sm:$0xf0]  ;;  %v4915_v15 = vld [vmem:[#allocation8 + $0x1a8] sm:$0xf] }
 0x14e   :  { %3284 = vmatmul.bf16.vlgmr.msra.gmra.mxu0 %v6648_v40  ;;  %v1529_v30 = vadd.f32 %v1528_v22, %v1516_v24  ;;  %3308 = vmatpush.bf16.msra.mxu2 %v4976_v19  ;;  %v5104_v53 = vor.u32 %v6141_v44, %v5101_v51  ;;  %v5392_v19 = vor.u32 %v6213_v17, %v5389_v12  ;;  %v6209_v24 = vld [vmem:[#allocation8 + $0x544] sm:$0xf]  ;;  %v5373_v22 = vld [vmem:[#allocation8 + $0x550] sm:$0xf0]  ;;  %v6052_v51 = vld [vmem:[#allocation8 + $0x54] sm:$0xf0] }
 0x14f   :  { %3328 = vmatpush.bf16.msrb.mxu0 %v5328_v39  ;;  %v6173_v39 = vld [vmem:[#allocation8 + $0x424] sm:$0xf]  ;;  %v5376_v28 = vor.u32 %v6209_v24, %v5373_v22  ;;  %v4740_v58 = vor.u32 %v6052_v51, %v4739_v50  ;;  %v5709_v12 = vld [vmem:[#allocation8 + $0x7f0] sm:$0xf0]  ;;  %v5331_v22 = vld [vmem:[#allocation8 + $0x4e8] sm:$0xf] }
 0x150   :  { %v1615_v36 = vmax.f32 %v1529_v30, 0.0  ;;  %3320 = vmatpush.bf16.msra.mxu3 %v5120_v35  ;;  %v5232_v54 = vor.u32 %v6173_v39, %v5229_v43  ;;  %v6261_v39 = vld [vmem:[#allocation8 + $0x6e4] sm:$0xf]  ;;  %v5581_v43 = vld [vmem:[#allocation8 + $0x6f0] sm:$0xf0] }
 0x151   :  { %v6201_v44 = vld [vmem:[#allocation8 + $0x504] sm:$0xf]  ;;  %v5677_v51 = vld [vmem:[#allocation8 + $0x7b0] sm:$0xf0] }
 0x152   :  { %v6672_v45 = vpack.c.bf16 %v1615_v36, %v1615_v36  ;;  %3309 = vmatpush.bf16.msra.mxu2 %v4960_v34  ;;  %v6343_v34 = vld [vmem:[#allocation7] sm:$0xff]  ;;  %v5344_v27 = vor.u32 %v6201_v44, %v5341_v49  ;;  %v6253_v18 = vld [vmem:[#allocation8 + $0x6a4] sm:$0xf] }
 0x153   :  { %3329 = vmatpush.bf16.msrb.mxu0 %v5312_v46  ;;  %v1517_v52 = vpop.f32.mrf.mxu0  ;;  %v318_v35 = vperm.slane %v6343_v34, 7  ;;  %v6293_v17 = vld [vmem:[#allocation8 + $0x7e4] sm:$0xf]  ;;  %v4899_v34 = vld [vmem:[#allocation8 + $0x188] sm:$0xf] }
 0x154   :  { %3245 = vmatmul.bf16.vlgmr.msrb.gmra.mxu1 %v6672_v45  ;;  %3321 = vmatpush.bf16.msra.mxu3 %v5104_v53  ;;  %v4947_v53 = vld [vmem:[#allocation8 + $0x1e8] sm:$0xf]  ;;  %v6245_v44 = vld [vmem:[#allocation8 + $0x664] sm:$0xf] }
 0x155   :  { %v1541_v47 = vpop.f32.mrf.mxu2  ;;  %v1530_v46 = vpop.f32.mrf.mxu1  ;;  %3341 = vmatpush.bf16.msrb.mxu1 %v5456_v38  ;;  %v5360_v38 = vor.u32 %v6205_v0, %v5357_v16  ;;  %v6285_v50 = vld [vmem:[#allocation8 + $0x7a4] sm:$0xf] }
 0x156   :  { %v1542_v25 = vadd.f32 %v1541_v47, %v317_v13  ;;  %v4756_v47 = vor.u32 %v6056_v32, %v4755_v31  ;;  %v4707_v13 = vld [vmem:[#allocation8 + $0x8] sm:$0xf]  ;;  %v5693_v31 = vld [vmem:[#allocation8 + $0x7d0] sm:$0xf0]  ;;  %v5680_v56 = vor.u32 %v6285_v50, %v5677_v51  ;;  %v6269_v51 = vld [vmem:[#allocation8 + $0x724] sm:$0xf] }
 0x157   :  { %3330 = vmatpush.bf16.msrb.mxu0 %v5296_v62  ;;  %v6072_v62 = vld [vmem:[#allocation8 + $0xf4] sm:$0xf0]  ;;  %v4708_v0 = vor.u32 %v6044_v14, %v4707_v13  ;;  %v4851_v13 = vld [vmem:[#allocation8 + $0x128] sm:$0xf] }
 0x158   :  { %v4820_v3 = vor.u32 %v6072_v62, %v4819_v61  ;;  %3322 = vmatpush.bf16.msra.mxu3 %v5088_v1  ;;  %v1555_v30 = vadd.f32 %v1554_v63, %v1542_v25  ;;  %v6104_v63 = vld [vmem:[#allocation8 + $0x1f4] sm:$0xf0]  ;;  %v4931_v1 = vld [vmem:[#allocation8 + $0x1c8] sm:$0xf] }
 0x159   :  { %3342 = vmatpush.bf16.msrb.mxu1 %v5440_v55  ;;  %v4948_v59 = vor.u32 %v6104_v63, %v4947_v53  ;;  %v6048_v62 = vld [vmem:[#allocation8 + $0x34] sm:$0xf0]  ;;  %v4883_v53 = vld [vmem:[#allocation8 + $0x168] sm:$0xf] }
 0x15a   :  { %v6200_v25 = vld [vmem:[#allocation8 + $0x4f4] sm:$0xf0] }
 0x15b   :  { %3331 = vmatpush.bf16.msrb.mxu0 %v5280_v20  ;;  %v6068_v20 = vld [vmem:[#allocation8 + $0xd4] sm:$0xf0] }
 0x15c   :  { %v4804_v11 = vor.u32 %v6068_v20, %v4803_v9  ;;  %v5549_v9 = vld [vmem:[#allocation8 + $0x6b0] sm:$0xf0]  ;;  %v6088_v63 = vld [vmem:[#allocation8 + $0x174] sm:$0xf0] }
 0x15d   :  { %v1543_v4 = vpop.f32.mrf.mxu2  ;;  %3343 = vmatpush.bf16.msrb.mxu1 %v5424_v48  ;;  %v5552_v24 = vor.u32 %v6253_v18, %v5549_v9  ;;  %v6237_v18 = vld [vmem:[#allocation8 + $0x624] sm:$0xf]  ;;  %v5485_v9 = vld [vmem:[#allocation8 + $0x630] sm:$0xf0]  ;;  %v6080_v14 = vld [vmem:[#allocation8 + $0x134] sm:$0xf0] }
 0x15f   :  { %3332 = vmatpush.bf16.msrb.mxu0 %v5264_v5  ;;  %v6060_v5 = vld [vmem:[#allocation8 + $0x94] sm:$0xf0] }
 0x160   :  { %v4772_v29 = vor.u32 %v6060_v5, %v4771_v26  ;;  %v5712_v26 = vor.u32 %v6293_v17, %v5709_v12  ;;  %v6249_v5 = vld [vmem:[#allocation8 + $0x684] sm:$0xf] }
 0x161   :  { %3344 = vmatpush.bf16.msrb.mxu1 %v5408_v10  ;;  %v4724_v10 = vor.u32 %v6048_v62, %v4723_v60  ;;  %v6281_v60 = vld [vmem:[#allocation8 + $0x784] sm:$0xf] }
 0x163   :  { %3333 = vmatpush.bf16.msrb.mxu0 %v5248_v37 }
 0x164   :  { %3297 = vmatmul.bf16.vlgmr.msra.gmra.mxu1 %v6650_v42 }
 0x165   :  { %3345 = vmatpush.bf16.msrb.mxu1 %v5392_v19  ;;  %v6096_v19 = vld [vmem:[#allocation8 + $0x1b4] sm:$0xf0] }
 0x166   :  { %v4916_v16 = vor.u32 %v6096_v19, %v4915_v15  ;;  %v5488_v15 = vor.u32 %v6237_v18, %v5485_v9  ;;  %v5267_v19 = vld [vmem:[#allocation8 + $0x468] sm:$0xf]  ;;  %v6168_v18 = vld [vmem:[#allocation8 + $0x3f4] sm:$0xf0] }
 0x167   :  { %3334 = vmatpush.bf16.msrb.mxu0 %v5232_v54  ;;  %v5584_v54 = vor.u32 %v6261_v39, %v5581_v43  ;;  %v6196_v39 = vld [vmem:[#allocation8 + $0x4d4] sm:$0xf0]  ;;  %v5219_v9 = vld [vmem:[#allocation8 + $0x408] sm:$0xf] }
 0x169   :  { %3346 = vmatpush.bf16.msrb.mxu1 %v5376_v28  ;;  %v5533_v28 = vld [vmem:[#allocation8 + $0x690] sm:$0xf0] }
 0x16b   :  { %3335 = vmatpush.bf16.msrb.mxu0 %v5216_v2  ;;  %v1567_v33 = vpop.f32.mrf.mxu0  ;;  %v6100_v2 = vld [vmem:[#allocation8 + $0x1d4] sm:$0xf0] }
 0x16c   :  { %v1568_v36 = vadd.f32 %v1567_v33, %v1555_v30  ;;  %v6289_v30 = vld [vmem:[#allocation8 + $0x7c4] sm:$0xf]  ;;  %v5332_v33 = vor.u32 %v6200_v25, %v5331_v22  ;;  %v5469_v25 = vld [vmem:[#allocation8 + $0x610] sm:$0xf0] }
 0x16d   :  { %v1580_v37 = vpop.f32.mrf.mxu1  ;;  %3347 = vmatpush.bf16.msrb.mxu1 %v5360_v38  ;;  %v5315_v38 = vld [vmem:[#allocation8 + $0x4c8] sm:$0xf]  ;;  %v5696_v43 = vor.u32 %v6289_v30, %v5693_v31  ;;  %v6233_v22 = vld [vmem:[#allocation8 + $0x604] sm:$0xf]  ;;  %v6136_v30 = vld [vmem:[#allocation8 + $0x2f4] sm:$0xf0] }
 0x16e   :  { %3336 = vmatmul.bf16.vlgmr.msrb.gmra.mxu0 %v6666_v21  ;;  %v1616_v52 = vmax.f32 %v1568_v36, 0.0  ;;  %v1581_v46 = vadd.f32 %v1580_v37, %v318_v35  ;;  %v6092_v35 = vld [vmem:[#allocation8 + $0x194] sm:$0xf0]  ;;  %v5536_v37 = vor.u32 %v6249_v5, %v5533_v28  ;;  %v4852_v28 = vor.u32 %v6080_v14, %v4851_v13  ;;  %v4821_v13 = vld [vmem:[#allocation8 + $0xf8] sm:$0xf0] }
 0x16f   :  { %3380 = vmatpush.bf16.msra.mxu0 %v4820_v3  ;;  %v1606_v3 = vpop.f32.mrf.mxu3  ;;  %v4900_v49 = vor.u32 %v6092_v35, %v4899_v34  ;;  %v4835_v34 = vld [vmem:[#allocation8 + $0x108] sm:$0xf]  ;;  %v6076_v35 = vld [vmem:[#allocation8 + $0x114] sm:$0xf0] }
 0x170   :  { %v6678_v55 = vpack.c.bf16 %v1616_v52, %v1616_v52  ;;  %v5316_v52 = vor.u32 %v6196_v39, %v5315_v38  ;;  %v6180_v38 = vld [vmem:[#allocation8 + $0x454] sm:$0xf0]  ;;  %v5459_v39 = vld [vmem:[#allocation8 + $0x5e8] sm:$0xf]  ;;  %v4836_v50 = vor.u32 %v6076_v35, %v4835_v34 }
 0x171   :  { %3348 = vmatpush.bf16.msrb.mxu1 %v5344_v27  ;;  %v6192_v27 = vld [vmem:[#allocation8 + $0x4b4] sm:$0xf0] }
 0x172   :  { %3258 = vmatmul.bf16.vlgmr.msrb.gmra.mxu2 %v6678_v55  ;;  %v6120_v35 = vld [vmem:[#allocation8 + $0x274] sm:$0xf0] }
 0x173   :  { %3381 = vmatpush.bf16.msra.mxu0 %v4804_v11  ;;  %3354 = vmatpush.bf16.msrb.mxu2 %v5584_v54  ;;  %v1569_v4 = vpop.f32.mrf.mxu0  ;;  %v4932_v11 = vor.u32 %v6100_v2, %v4931_v1  ;;  %v5299_v54 = vld [vmem:[#allocation8 + $0x4a8] sm:$0xf]  ;;  %v6084_v2 = vld [vmem:[#allocation8 + $0x154] sm:$0xf0] }
 0x174   :  { %3349 = vmatmul.bf16.vlgmr.msrb.gmra.mxu1 %v6672_v45  ;;  %v5300_v62 = vor.u32 %v6192_v27, %v5299_v54  ;;  %v4867_v1 = vld [vmem:[#allocation8 + $0x148] sm:$0xf]  ;;  %v6132_v54 = vld [vmem:[#allocation8 + $0x2d4] sm:$0xf0] }
 0x175   :  { %v1593_v61 = vpop.f32.mrf.mxu2  ;;  %v1582_v8 = vpop.f32.mrf.mxu1  ;;  %3393 = vmatpush.bf16.msra.mxu1 %v4948_v59  ;;  %v4884_v59 = vor.u32 %v6088_v63, %v4883_v53  ;;  %v5283_v4 = vld [vmem:[#allocation8 + $0x488] sm:$0xf] }
 0x176   :  { %v1594_v48 = vadd.f32 %v1593_v61, %v1581_v46  ;;  %v5661_v61 = vld [vmem:[#allocation8 + $0x790] sm:$0xf0]  ;;  %v5235_v27 = vld [vmem:[#allocation8 + $0x428] sm:$0xf] }
 0x177   :  { %3382 = vmatpush.bf16.msra.mxu0 %v4788_v23  ;;  %3355 = vmatpush.bf16.msrb.mxu2 %v5568_v6  ;;  %v1608_v36 = vpop.f32.mrf.mxu3  ;;  %v6188_v6 = vld [vmem:[#allocation8 + $0x494] sm:$0xf0]  ;;  %v5664_v8 = vor.u32 %v6281_v60, %v5661_v61  ;;  %v6265_v60 = vld [vmem:[#allocation8 + $0x704] sm:$0xf] }
 0x178   :  { %v1607_v20 = vadd.f32 %v1606_v3, %v1594_v48  ;;  %v1882_v3 = vld [vmem:[#allocation10] sm:$0xf]  ;;  %v5284_v12 = vor.u32 %v6188_v6, %v5283_v4  ;;  %v5251_v36 = vld [vmem:[#allocation8 + $0x448] sm:$0xf] }
 0x179   :  { %3394 = vmatpush.bf16.msra.mxu1 %v4932_v11  ;;  %v5645_v11 = vld [vmem:[#allocation8 + $0x770] sm:$0xf0]  ;;  %v1884_v17 = vperm.slane %v1882_v3, 0  ;;  %v5252_v53 = vor.u32 %v6180_v38, %v5251_v36  ;;  %v5171_v36 = vld [vmem:[#allocation8 + $0x3a8] sm:$0xf] }
 0x17a   :  { %v1617_v23 = vmax.f32 %v1607_v20, 0.0  ;;  %v4868_v20 = vor.u32 %v6084_v2, %v4867_v1  ;;  %v5597_v1 = vld [vmem:[#allocation8 + $0x710] sm:$0xf0]  ;;  %v5043_v2 = vld [vmem:[#allocation8 + $0x2a8] sm:$0xf] }
 0x17b   :  { %3383 = vmatpush.bf16.msra.mxu0 %v4772_v29  ;;  %3356 = vmatpush.bf16.msrb.mxu2 %v5552_v24 }
 0x17c   :  { %v6682_v29 = vpack.c.bf16 %v1617_v23, %v1617_v23  ;;  %v6184_v23 = vld [vmem:[#allocation8 + $0x474] sm:$0xf0] }
 0x17d   :  { %v1595_v32 = vpop.f32.mrf.mxu2  ;;  %3395 = vmatpush.bf16.msra.mxu1 %v4916_v16  ;;  %v5075_v16 = vld [vmem:[#allocation8 + $0x2e8] sm:$0xf] }
 0x17e   :  { %3271 = vmatmul.bf16.vlgmr.msrb.gmra.mxu3 %v6682_v29 }
 0x17f   :  { %3384 = vmatpush.bf16.msra.mxu0 %v4756_v47  ;;  %3367 = vmatpush.bf16.msrb.mxu3 %v5712_v26  ;;  %v5517_v47 = vld [vmem:[#allocation8 + $0x670] sm:$0xf0]  ;;  %v6273_v26 = vld [vmem:[#allocation8 + $0x744] sm:$0xf] }
 0x180   :  { %3357 = vmatpush.bf16.msrb.mxu2 %v5536_v37  ;;  %v5520_v46 = vor.u32 %v6245_v44, %v5517_v47  ;;  %v5472_v37 = vor.u32 %v6233_v22, %v5469_v25  ;;  %v6124_v22 = vld [vmem:[#allocation8 + $0x294] sm:$0xf0]  ;;  %v5187_v25 = vld [vmem:[#allocation8 + $0x3c8] sm:$0xf] }
 0x181   :  { %3396 = vmatpush.bf16.msra.mxu1 %v4900_v49  ;;  %v5076_v49 = vor.u32 %v6136_v30, %v5075_v16  ;;  %v6066_v16 = vld [vmem:[#allocation8 + $0xcc] sm:$0xf]  ;;  %v4805_v30 = vld [vmem:[#allocation8 + $0xd8] sm:$0xf0] }
 0x182   :  { %3310 = vmatmul.bf16.vlgmr.msra.gmra.mxu2 %v6657_v7  ;;  %v4808_v38 = vor.u32 %v6066_v16, %v4805_v30  ;;  %v4741_v16 = vld [vmem:[#allocation8 + $0x58] sm:$0xf0]  ;;  %v6102_v30 = vld [vmem:[#allocation8 + $0x1ec] sm:$0xf] }
 0x183   :  { %3385 = vmatpush.bf16.msra.mxu0 %v4740_v58  ;;  %3368 = vmatpush.bf16.msrb.mxu3 %v5696_v43  ;;  %v5501_v58 = vld [vmem:[#allocation8 + $0x650] sm:$0xf0]  ;;  %v6232_v43 = vld [vmem:[#allocation8 + $0x5f4] sm:$0xf0] }
 0x184   :  { %3358 = vmatpush.bf16.msrb.mxu2 %v5520_v46  ;;  %v5504_v48 = vor.u32 %v6241_v57, %v5501_v58  ;;  %v5460_v63 = vor.u32 %v6232_v43, %v5459_v39  ;;  %v5059_v46 = vld [vmem:[#allocation8 + $0x2c8] sm:$0xf]  ;;  %v6228_v58 = vld [vmem:[#allocation8 + $0x5d4] sm:$0xf0] }
 0x185   :  { %3397 = vmatpush.bf16.msra.mxu1 %v4884_v59  ;;  %v5443_v57 = vld [vmem:[#allocation8 + $0x5c8] sm:$0xf]  ;;  %v6216_v43 = vld [vmem:[#allocation8 + $0x574] sm:$0xf0] }
 0x186   :  { %v5444_v6 = vor.u32 %v6228_v58, %v5443_v57  ;;  %v5395_v39 = vld [vmem:[#allocation8 + $0x568] sm:$0xf] }
 0x187   :  { %3386 = vmatpush.bf16.msra.mxu0 %v4724_v10  ;;  %3369 = vmatpush.bf16.msrb.mxu3 %v5680_v56  ;;  %v6277_v10 = vld [vmem:[#allocation8 + $0x764] sm:$0xf]  ;;  %v6176_v56 = vld [vmem:[#allocation8 + $0x434] sm:$0xf0]  ;;  %v5379_v58 = vld [vmem:[#allocation8 + $0x548] sm:$0xf] }
 0x188   :  { %3359 = vmatpush.bf16.msrb.mxu2 %v5504_v48  ;;  %v5648_v24 = vor.u32 %v6277_v10, %v5645_v11  ;;  %v6128_v48 = vld [vmem:[#allocation8 + $0x2b4] sm:$0xf0]  ;;  %v5236_v4 = vor.u32 %v6176_v56, %v5235_v27  ;;  %v5427_v10 = vld [vmem:[#allocation8 + $0x5a8] sm:$0xf] }
 0x189   :  { %3398 = vmatpush.bf16.msra.mxu1 %v4868_v20  ;;  %v6172_v20 = vld [vmem:[#allocation8 + $0x414] sm:$0xf0]  ;;  %v5044_v14 = vor.u32 %v6128_v48, %v5043_v2  ;;  %v5155_v27 = vld [vmem:[#allocation8 + $0x388] sm:$0xf] }
 0x18a   :  { %v6224_v11 = vld [vmem:[#allocation8 + $0x5b4] sm:$0xf0] }
 0x18b   :  { %3387 = vmatpush.bf16.msra.mxu0 %v4708_v0  ;;  %3370 = vmatpush.bf16.msrb.mxu3 %v5664_v8  ;;  %v3181_v5 = vpop.f32.mrf.mxu0  ;;  %v5629_v0 = vld [vmem:[#allocation8 + $0x750] sm:$0xf0]  ;;  %v5203_v8 = vld [vmem:[#allocation8 + $0x3e8] sm:$0xf]  ;;  %v6156_v56 = vld [vmem:[#allocation8 + $0x394] sm:$0xf0] }
 0x18c   :  { %v3182_v31 = vadd.f32 %v3181_v5, %v1884_v17  ;;  %3360 = vmatpush.bf16.msrb.mxu2 %v5488_v15  ;;  %v5632_v47 = vor.u32 %v6273_v26, %v5629_v0  ;;  %v5600_v17 = vor.u32 %v6265_v60, %v5597_v1  ;;  %v5204_v15 = vor.u32 %v6168_v18, %v5203_v8  ;;  %v6164_v26 = vld [vmem:[#allocation8 + $0x3d4] sm:$0xf0]  ;;  %v6058_v60 = vld [vmem:[#allocation8 + $0x8c] sm:$0xf]  ;;  %v4979_v1 = vld [vmem:[#allocation8 + $0x228] sm:$0xf] }
 0x18d   :  { %v3194_v32 = vpop.f32.mrf.mxu1  ;;  %3399 = vmatpush.bf16.msra.mxu1 %v4852_v28  ;;  %v5411_v28 = vld [vmem:[#allocation8 + $0x588] sm:$0xf]  ;;  %v6220_v0 = vld [vmem:[#allocation8 + $0x594] sm:$0xf0] }
 0x18e   :  { %3388 = vmatmul.bf16.vlgmr.msra.gmra.mxu0 %v6648_v40  ;;  %3323 = vmatmul.bf16.vlgmr.msra.gmra.mxu3 %v6660_v41  ;;  %v6688_v44 = vadd.f32 %v3194_v32, %v3182_v31  ;;  %v5188_v32 = vor.u32 %v6164_v26, %v5187_v25  ;;  %v5412_v34 = vor.u32 %v6220_v0, %v5411_v28  ;;  %v6112_v48 = vld [vmem:[#allocation8 + $0x234] sm:$0xf0]  ;;  %v5363_v8 = vld [vmem:[#allocation8 + $0x528] sm:$0xf]  ;;  %v6050_v0 = vld [vmem:[#allocation8 + $0x4c] sm:$0xf] }
 0x18f   :  { %3432 = vmatpush.bf16.msrb.mxu0 %v5332_v33  ;;  %v5268_v33 = vor.u32 %v6184_v23, %v5267_v19  ;;  %3371 = vmatpush.bf16.msrb.mxu3 %v5648_v24  ;;  %v5027_v19 = vld [vmem:[#allocation8 + $0x288] sm:$0xf]  ;;  %v5220_v23 = vor.u32 %v6172_v20, %v5219_v9  ;;  %v5428_v24 = vor.u32 %v6224_v11, %v5427_v10  ;;  %v6208_v18 = vld [vmem:[#allocation8 + $0x534] sm:$0xf0]  ;;  %v6054_v20 = vld [vmem:[#allocation8 + $0x6c] sm:$0xf] }
 0x190   :  { %3361 = vmatpush.bf16.msrb.mxu2 %v5472_v37  ;;  %v5028_v31 = vor.u32 %v6124_v22, %v5027_v19  ;;  %v6160_v37 = vld [vmem:[#allocation8 + $0x3b4] sm:$0xf0]  ;;  %v4757_v10 = vld [vmem:[#allocation8 + $0x78] sm:$0xf0]  ;;  %v5587_v22 = vld [vmem:[#allocation8 + $0x6e8] sm:$0xf] }
 0x191   :  { %3400 = vmatpush.bf16.msra.mxu1 %v4836_v50  ;;  %v4789_v50 = vld [vmem:[#allocation8 + $0xb8] sm:$0xf0]  ;;  %v6264_v25 = vld [vmem:[#allocation8 + $0x6f4] sm:$0xf0]  ;;  %v4760_v26 = vor.u32 %v6054_v20, %v4757_v10 }
 0x192   :  { %v6204_v28 = vld [vmem:[#allocation8 + $0x514] sm:$0xf0] }
 0x193   :  { %3433 = vmatpush.bf16.msrb.mxu0 %v5316_v52  ;;  %v5613_v52 = vld [vmem:[#allocation8 + $0x730] sm:$0xf0]  ;;  %3372 = vmatpush.bf16.msrb.mxu3 %v5632_v47  ;;  %v3183_v61 = vpop.f32.mrf.mxu0  ;;  %v6252_v10 = vld [vmem:[#allocation8 + $0x694] sm:$0xf0] }
 0x194   :  { %3406 = vmatpush.bf16.msra.mxu2 %v5076_v49  ;;  %v5616_v59 = vor.u32 %v6269_v51, %v5613_v52  ;;  %3401 = vmatmul.bf16.vlgmr.msra.gmra.mxu1 %v6650_v42  ;;  %v6062_v49 = vld [vmem:[#allocation8 + $0xac] sm:$0xf]  ;;  %v4773_v61 = vld [vmem:[#allocation8 + $0x98] sm:$0xf0] }
 0x195   :  { %v3196_v3 = vpop.f32.mrf.mxu1  ;;  %3445 = vmatpush.bf16.msrb.mxu1 %v5460_v63  ;;  %3362 = vmatmul.bf16.vlgmr.msrb.gmra.mxu2 %v6678_v55  ;;  %v3207_v47 = vpop.f32.mrf.mxu2  ;;  %v4995_v63 = vld [vmem:[#allocation8 + $0x248] sm:$0xf]  ;;  %v4792_v57 = vor.u32 %v6062_v49, %v4789_v50  ;;  %v6046_v49 = vld [vmem:[#allocation8 + $0x2c] sm:$0xf]  ;;  %v4725_v50 = vld [vmem:[#allocation8 + $0x38] sm:$0xf0] }
 0x196   :  { %v3208_v51 = vadd.f32 %v3207_v47, %v6688_v44  ;;  %v5156_v44 = vor.u32 %v6156_v56, %v5155_v27  ;;  %v5139_v3 = vld [vmem:[#allocation8 + $0x368] sm:$0xf]  ;;  %v6260_v47 = vld [vmem:[#allocation8 + $0x6d4] sm:$0xf0] }
 0x197   :  { %3434 = vmatpush.bf16.msrb.mxu0 %v5300_v62  ;;  %v5060_v62 = vor.u32 %v6132_v54, %v5059_v46  ;;  %3373 = vmatpush.bf16.msrb.mxu3 %v5616_v59  ;;  %v5396_v46 = vor.u32 %v6216_v43, %v5395_v39  ;;  %v6116_v54 = vld [vmem:[#allocation8 + $0x254] sm:$0xf0]  ;;  %v5571_v43 = vld [vmem:[#allocation8 + $0x6c8] sm:$0xf] }
 0x198   :  { %v6212_v59 = vld [vmem:[#allocation8 + $0x554] sm:$0xf0]  ;;  %v5555_v56 = vld [vmem:[#allocation8 + $0x6a8] sm:$0xf] }
 0x199   :  { %3407 = vmatpush.bf16.msra.mxu2 %v5060_v62  ;;  %3446 = vmatpush.bf16.msrb.mxu1 %v5444_v6  ;;  %v4996_v62 = vor.u32 %v6116_v54, %v4995_v63  ;;  %v5380_v2 = vor.u32 %v6212_v59, %v5379_v58  ;;  %v4776_v6 = vor.u32 %v6058_v60, %v4773_v61  ;;  %v5091_v63 = vld [vmem:[#allocation8 + $0x308] sm:$0xf]  ;;  %v6140_v27 = vld [vmem:[#allocation8 + $0x314] sm:$0xf0] }
 0x19a   :  { %v5572_v54 = vor.u32 %v6260_v47, %v5571_v43  ;;  %v4728_v58 = vor.u32 %v6046_v49, %v4725_v50  ;;  %v5715_v60 = vld [vmem:[#allocation8 + $0x7e8] sm:$0xf]  ;;  %v6296_v61 = vld [vmem:[#allocation8 + $0x7f4] sm:$0xf0]  ;;  %v6082_v50 = vld [vmem:[#allocation8 + $0x14c] sm:$0xf] }
 0x19b   :  { %3435 = vmatpush.bf16.msrb.mxu0 %v5284_v12  ;;  %v6070_v12 = vld [vmem:[#allocation8 + $0xec] sm:$0xf]  ;;  %3374 = vmatpush.bf16.msrb.mxu3 %v5600_v17  ;;  %v4980_v17 = vor.u32 %v6112_v48, %v4979_v1  ;;  %v5092_v48 = vor.u32 %v6140_v27, %v5091_v63  ;;  %v5667_v43 = vld [vmem:[#allocation8 + $0x788] sm:$0xf]  ;;  %v6284_v47 = vld [vmem:[#allocation8 + $0x794] sm:$0xf0] }
 0x19c   :  { %v4824_v5 = vor.u32 %v6070_v12, %v4821_v13  ;;  %v4963_v13 = vld [vmem:[#allocation8 + $0x208] sm:$0xf]  ;;  %v6094_v1 = vld [vmem:[#allocation8 + $0x1ac] sm:$0xf] }
 0x19d   :  { %3408 = vmatpush.bf16.msra.mxu2 %v5044_v14  ;;  %3447 = vmatpush.bf16.msrb.mxu1 %v5428_v24  ;;  %v3209_v9 = vpop.f32.mrf.mxu2  ;;  %v6108_v14 = vld [vmem:[#allocation8 + $0x214] sm:$0xf0] }
 0x19e   :  { %3375 = vmatmul.bf16.vlgmr.msrb.gmra.mxu3 %v6682_v29  ;;  %v6148_v24 = vld [vmem:[#allocation8 + $0x354] sm:$0xf0] }
 0x19f   :  { %3436 = vmatpush.bf16.msrb.mxu0 %v5268_v33  ;;  %3419 = vmatpush.bf16.msra.mxu3 %v5204_v15  ;;  %v5011_v33 = vld [vmem:[#allocation8 + $0x268] sm:$0xf] }
 0x1a0   :  { %v5012_v52 = vor.u32 %v6120_v35, %v5011_v33  ;;  %v5123_v15 = vld [vmem:[#allocation8 + $0x348] sm:$0xf] }
 0x1a1   :  { %3409 = vmatpush.bf16.msra.mxu2 %v5028_v31  ;;  %3448 = vmatpush.bf16.msrb.mxu1 %v5412_v34  ;;  %v3220_v11 = vpop.f32.mrf.mxu3  ;;  %v4949_v31 = vld [vmem:[#allocation8 + $0x1f8] sm:$0xf0]  ;;  %v5124_v33 = vor.u32 %v6148_v24, %v5123_v15  ;;  %v5588_v34 = vor.u32 %v6264_v25, %v5587_v22  ;;  %v6194_v15 = vld [vmem:[#allocation8 + $0x4cc] sm:$0xf]  ;;  %v5523_v25 = vld [vmem:[#allocation8 + $0x668] sm:$0xf] }
 0x1a2   :  { %v6695_v19 = vadd.f32 %v3220_v11, %v3208_v51  ;;  %v4952_v39 = vor.u32 %v6102_v30, %v4949_v31  ;;  %v6098_v51 = vld [vmem:[#allocation8 + $0x1cc] sm:$0xf]  ;;  %v5699_v11 = vld [vmem:[#allocation8 + $0x7c8] sm:$0xf]  ;;  %v4885_v31 = vld [vmem:[#allocation8 + $0x178] sm:$0xf0] }
 0x1a3   :  { %3437 = vmatpush.bf16.msrb.mxu0 %v5252_v53  ;;  %3420 = vmatpush.bf16.msra.mxu3 %v5188_v32  ;;  %v5172_v53 = vor.u32 %v6160_v37, %v5171_v36  ;;  %v4964_v32 = vor.u32 %v6108_v14, %v4963_v13  ;;  %v5107_v36 = vld [vmem:[#allocation8 + $0x328] sm:$0xf]  ;;  %v6144_v37 = vld [vmem:[#allocation8 + $0x334] sm:$0xf0]  ;;  %v6090_v13 = vld [vmem:[#allocation8 + $0x18c] sm:$0xf] }
 0x1a4   :  { %v4901_v14 = vld [vmem:[#allocation8 + $0x198] sm:$0xf0]  ;;  %v6086_v30 = vld [vmem:[#allocation8 + $0x16c] sm:$0xf] }
 0x1a5   :  { %3410 = vmatpush.bf16.msra.mxu2 %v5012_v52  ;;  %3449 = vmatpush.bf16.msrb.mxu1 %v5396_v46  ;;  %v4933_v52 = vld [vmem:[#allocation8 + $0x1d8] sm:$0xf0] }
 0x1a6   :  { %v4936_v59 = vor.u32 %v6098_v51, %v4933_v52  ;;  %v4869_v51 = vld [vmem:[#allocation8 + $0x158] sm:$0xf0]  ;;  %v6186_v52 = vld [vmem:[#allocation8 + $0x48c] sm:$0xf] }
 0x1a7   :  { %3438 = vmatpush.bf16.msrb.mxu0 %v5236_v4  ;;  %3421 = vmatpush.bf16.msra.mxu3 %v5172_v53  ;;  %v6152_v4 = vld [vmem:[#allocation8 + $0x374] sm:$0xf0]  ;;  %v5108_v53 = vor.u32 %v6144_v37, %v5107_v36  ;;  %v5507_v37 = vld [vmem:[#allocation8 + $0x648] sm:$0xf]  ;;  %v4872_v27 = vor.u32 %v6082_v50, %v4869_v51  ;;  %v6166_v51 = vld [vmem:[#allocation8 + $0x3ec] sm:$0xf] }
 0x1a8   :  { %v5140_v12 = vor.u32 %v6152_v4, %v5139_v3  ;;  %v6198_v3 = vld [vmem:[#allocation8 + $0x4ec] sm:$0xf]  ;;  %v5333_v4 = vld [vmem:[#allocation8 + $0x4f8] sm:$0xf0] }
 0x1a9   :  { %3411 = vmatpush.bf16.msra.mxu2 %v4996_v62  ;;  %3450 = vmatpush.bf16.msrb.mxu1 %v5380_v2  ;;  %v3222_v46 = vpop.f32.mrf.mxu3  ;;  %v6042_v62 = vld [vmem:[#allocation8 + $0xc] sm:$0xf]  ;;  %v4917_v2 = vld [vmem:[#allocation8 + $0x1b8] sm:$0xf0] }
 0x1aa   :  { %v4920_v20 = vor.u32 %v6094_v1, %v4917_v2  ;;  %v5668_v46 = vor.u32 %v6284_v47, %v5667_v43  ;;  %v6126_v43 = vld [vmem:[#allocation8 + $0x2ac] sm:$0xf]  ;;  %v5045_v47 = vld [vmem:[#allocation8 + $0x2b8] sm:$0xf0] }
 0x1ab   :  { %3439 = vmatpush.bf16.msrb.mxu0 %v5220_v23  ;;  %3422 = vmatpush.bf16.msra.mxu3 %v5156_v44  ;;  %v5364_v23 = vor.u32 %v6208_v18, %v5363_v8  ;;  %v4709_v44 = vld [vmem:[#allocation8 + $0x18] sm:$0xf0]  ;;  %v5716_v8 = vor.u32 %v6296_v61, %v5715_v60  ;;  %v5539_v18 = vld [vmem:[#allocation8 + $0x688] sm:$0xf]  ;;  %v6182_v61 = vld [vmem:[#allocation8 + $0x46c] sm:$0xf] }
 0x1ac   :  { %v4712_v9 = vor.u32 %v6042_v62, %v4709_v44  ;;  %v5540_v24 = vor.u32 %v6252_v10, %v5539_v18  ;;  %v4853_v60 = vld [vmem:[#allocation8 + $0x138] sm:$0xf0]  ;;  %v6134_v18 = vld [vmem:[#allocation8 + $0x2ec] sm:$0xf] }
 0x1ad   :  { %3412 = vmatpush.bf16.msra.mxu2 %v4980_v17  ;;  %3451 = vmatpush.bf16.msrb.mxu1 %v5364_v23  ;;  %v6292_v17 = vld [vmem:[#allocation8 + $0x7d4] sm:$0xf0]  ;;  %v5317_v23 = vld [vmem:[#allocation8 + $0x4d8] sm:$0xf0]  ;;  %v6074_v10 = vld [vmem:[#allocation8 + $0x10c] sm:$0xf] }
 0x1ae   :  { %3440 = vmatmul.bf16.vlgmr.msrb.gmra.mxu0 %v6666_v21  ;;  %v5700_v22 = vor.u32 %v6292_v17, %v5699_v11  ;;  %v5269_v62 = vld [vmem:[#allocation8 + $0x478] sm:$0xf0]  ;;  %v6178_v17 = vld [vmem:[#allocation8 + $0x44c] sm:$0xf] }
 0x1af   :  { %3484 = vmatpush.bf16.msra.mxu0 %v4824_v5  ;;  %v5347_v5 = vld [vmem:[#allocation8 + $0x508] sm:$0xf]  ;;  %3423 = vmatpush.bf16.msra.mxu3 %v5140_v12  ;;  %v5336_v12 = vor.u32 %v6198_v3, %v5333_v4  ;;  %v6236_v3 = vld [vmem:[#allocation8 + $0x614] sm:$0xf0]  ;;  %v4837_v11 = vld [vmem:[#allocation8 + $0x118] sm:$0xf0] }
 0x1b0   :  { %v5348_v35 = vor.u32 %v6204_v28, %v5347_v5  ;;  %v6248_v5 = vld [vmem:[#allocation8 + $0x674] sm:$0xf0]  ;;  %v5683_v28 = vld [vmem:[#allocation8 + $0x7a8] sm:$0xf] }
 0x1b1   :  { %3413 = vmatpush.bf16.msra.mxu2 %v4964_v32  ;;  %v6190_v32 = vld [vmem:[#allocation8 + $0x4ac] sm:$0xf]  ;;  %v5635_v4 = vld [vmem:[#allocation8 + $0x748] sm:$0xf] }
 0x1b2   :  { %3452 = vmatpush.bf16.msrb.mxu1 %v5348_v35  ;;  %v5524_v35 = vor.u32 %v6248_v5, %v5523_v25  ;;  %v5619_v25 = vld [vmem:[#allocation8 + $0x728] sm:$0xf] }
 0x1b3   :  { %3485 = vmatpush.bf16.msra.mxu0 %v4808_v38  ;;  %v4744_v38 = vor.u32 %v6050_v0, %v4741_v16  ;;  %3424 = vmatpush.bf16.msra.mxu3 %v5124_v33  ;;  %v6288_v0 = vld [vmem:[#allocation8 + $0x7b4] sm:$0xf0]  ;;  %v5320_v16 = vor.u32 %v6194_v15, %v5317_v23  ;;  %v5301_v33 = vld [vmem:[#allocation8 + $0x4b8] sm:$0xf0] }
 0x1b4   :  { %3414 = vmatmul.bf16.vlgmr.msra.gmra.mxu2 %v6657_v7  ;;  %v5684_v36 = vor.u32 %v6288_v0, %v5683_v28  ;;  %v5304_v49 = vor.u32 %v6190_v32, %v5301_v33  ;;  %v6130_v0 = vld [vmem:[#allocation8 + $0x2cc] sm:$0xf]  ;;  %v5445_v33 = vld [vmem:[#allocation8 + $0x5d8] sm:$0xf0] }
 0x1b5   :  { %3458 = vmatpush.bf16.msrb.mxu2 %v5588_v34  ;;  %3453 = vmatmul.bf16.vlgmr.msrb.gmra.mxu1 %v6672_v45  ;;  %v6226_v32 = vld [vmem:[#allocation8 + $0x5cc] sm:$0xf] }
 0x1b6   :  { %3497 = vmatpush.bf16.msra.mxu1 %v4952_v39  ;;  %v6244_v39 = vld [vmem:[#allocation8 + $0x654] sm:$0xf0]  ;;  %v5448_v50 = vor.u32 %v6226_v32, %v5445_v33  ;;  %v4981_v32 = vld [vmem:[#allocation8 + $0x238] sm:$0xf0]  ;;  %v6150_v33 = vld [vmem:[#allocation8 + $0x36c] sm:$0xf] }
 0x1b7   :  { %3486 = vmatpush.bf16.msra.mxu0 %v4792_v57  ;;  %v6256_v57 = vld [vmem:[#allocation8 + $0x6b4] sm:$0xf0]  ;;  %3425 = vmatpush.bf16.msra.mxu3 %v5108_v53  ;;  %v5285_v53 = vld [vmem:[#allocation8 + $0x498] sm:$0xf0]  ;;  %v5508_v63 = vor.u32 %v6244_v39, %v5507_v37  ;;  %v5603_v37 = vld [vmem:[#allocation8 + $0x708] sm:$0xf] }
 0x1b8   :  { %v6268_v39 = vld [vmem:[#allocation8 + $0x714] sm:$0xf0] }
 0x1b9   :  { %3459 = vmatpush.bf16.msrb.mxu2 %v5572_v54  ;;  %v6700_v34 = vpop.f32.mrf.mxu0  ;;  %v5491_v54 = vld [vmem:[#allocation8 + $0x628] sm:$0xf] }
 0x1ba   :  { %3498 = vmatpush.bf16.msra.mxu1 %v4936_v59  ;;  %v6078_v59 = vld [vmem:[#allocation8 + $0x12c] sm:$0xf] }
 0x1bb   :  { %3487 = vmatpush.bf16.msra.mxu0 %v4776_v6  ;;  %v5556_v6 = vor.u32 %v6256_v57, %v5555_v56  ;;  %3426 = vmatpush.bf16.msra.mxu3 %v5092_v48  ;;  %v6240_v56 = vld [vmem:[#allocation8 + $0x634] sm:$0xf0]  ;;  %v5475_v48 = vld [vmem:[#allocation8 + $0x608] sm:$0xf] }
 0x1bc   :  { %v6280_v57 = vld [vmem:[#allocation8 + $0x774] sm:$0xf0]  ;;  %v5492_v1 = vor.u32 %v6240_v56, %v5491_v54  ;;  %v5476_v15 = vor.u32 %v6236_v3, %v5475_v48  ;;  %v5429_v54 = vld [vmem:[#allocation8 + $0x5b8] sm:$0xf0]  ;;  %v5048_v56 = vor.u32 %v6126_v43, %v5045_v47  ;;  %v6106_v47 = vld [vmem:[#allocation8 + $0x20c] sm:$0xf] }
 0x1bd   :  { %3460 = vmatpush.bf16.msrb.mxu2 %v5556_v6  ;;  %v4856_v6 = vor.u32 %v6078_v59, %v4853_v60  ;;  %v5029_v60 = vld [vmem:[#allocation8 + $0x298] sm:$0xf0] }
 0x1be   :  { %3499 = vmatpush.bf16.msra.mxu1 %v4920_v20  ;;  %3427 = vmatmul.bf16.vlgmr.msra.gmra.mxu3 %v6660_v41  ;;  %v5272_v20 = vor.u32 %v6182_v61, %v5269_v62  ;;  %v6162_v61 = vld [vmem:[#allocation8 + $0x3cc] sm:$0xf]  ;;  %v5189_v62 = vld [vmem:[#allocation8 + $0x3d8] sm:$0xf0] }
 0x1bf   :  { %3488 = vmatpush.bf16.msra.mxu0 %v4760_v26  ;;  %3471 = vmatpush.bf16.msrb.mxu3 %v5716_v8  ;;  %v4904_v26 = vor.u32 %v6090_v13, %v4901_v14  ;;  %v6276_v8 = vld [vmem:[#allocation8 + $0x754] sm:$0xf0]  ;;  %v6230_v13 = vld [vmem:[#allocation8 + $0x5ec] sm:$0xf]  ;;  %v5461_v14 = vld [vmem:[#allocation8 + $0x5f8] sm:$0xf0]  ;;  %v5192_v3 = vor.u32 %v6162_v61, %v5189_v62 }
 0x1c0   :  { %v5636_v23 = vor.u32 %v6276_v8, %v5635_v4  ;;  %v5464_v28 = vor.u32 %v6230_v13, %v5461_v14  ;;  %v6118_v4 = vld [vmem:[#allocation8 + $0x26c] sm:$0xf]  ;;  %v5109_v62 = vld [vmem:[#allocation8 + $0x338] sm:$0xf0] }
 0x1c1   :  { %3461 = vmatpush.bf16.msrb.mxu2 %v5540_v24  ;;  %v3235_v44 = vpop.f32.mrf.mxu0  ;;  %v6114_v14 = vld [vmem:[#allocation8 + $0x24c] sm:$0xf] }
 0x1c2   :  { %3500 = vmatpush.bf16.msra.mxu1 %v4904_v26  ;;  %v6272_v26 = vld [vmem:[#allocation8 + $0x734] sm:$0xf0]  ;;  %v6218_v44 = vld [vmem:[#allocation8 + $0x58c] sm:$0xf] }
 0x1c3   :  { %3489 = vmatpush.bf16.msra.mxu0 %v4744_v38  ;;  %3472 = vmatpush.bf16.msrb.mxu3 %v5700_v22  ;;  %v4888_v38 = vor.u32 %v6086_v30, %v4885_v31  ;;  %v4840_v22 = vor.u32 %v6074_v10, %v4837_v11  ;;  %v6174_v30 = vld [vmem:[#allocation8 + $0x42c] sm:$0xf]  ;;  %v5237_v31 = vld [vmem:[#allocation8 + $0x438] sm:$0xf0] }
 0x1c4   :  { %v6214_v10 = vld [vmem:[#allocation8 + $0x56c] sm:$0xf]  ;;  %v5397_v11 = vld [vmem:[#allocation8 + $0x578] sm:$0xf0] }
 0x1c5   :  { %3462 = vmatpush.bf16.msrb.mxu2 %v5524_v35  ;;  %v6142_v61 = vld [vmem:[#allocation8 + $0x32c] sm:$0xf] }
 0x1c6   :  { %3501 = vmatpush.bf16.msra.mxu1 %v4888_v38 }
 0x1c7   :  { %3490 = vmatpush.bf16.msra.mxu0 %v4728_v58  ;;  %3473 = vmatpush.bf16.msrb.mxu3 %v5684_v36  ;;  %v5288_v58 = vor.u32 %v6186_v52, %v5285_v53  ;;  %v5620_v36 = vor.u32 %v6272_v26, %v5619_v25  ;;  %v5205_v52 = vld [vmem:[#allocation8 + $0x3f8] sm:$0xf0]  ;;  %v6170_v53 = vld [vmem:[#allocation8 + $0x40c] sm:$0xf] }
 0x1c8   :  { %v6210_v25 = vld [vmem:[#allocation8 + $0x54c] sm:$0xf]  ;;  %v5381_v26 = vld [vmem:[#allocation8 + $0x558] sm:$0xf0] }
 0x1c9   :  { %3463 = vmatpush.bf16.msrb.mxu2 %v5508_v63  ;;  %v5221_v63 = vld [vmem:[#allocation8 + $0x418] sm:$0xf0] }
 0x1ca   :  { %3502 = vmatpush.bf16.msra.mxu1 %v4872_v27  ;;  %v5604_v27 = vor.u32 %v6268_v39, %v5603_v37  ;;  %v5365_v37 = vld [vmem:[#allocation8 + $0x538] sm:$0xf0] }
 0x1cb   :  { %3491 = vmatpush.bf16.msra.mxu0 %v4712_v9  ;;  %3474 = vmatpush.bf16.msrb.mxu3 %v5668_v46  ;;  %v5077_v9 = vld [vmem:[#allocation8 + $0x2f8] sm:$0xf0]  ;;  %v6703_v35 = vpop.f32.mrf.mxu0  ;;  %v6222_v46 = vld [vmem:[#allocation8 + $0x5ac] sm:$0xf] }
 0x1cc   :  { %v5080_v24 = vor.u32 %v6134_v18, %v5077_v9  ;;  %v5432_v59 = vor.u32 %v6222_v46, %v5429_v54  ;;  %v5013_v18 = vld [vmem:[#allocation8 + $0x278] sm:$0xf0]  ;;  %v6158_v9 = vld [vmem:[#allocation8 + $0x3ac] sm:$0xf] }
 0x1cd   :  { %3464 = vmatpush.bf16.msrb.mxu2 %v5492_v1  ;;  %v5413_v1 = vld [vmem:[#allocation8 + $0x598] sm:$0xf0]  ;;  %v6202_v54 = vld [vmem:[#allocation8 + $0x50c] sm:$0xf] }
 0x1ce   :  { %3492 = vmatmul.bf16.vlgmr.msra.gmra.mxu0 %v6648_v40  ;;  %v5651_v40 = vld [vmem:[#allocation8 + $0x768] sm:$0xf]  ;;  %3503 = vmatpush.bf16.msra.mxu1 %v4856_v6  ;;  %v5416_v8 = vor.u32 %v6218_v44, %v5413_v1  ;;  %v5589_v46 = vld [vmem:[#allocation8 + $0x6f8] sm:$0xf0]  ;;  %v6258_v44 = vld [vmem:[#allocation8 + $0x6cc] sm:$0xf] }
 0x1cf   :  { %3536 = vmatpush.bf16.msrb.mxu0 %v5336_v12  ;;  %v5652_v2 = vor.u32 %v6280_v57, %v5651_v40  ;;  %v5253_v12 = vld [vmem:[#allocation8 + $0x458] sm:$0xf0]  ;;  %v5208_v40 = vor.u32 %v6166_v51, %v5205_v52  ;;  %v6122_v57 = vld [vmem:[#allocation8 + $0x28c] sm:$0xf] }
 0x1d0   :  { %v5256_v5 = vor.u32 %v6178_v17, %v5253_v12  ;;  %v6303_v17 = vld [vmem:[#allocation11 + $0x30] sm:$0xff]  ;;  %v5016_v12 = vor.u32 %v6118_v4, %v5013_v18  ;;  %v5573_v1 = vld [vmem:[#allocation8 + $0x6d8] sm:$0xf0] }
 0x1d1   :  { %3475 = vmatpush.bf16.msrb.mxu3 %v5652_v2  ;;  %3465 = vmatpush.bf16.msrb.mxu2 %v5476_v15  ;;  %v6304_v2 = vld [vmem:[#allocation11 + $0x38] sm:$0xff]  ;;  %v6707_v6 = vpop.f32.mrf.mxu1  ;;  %v5400_v15 = vor.u32 %v6214_v10, %v5397_v11  ;;  %v5576_v18 = vor.u32 %v6258_v44, %v5573_v1  ;;  %v6294_v10 = vld [vmem:[#allocation8 + $0x7ec] sm:$0xf] }
 0x1d2   :  { %3504 = vmatpush.bf16.msra.mxu1 %v4840_v22  ;;  %v5157_v22 = vld [vmem:[#allocation8 + $0x398] sm:$0xf0] }
 0x1d3   :  { %3537 = vmatpush.bf16.msrb.mxu0 %v5320_v16  ;;  %v5061_v16 = vld [vmem:[#allocation8 + $0x2d8] sm:$0xf0]  ;;  %v3287_v48 = vpop.f32.mrf.mxu0 }
 0x1d4   :  { %v5064_v38 = vor.u32 %v6130_v0, %v5061_v16  ;;  %3466 = vmatmul.bf16.vlgmr.msrb.gmra.mxu2 %v6678_v55  ;;  %v6110_v16 = vld [vmem:[#allocation8 + $0x22c] sm:$0xf]  ;;  %v6312_v48 = vld [vmem:[#allocation11 + $0x78] sm:$0xff] }
 0x1d5   :  { %3476 = vmatpush.bf16.msrb.mxu3 %v5636_v23  ;;  %3510 = vmatpush.bf16.msra.mxu2 %v5080_v24  ;;  %v4997_v23 = vld [vmem:[#allocation8 + $0x258] sm:$0xf0]  ;;  %v6154_v24 = vld [vmem:[#allocation8 + $0x38c] sm:$0xf]  ;;  %v4984_v39 = vor.u32 %v6110_v16, %v4981_v32  ;;  %v6309_v32 = vld [vmem:[#allocation11 + $0x60] sm:$0xff] }
 0x1d6   :  { %3549 = vmatpush.bf16.msrb.mxu1 %v5464_v28  ;;  %v5000_v28 = vor.u32 %v6114_v14, %v4997_v23  ;;  %v5160_v0 = vor.u32 %v6154_v24, %v5157_v22  ;;  %v5093_v4 = vld [vmem:[#allocation8 + $0x318] sm:$0xf0]  ;;  %v6250_v24 = vld [vmem:[#allocation8 + $0x68c] sm:$0xf] }
 0x1d7   :  { %3538 = vmatpush.bf16.msrb.mxu0 %v5304_v49  ;;  %v5240_v49 = vor.u32 %v6174_v30, %v5237_v31  ;;  %3505 = vmatmul.bf16.vlgmr.msra.gmra.mxu1 %v6650_v42  ;;  %v5032_v42 = vor.u32 %v6122_v57, %v5029_v60  ;;  %v5384_v31 = vor.u32 %v6210_v25, %v5381_v26  ;;  %v5717_v11 = vld [vmem:[#allocation8 + $0x7f8] sm:$0xf0]  ;;  %v6290_v25 = vld [vmem:[#allocation8 + $0x7cc] sm:$0xf] }
 0x1d8   :  { %v5720_v23 = vor.u32 %v6294_v10, %v5717_v11  ;;  %v5541_v22 = vld [vmem:[#allocation8 + $0x698] sm:$0xf0]  ;;  %v6246_v16 = vld [vmem:[#allocation8 + $0x66c] sm:$0xf] }
 0x1d9   :  { %3477 = vmatpush.bf16.msrb.mxu3 %v5620_v36  ;;  %3511 = vmatpush.bf16.msra.mxu2 %v5064_v38  ;;  %v3248_v30 = vpop.f32.mrf.mxu1  ;;  %v6206_v36 = vld [vmem:[#allocation8 + $0x52c] sm:$0xf]  ;;  %v6301_v38 = vld [vmem:[#allocation11 + $0x20] sm:$0xff]  ;;  %v5701_v26 = vld [vmem:[#allocation8 + $0x7d8] sm:$0xf0] }
 0x1da   :  { %3550 = vmatpush.bf16.msrb.mxu1 %v5448_v50  ;;  %v6146_v50 = vld [vmem:[#allocation8 + $0x34c] sm:$0xf]  ;;  %v5368_v52 = vor.u32 %v6206_v36, %v5365_v37 }
 0x1db   :  { %3539 = vmatpush.bf16.msrb.mxu0 %v5288_v58  ;;  %v5224_v58 = vor.u32 %v6170_v53, %v5221_v63  ;;  %v5125_v53 = vld [vmem:[#allocation8 + $0x358] sm:$0xf0]  ;;  %v6262_v63 = vld [vmem:[#allocation8 + $0x6ec] sm:$0xf] }
 0x1dc   :  { %v5128_v57 = vor.u32 %v6146_v50, %v5125_v53  ;;  %v6286_v30 = vld [vmem:[#allocation8 + $0x7ac] sm:$0xf] }
 0x1dd   :  { %3478 = vmatpush.bf16.msrb.mxu3 %v5604_v27  ;;  %3512 = vmatpush.bf16.msra.mxu2 %v5048_v56  ;;  %v5349_v27 = vld [vmem:[#allocation8 + $0x518] sm:$0xf0]  ;;  %v6242_v37 = vld [vmem:[#allocation8 + $0x64c] sm:$0xf] }
 0x1de   :  { %3551 = vmatpush.bf16.msrb.mxu1 %v5432_v59  ;;  %v6300_v56 = vld [vmem:[#allocation11 + $0x18] sm:$0xff]  ;;  %v5592_v59 = vor.u32 %v6262_v63, %v5589_v46  ;;  %v5352_v60 = vor.u32 %v6202_v54, %v5349_v27  ;;  %v6238_v53 = vld [vmem:[#allocation8 + $0x62c] sm:$0xf]  ;;  %v6307_v27 = vld [vmem:[#allocation11 + $0x50] sm:$0xff] }
 0x1df   :  { %3540 = vmatpush.bf16.msrb.mxu0 %v5272_v20  ;;  %v5173_v20 = vld [vmem:[#allocation8 + $0x3b8] sm:$0xf0]  ;;  %v6278_v46 = vld [vmem:[#allocation8 + $0x76c] sm:$0xf] }
 0x1e0   :  { %3479 = vmatmul.bf16.vlgmr.msrb.gmra.mxu3 %v6682_v29  ;;  %v5176_v13 = vor.u32 %v6158_v9, %v5173_v20  ;;  %v6254_v9 = vld [vmem:[#allocation8 + $0x6ac] sm:$0xf]  ;;  %v5557_v20 = vld [vmem:[#allocation8 + $0x6b8] sm:$0xf0] }
 0x1e1   :  { %3523 = vmatpush.bf16.msra.mxu3 %v5208_v40  ;;  %3513 = vmatpush.bf16.msra.mxu2 %v5032_v42  ;;  %v5112_v42 = vor.u32 %v6142_v61, %v5109_v62  ;;  %v5493_v63 = vld [vmem:[#allocation8 + $0x638] sm:$0xf0] }
 0x1e2   :  { %3552 = vmatpush.bf16.msrb.mxu1 %v5416_v8  ;;  %v5653_v54 = vld [vmem:[#allocation8 + $0x778] sm:$0xf0] }
 0x1e3   :  { %3541 = vmatpush.bf16.msrb.mxu0 %v5256_v5  ;;  %v6302_v5 = vld [vmem:[#allocation11 + $0x28] sm:$0xff]  ;;  %v5477_v61 = vld [vmem:[#allocation8 + $0x618] sm:$0xf0] }
 0x1e5   :  { %3524 = vmatpush.bf16.msra.mxu3 %v5192_v3  ;;  %3514 = vmatpush.bf16.msra.mxu2 %v5016_v12  ;;  %v6138_v3 = vld [vmem:[#allocation8 + $0x30c] sm:$0xf]  ;;  %v6311_v12 = vld [vmem:[#allocation11 + $0x70] sm:$0xff] }
 0x1e6   :  { %3553 = vmatpush.bf16.msrb.mxu1 %v5400_v15  ;;  %v5560_v15 = vor.u32 %v6254_v9, %v5557_v20  ;;  %v6305_v9 = vld [vmem:[#allocation11 + $0x40] sm:$0xff] }
 0x1e7   :  { %3542 = vmatpush.bf16.msrb.mxu0 %v5240_v49  ;;  %v4965_v49 = vld [vmem:[#allocation8 + $0x218] sm:$0xf0] }
 0x1e8   :  { %v4968_v40 = vor.u32 %v6106_v47, %v4965_v49  ;;  %v5669_v47 = vld [vmem:[#allocation8 + $0x798] sm:$0xf0] }
 0x1e9   :  { %3525 = vmatpush.bf16.msra.mxu3 %v5176_v13  ;;  %3515 = vmatpush.bf16.msra.mxu2 %v5000_v28  ;;  %v5096_v13 = vor.u32 %v6138_v3, %v5093_v4  ;;  %v6310_v28 = vld [vmem:[#allocation11 + $0x68] sm:$0xff]  ;;  %v6308_v49 = vld [vmem:[#allocation11 + $0x58] sm:$0xff] }
 0x1ea   :  { %3554 = vmatpush.bf16.msrb.mxu1 %v5384_v31  ;;  %v5685_v31 = vld [vmem:[#allocation8 + $0x7b8] sm:$0xf0] }
 0x1eb   :  { %3543 = vmatpush.bf16.msrb.mxu0 %v5224_v58  ;;  %v6711_v51 = vpop.f32.mrf.mxu0  ;;  %v6713_v58 = vpop.f32.mrf.mxu1  ;;  %v5688_v36 = vor.u32 %v6286_v30, %v5685_v31 }
 0x1ed   :  { %3526 = vmatpush.bf16.msra.mxu3 %v5160_v0  ;;  %3516 = vmatpush.bf16.msra.mxu2 %v4984_v39  ;;  %v5704_v0 = vor.u32 %v6290_v25, %v5701_v26 }
 0x1ee   :  { %3544 = vmatmul.bf16.vlgmr.msrb.gmra.mxu0 %v6666_v21  ;;  %v5141_v21 = vld [vmem:[#allocation8 + $0x378] sm:$0xf0]  ;;  %3555 = vmatpush.bf16.msrb.mxu1 %v5368_v52 }
 0x1ef   :  { %3856 = vmatpush.bf16.msra.mxu0 %v6304_v2  ;;  %v5144_v43 = vor.u32 %v6150_v33, %v5141_v21  ;;  %v6299_v2 = vld [vmem:[#allocation11 + $0x10] sm:$0xff] }
 0x1f1   :  { %3527 = vmatpush.bf16.msra.mxu3 %v5144_v43  ;;  %3517 = vmatpush.bf16.msra.mxu2 %v4968_v40  ;;  %v6282_v43 = vld [vmem:[#allocation8 + $0x78c] sm:$0xf] }
 0x1f2   :  { %3556 = vmatpush.bf16.msrb.mxu1 %v5352_v60  ;;  %v5672_v52 = vor.u32 %v6282_v43, %v5669_v47  ;;  %v6234_v60 = vld [vmem:[#allocation8 + $0x60c] sm:$0xf] }
 0x1f3   :  { %3857 = vmatpush.bf16.msra.mxu0 %v6303_v17  ;;  %v3339_v8 = vpop.f32.mrf.mxu0  ;;  %v6298_v17 = vld [vmem:[#allocation11 + $0x8] sm:$0xff]  ;;  %v3300_v14 = vpop.f32.mrf.mxu1 }
 0x1f4   :  { %3518 = vmatmul.bf16.vlgmr.msra.gmra.mxu2 %v6657_v7  ;;  %v5544_v7 = vor.u32 %v6250_v24, %v5541_v22  ;;  %v6270_v8 = vld [vmem:[#allocation8 + $0x72c] sm:$0xf] }
 0x1f5   :  { %3528 = vmatpush.bf16.msra.mxu3 %v5128_v57  ;;  %3562 = vmatpush.bf16.msrb.mxu2 %v5592_v59  ;;  %v3259_v39 = vpop.f32.mrf.mxu2  ;;  %v5496_v57 = vor.u32 %v6238_v53, %v5493_v63  ;;  %v5656_v59 = vor.u32 %v6278_v46, %v5653_v54  ;;  %v6318_v47 = vld [vmem:[#allocation11 + $0xa8] sm:$0xff]  ;;  %v6313_v54 = vld [vmem:[#allocation11 + $0x80] sm:$0xff] }
 0x1f6   :  { %3869 = vmatpush.bf16.msra.mxu1 %v6312_v48  ;;  %v5637_v48 = vld [vmem:[#allocation8 + $0x758] sm:$0xf0] }
 0x1f7   :  { %3858 = vmatpush.bf16.msra.mxu0 %v6302_v5  ;;  %3557 = vmatmul.bf16.vlgmr.msrb.gmra.mxu1 %v6672_v45  ;;  %v6297_v5 = vld [vmem:[#allocation11] sm:$0xff]  ;;  %v5525_v45 = vld [vmem:[#allocation8 + $0x678] sm:$0xf0] }
 0x1f8   :  { %v5528_v21 = vor.u32 %v6246_v16, %v5525_v45 }
 0x1f9   :  { %3529 = vmatpush.bf16.msra.mxu3 %v5112_v42  ;;  %3563 = vmatpush.bf16.msrb.mxu2 %v5576_v18  ;;  %v5621_v18 = vld [vmem:[#allocation8 + $0x738] sm:$0xf0] }
 0x1fa   :  { %3870 = vmatpush.bf16.msra.mxu1 %v6311_v12  ;;  %v5624_v10 = vor.u32 %v6270_v8, %v5621_v18  ;;  %v6266_v12 = vld [vmem:[#allocation8 + $0x70c] sm:$0xf]  ;;  %v6328_v18 = vld [vmem:[#allocation11 + $0xf8] sm:$0xff] }
 0x1fb   :  { %3859 = vmatpush.bf16.msra.mxu0 %v6301_v38  ;;  %v6718_v33 = vpop.f32.mrf.mxu1  ;;  %v5509_v38 = vld [vmem:[#allocation8 + $0x658] sm:$0xf0] }
 0x1fc   :  { %v5512_v50 = vor.u32 %v6242_v37, %v5509_v38  ;;  %v6320_v37 = vld [vmem:[#allocation11 + $0xb8] sm:$0xff] }
 0x1fd   :  { %3530 = vmatpush.bf16.msra.mxu3 %v5096_v13  ;;  %3564 = vmatpush.bf16.msrb.mxu2 %v5560_v15  ;;  %v3261_v1 = vpop.f32.mrf.mxu2  ;;  %v5605_v13 = vld [vmem:[#allocation8 + $0x718] sm:$0xf0] }
 0x1fe   :  { %3871 = vmatpush.bf16.msra.mxu1 %v6310_v28  ;;  %v5608_v15 = vor.u32 %v6266_v12, %v5605_v13  ;;  %v6325_v13 = vld [vmem:[#allocation11 + $0xe0] sm:$0xff] }
 0x1ff   :  { %3860 = vmatpush.bf16.msra.mxu0 %v6300_v56 }
 0x200   :  { %3531 = vmatmul.bf16.vlgmr.msra.gmra.mxu3 %v6660_v41  ;;  %v3234_v41 = vadd.f32 %v6700_v34, %v6695_v19  ;;  %v6306_v19 = vld [vmem:[#allocation11 + $0x48] sm:$0xff] }
 0x201   :  { %3575 = vmatpush.bf16.msrb.mxu3 %v5720_v23  ;;  %3565 = vmatpush.bf16.msrb.mxu2 %v5544_v7  ;;  %v3272_v34 = vpop.f32.mrf.mxu3  ;;  %v6726_v23 = vld [vmem:[#allocation10] sm:$0xf] }
 0x202   :  { %3872 = vmatpush.bf16.msra.mxu1 %v6309_v32  ;;  %v3247_v56 = vadd.f32 %v6707_v6, %v3234_v41  ;;  %v5480_v6 = vor.u32 %v6234_v60, %v5477_v61  ;;  %v1885_v24 = vperm.slane %v6726_v23, 1  ;;  %v6314_v41 = vld [vmem:[#allocation11 + $0x88] sm:$0xff] }
 0x203   :  { %3861 = vmatpush.bf16.msra.mxu0 %v6299_v2  ;;  %v3352_v40 = vpop.f32.mrf.mxu1  ;;  %v6274_v2 = vld [vmem:[#allocation8 + $0x74c] sm:$0xf] }
 0x204   :  { %v3260_v62 = vadd.f32 %v3259_v39, %v3247_v56  ;;  %v5640_v3 = vor.u32 %v6274_v2, %v5637_v48  ;;  %v3286_v22 = vadd.f32 %v6703_v35, %v1885_v24  ;;  %v6319_v39 = vld [vmem:[#allocation11 + $0xb0] sm:$0xff] }
 0x205   :  { %3576 = vmatpush.bf16.msrb.mxu3 %v5704_v0  ;;  %3566 = vmatpush.bf16.msrb.mxu2 %v5528_v21  ;;  %v6323_v24 = vld [vmem:[#allocation11 + $0xd0] sm:$0xff] }
 0x206   :  { %3873 = vmatpush.bf16.msra.mxu1 %v6308_v49  ;;  %v3273_v42 = vadd.f32 %v3272_v34, %v3260_v62 }
 0x207   :  { %3862 = vmatpush.bf16.msra.mxu0 %v6298_v17  ;;  %v3311_v17 = vpop.f32.mrf.mxu2 }
 0x208   :  { %v3588_v4 = vmax.f32 %v3273_v42, 0.0 }
 0x209   :  { %3577 = vmatpush.bf16.msrb.mxu3 %v5688_v36  ;;  %3567 = vmatpush.bf16.msrb.mxu2 %v5512_v50  ;;  %v3274_v14 = vpop.f32.mrf.mxu3 }
 0x20a   :  { %3874 = vmatpush.bf16.msra.mxu1 %v6307_v27  ;;  %v3592_v20 = vpack.c.bf16 %v3588_v4, %v3588_v4 }
 0x20b   :  { %3863 = vmatpush.bf16.msra.mxu0 %v6297_v5  ;;  %v6723_v44 = vpop.f32.mrf.mxu0  ;;  %v3299_v5 = vadd.f32 %v6713_v58, %v3286_v22 }
 0x20d   :  { %3578 = vmatpush.bf16.msrb.mxu3 %v5672_v52  ;;  %3568 = vmatpush.bf16.msrb.mxu2 %v5496_v57  ;;  %v3312_v28 = vadd.f32 %v3311_v17, %v3299_v5  ;;  %v6315_v52 = vld [vmem:[#allocation11 + $0x90] sm:$0xff]  ;;  %v1886_v57 = vperm.slane %v6726_v23, 2  ;;  %v6321_v5 = vld [vmem:[#allocation11 + $0xc0] sm:$0xff] }
 0x20e   :  { %3875 = vmatpush.bf16.msra.mxu1 %v6306_v19  ;;  %3864 = vmatmul.bf16.vlgmr.msra.gmra.mxu0 %v3592_v20 }
 0x20f   :  { %v3313_v25 = vpop.f32.mrf.mxu2  ;;  %v3390_v60 = vadd.f32 %v6723_v44, %v1886_v57  ;;  %v6326_v44 = vld [vmem:[#allocation11 + $0xe8] sm:$0xff] }
 0x211   :  { %3579 = vmatpush.bf16.msrb.mxu3 %v5656_v59  ;;  %3569 = vmatpush.bf16.msrb.mxu2 %v5480_v6  ;;  %v3324_v26 = vpop.f32.mrf.mxu3  ;;  %v3402_v7 = vpop.f32.mrf.mxu1 }
 0x212   :  { %3876 = vmatpush.bf16.msra.mxu1 %v6305_v9  ;;  %v3325_v0 = vadd.f32 %v3324_v26, %v3312_v28  ;;  %v3403_v61 = vadd.f32 %v3402_v7, %v3390_v60  ;;  %v6322_v26 = vld [vmem:[#allocation11 + $0xc8] sm:$0xff] }
 0x213   :  { %v3391_v11 = vpop.f32.mrf.mxu0 }
 0x214   :  { %3570 = vmatmul.bf16.vlgmr.msrb.gmra.mxu2 %v6678_v55  ;;  %v3338_v45 = vadd.f32 %v6711_v51, %v3325_v0  ;;  %v6317_v51 = vld [vmem:[#allocation11 + $0xa0] sm:$0xff]  ;;  %v1887_v0 = vperm.slane %v6726_v23, 3  ;;  %v6342_v23 = vld [vmem:[%s6749_s6] ss:$0 sm:$0xff] }
 0x215   :  { %3580 = vmatpush.bf16.msrb.mxu3 %v5640_v3  ;;  %3882 = vmatpush.bf16.msra.mxu2 %v6320_v37 }
 0x216   :  { %v3351_v31 = vadd.f32 %v6718_v33, %v3338_v45  ;;  %v6316_v33 = vld [vmem:[#allocation11 + $0x98] sm:$0xff] }
 0x218   :  { %v3363_v55 = vpop.f32.mrf.mxu2 }
 0x219   :  { %3581 = vmatpush.bf16.msrb.mxu3 %v5624_v10  ;;  %v3326_v16 = vpop.f32.mrf.mxu3  ;;  %v3404_v30 = vpop.f32.mrf.mxu1  ;;  %v3364_v21 = vadd.f32 %v3363_v55, %v3351_v31  ;;  %3883 = vmatpush.bf16.msra.mxu2 %v6319_v39  ;;  %v6327_v10 = vld [vmem:[#allocation11 + $0xf0] sm:$0xff] }
 0x21d   :  { %3582 = vmatpush.bf16.msrb.mxu3 %v5608_v15  ;;  %3884 = vmatpush.bf16.msra.mxu2 %v6318_v47  ;;  %v6324_v15 = vld [vmem:[#allocation11 + $0xd8] sm:$0xff] }
 0x220   :  { %3583 = vmatmul.bf16.vlgmr.msrb.gmra.mxu3 %v6682_v29  ;;  %v3365_v36 = vpop.f32.mrf.mxu2 }
 0x221   :  { %v3376_v35 = vpop.f32.mrf.mxu3  ;;  %3885 = vmatpush.bf16.msra.mxu2 %v6317_v51  ;;  %3895 = vmatpush.bf16.msra.mxu3 %v6328_v18 }
 0x222   :  { %v3377_v38 = vadd.f32 %v3376_v35, %v3364_v21 }
 0x224   :  { %v3589_v58 = vmax.f32 %v3377_v38, 0.0 }
 0x225   :  { %3886 = vmatpush.bf16.msra.mxu2 %v6316_v33  ;;  %3896 = vmatpush.bf16.msra.mxu3 %v6327_v10 }
 0x226   :  { %v3593_v29 = vpack.c.bf16 %v3589_v58, %v3589_v58 }
 0x228   :  { %3877 = vmatmul.bf16.vlgmr.msra.gmra.mxu1 %v3593_v29 }
 0x229   :  { %v3378_v49 = vpop.f32.mrf.mxu3  ;;  %3887 = vmatpush.bf16.msra.mxu2 %v6315_v52  ;;  %3897 = vmatpush.bf16.msra.mxu3 %v6326_v44 }
 0x22b   :  { %v3441_v32 = vpop.f32.mrf.mxu0 }
 0x22d   :  { %3888 = vmatpush.bf16.msra.mxu2 %v6314_v41  ;;  %3898 = vmatpush.bf16.msra.mxu3 %v6325_v13 }
 0x231   :  { %3889 = vmatpush.bf16.msra.mxu2 %v6313_v54  ;;  %3899 = vmatpush.bf16.msra.mxu3 %v6324_v15 }
 0x232   :  { %v3454_v50 = vpop.f32.mrf.mxu1 }
 0x233   :  { %v3443_v43 = vpop.f32.mrf.mxu0 }
 0x235   :  { %3900 = vmatpush.bf16.msra.mxu3 %v6323_v24 }
 0x237   :  { %v3415_v53 = vpop.f32.mrf.mxu2 }
 0x238   :  { %v3416_v62 = vadd.f32 %v3415_v53, %v3403_v61 }
 0x239   :  { %3901 = vmatpush.bf16.msra.mxu3 %v6322_v26 }
 0x23a   :  { %v3456_v63 = vpop.f32.mrf.mxu1 }
 0x23d   :  { %3902 = vmatpush.bf16.msra.mxu3 %v6321_v5 }
 0x23f   :  { %v3417_v27 = vpop.f32.mrf.mxu2 }
 0x241   :  { %v3428_v56 = vpop.f32.mrf.mxu3 }
 0x242   :  { %v3429_v2 = vadd.f32 %v3428_v56, %v3416_v62 }
 0x244   :  { %v3442_v19 = vadd.f32 %v3441_v32, %v3429_v2 }
 0x246   :  { %v3455_v42 = vadd.f32 %v3454_v50, %v3442_v19 }
 0x249   :  { %v3430_v59 = vpop.f32.mrf.mxu3 }
 0x24b   :  { %v3493_v46 = vpop.f32.mrf.mxu0 }
 0x24c   :  { %v3494_v55 = vadd.f32 %v3493_v46, %v1887_v0 }
 0x253   :  { %v3495_v40 = vpop.f32.mrf.mxu0 }
 0x254   :  { %v3506_v1 = vpop.f32.mrf.mxu1 }
 0x255   :  { %v3507_v30 = vadd.f32 %v3506_v1, %v3494_v55 }
 0x257   :  { %v3467_v48 = vpop.f32.mrf.mxu2 }
 0x258   :  { %v3468_v3 = vadd.f32 %v3467_v48, %v3455_v42 }
 0x25c   :  { %v3508_v34 = vpop.f32.mrf.mxu1 }
 0x25f   :  { %v3469_v4 = vpop.f32.mrf.mxu2 }
 0x263   :  { %v3480_v8 = vpop.f32.mrf.mxu3 }
 0x264   :  { %v3481_v9 = vadd.f32 %v3480_v8, %v3468_v3 }
 0x266   :  { %v3590_v20 = vmax.f32 %v3481_v9, 0.0 }
 0x268   :  { %v3594_v11 = vpack.c.bf16 %v3590_v20, %v3590_v20 }
 0x26a   :  { %3890 = vmatmul.bf16.vlgmr.msra.gmra.mxu2 %v3594_v11 }
 0x26b   :  { %v3545_v6 = vpop.f32.mrf.mxu0  ;;  %v3482_v12 = vpop.f32.mrf.mxu3 }
 0x273   :  { %v3547_v17 = vpop.f32.mrf.mxu0 }
 0x274   :  { %v3558_v14 = vpop.f32.mrf.mxu1 }
 0x277   :  { %v3519_v22 = vpop.f32.mrf.mxu2 }
 0x278   :  { %v3520_v31 = vadd.f32 %v3519_v22, %v3507_v30 }
 0x27c   :  { %v3560_v25 = vpop.f32.mrf.mxu1 }
 0x27f   :  { %v3521_v28 = vpop.f32.mrf.mxu2 }
 0x283   :  { %v3532_v7 = vpop.f32.mrf.mxu3 }
 0x284   :  { %v3533_v32 = vadd.f32 %v3532_v7, %v3520_v31 }
 0x286   :  { %v3546_v35 = vadd.f32 %v3545_v6, %v3533_v32 }
 0x288   :  { %v3559_v37 = vadd.f32 %v3558_v14, %v3546_v35 }
 0x28b   :  { %v3534_v16 = vpop.f32.mrf.mxu3  ;;  %v3865_v45 = vpop.f32.mrf.mxu0 }
 0x28c   :  { %v3866_v51 = vadd.f32 %v6342_v23, %v3865_v45 }
 0x293   :  { %v3867_v36 = vpop.f32.mrf.mxu0 }
 0x297   :  { %v3571_v21 = vpop.f32.mrf.mxu2 }
 0x298   :  { %v3572_v38 = vadd.f32 %v3571_v21, %v3559_v37 }
 0x29f   :  { %v3573_v58 = vpop.f32.mrf.mxu2 }
 0x2a3   :  { %v3584_v39 = vpop.f32.mrf.mxu3 }
 0x2a4   :  { %v3585_v29 = vadd.f32 %v3584_v39, %v3572_v38 }
 0x2a5   :  { %v3878_v50 = vpop.f32.mrf.mxu1 }
 0x2a6   :  { %v3591_v43 = vmax.f32 %v3585_v29, 0.0  ;;  %v3879_v33 = vadd.f32 %v3878_v50, %v3866_v51 }
 0x2a8   :  { %v3595_v47 = vpack.c.bf16 %v3591_v43, %v3591_v43 }
 0x2aa   :  { %3903 = vmatmul.bf16.vlgmr.msra.gmra.mxu3 %v3595_v47 }
 0x2ab   :  { %v3586_v49 = vpop.f32.mrf.mxu3 }
 0x2ad   :  { %v3880_v52 = vpop.f32.mrf.mxu1 }
 0x2ed   :  { %v3891_v53 = vpop.f32.mrf.mxu2 }
 0x2ee   :  { %v3892_v41 = vadd.f32 %v3891_v53, %v3879_v33 }
 0x2f5   :  { %v3893_v63 = vpop.f32.mrf.mxu2 }
 0x32d   :  { %v3904_v46 = vpop.f32.mrf.mxu3 }
 0x32e   :  { %v3905_v54 = vadd.f32 %v3904_v46, %v3892_v41 }
 0x330   :  { %3908 = vst [vmem:[#allocation13] sm:$0xff] %v3905_v54 }
 0x331   :  { %3919 = dma.vmem_to_hbm [thread:$0]  %s3915_s11, 128, %s3917_s14, [#allocation4]  }
 0x335   :  { %v3906_v27 = vpop.f32.mrf.mxu3 }
 0x336   :  { %6521 = dma.done.wait [#allocation4], 128  }
 0x337   :  { %6522 = vsyncadd [#allocation4], 4294967168 }
 0x338   :  { %3924 = vsyncpa [#allocation3], 1 }
 0x339   :  { %3925 = vsyncpa [#allocation6], 1 }
 0x33a   :  { %3926 = vsyncpa [#allocation9], 1 }
 0x33b   :  { %3927 = vsyncpa [#allocation12], 1 }
 0x33c   :  { %3928 = vsyncpa [#allocation4], 1 }

</bundles_post_ra>
